<compile_context>
chip_gen: v5e
topology: v5e:2x2
jax: 0.10.0
libtpu: 0.0.40
codegen_flags: <defaults>
</compile_context>

<pallas_src>
import functools

import jax
import jax.numpy as jnp
from jax import lax
from jax.experimental import pallas as pl
from jax.experimental.pallas import tpu as pltpu


def _conv3x3_slabs(mid_bf16, w2_l, H, W):
    """3x3 'same' conv of mid (H*W, Cmid) with w2_l (9*Cmid, G), im2col layout.

    The 3 dx-shifted views are materialized once (in bf16) and reused for all
    3 dy offsets; the conv is 3 accumulated matmuls of K = 3*Cmid each.
    """
    HW, C = mid_bf16.shape
    x = mid_bf16.reshape(H, W, C)
    zcol = jnp.zeros((H, 1, C), mid_bf16.dtype)
    xl = jnp.concatenate([zcol, x[:, :W - 1, :]], axis=1)   # holds x[:, w-1, :]
    xr = jnp.concatenate([x[:, 1:, :], zcol], axis=1)       # holds x[:, w+1, :]
    col = jnp.concatenate([xl, x, xr], axis=-1)             # (H, W, 3*C), kx-major
    zrow = jnp.zeros((1, W, 3 * C), mid_bf16.dtype)
    slabs = (
        jnp.concatenate([zrow, col[:H - 1]], axis=0),        # dy=0: x[h-1, ...]
        col,                                                  # dy=1: x[h,   ...]
        jnp.concatenate([col[1:], zrow], axis=0),             # dy=2: x[h+1, ...]
    )
    acc = None
    for s, slab in enumerate(slabs):
        part = jnp.dot(slab.reshape(HW, 3 * C),
                       w2_l[s * 3 * C:(s + 1) * 3 * C],
                       preferred_element_type=jnp.float32)
        acc = part if acc is None else acc + part
    return acc                                               # (HW, G) f32


def _dense_block_kernel(H, W, C0, G, x_ref, s1_ref, b1_ref, w1_ref, b2_ref,
                        w2_ref, o_ref):
    """Fused DenseBlock for one batch element (one grid step).

    Block shapes:
      x_ref  : (1, H*W, C0)     f32 input features (spatially flattened)
      s1_ref : (L, 1, Ctot)     f32 folded BN1 scale (zero-padded per layer)
      b1_ref : (L, 1, Ctot)     f32 folded BN1 shift (zero-padded per layer)
      w1_ref : (L, Ctot, Cmid)  bf16 1x1 conv weight (BN2 scale folded in,
                                rows >= cin_l zero-padded)
      b2_ref : (L, 1, Cmid)     f32 folded BN2 shift
      w2_ref : (L, 9*Cmid, G)   bf16 3x3 conv weight, im2col (ky,kx,ci) layout
      o_ref  : (1, H*W, Ctot)   f32 concatenated output; doubles as the
                                ref-resident dense feature buffer.
    """
    HW = x_ref.shape[1]
    L, _, Ctot = s1_ref.shape

    # Initialize the ref-resident feature buffer once: input into lanes [:C0],
    # zeros elsewhere (so BN1's scale=0/shift=0 on not-yet-written lanes never
    # multiplies NaN/Inf garbage).
    o_ref[0, :, 0:C0] = x_ref[0]
    o_ref[0, :, C0:Ctot] = jnp.zeros((HW, Ctot - C0), jnp.float32)

    for l in range(L):  # static unroll; TODO(synk): lax.fori_loop for L > 4
        feats = o_ref[0]                                     # (HW, Ctot) f32
        t = jnp.maximum(feats * s1_ref[l] + b1_ref[l], 0.0)  # BN1 + ReLU (f32)
        mid = jnp.dot(t.astype(jnp.bfloat16), w1_ref[l],     # 1x1 conv on MXU
                      preferred_element_type=jnp.float32)    # (HW, Cmid) f32
        mid = jnp.maximum(mid + b2_ref[l], 0.0)              # BN2 shift + ReLU
        mid = mid.astype(jnp.bfloat16)                       # im2col in bf16
        new = _conv3x3_slabs(mid, w2_ref[l], H, W)           # (HW, G) f32
        # Dense "concat": write the new G channels into their static lanes.
        o_ref[0, :, C0 + l * G:C0 + (l + 1) * G] = new


def dense_block_pallas(x_nchw, layer_params):
    """DenseBlock.forward (inference BN), NCHW in / NCHW out."""
    N, C0, H, W = x_nchw.shape
    L = len(layer_params)
    G = layer_params[0]["w2_oihw"].shape[0]
    Cmid = layer_params[0]["w2_oihw"].shape[1]
    Ctot = C0 + L * G
    HW = H * W

    # NCHW -> (N, H*W, C): channels on the lane axis, spatial flattened (glue).
    x = jnp.transpose(x_nchw, (0, 2, 3, 1)).reshape(N, HW, C0)

    # Stack per-layer params, zero-padding the channel axis to Ctot.
    s1 = jnp.zeros((L, 1, Ctot), jnp.float32)
    b1 = jnp.zeros((L, 1, Ctot), jnp.float32)
    w1 = jnp.zeros((L, Ctot, Cmid), jnp.bfloat16)
    b2 = jnp.zeros((L, 1, Cmid), jnp.float32)
    w2 = jnp.zeros((L, 9 * Cmid, G), jnp.bfloat16)
    for l, p in enumerate(layer_params):
        cin = C0 + l * G
        s1 = s1.at[l, 0, :cin].set(p["scale1"])
        b1 = b1.at[l, 0, :cin].set(p["shift1"])
        # Fold BN2's scale into the 1x1 conv weight (linear, pre-ReLU: exact).
        w1_f = (jnp.transpose(p["w1_oihw"][:, :, 0, 0], (1, 0))
                * p["scale2"][None, :])
        w1 = w1.at[l, :cin, :].set(w1_f.astype(jnp.bfloat16))
        b2 = b2.at[l, 0, :].set(p["shift2"])
        w2_f = jnp.transpose(p["w2_oihw"], (2, 3, 1, 0)).reshape(9 * Cmid, G)
        w2 = w2.at[l].set(w2_f.astype(jnp.bfloat16))

    out = pl.pallas_call(
        functools.partial(_dense_block_kernel, H, W, C0, G),
        out_shape=jax.ShapeDtypeStruct((N, HW, Ctot), jnp.float32),
        grid_spec=pltpu.PrefetchScalarGridSpec(
            num_scalar_prefetch=0,
            grid=(N,),
            in_specs=[
                pl.BlockSpec((1, HW, C0), lambda n: (n, 0, 0)),
                pl.BlockSpec((L, 1, Ctot), lambda n: (0, 0, 0)),
                pl.BlockSpec((L, 1, Ctot), lambda n: (0, 0, 0)),
                pl.BlockSpec((L, Ctot, Cmid), lambda n: (0, 0, 0)),
                pl.BlockSpec((L, 1, Cmid), lambda n: (0, 0, 0)),
                pl.BlockSpec((L, 9 * Cmid, G), lambda n: (0, 0, 0)),
            ],
            out_specs=pl.BlockSpec((1, HW, Ctot), lambda n: (n, 0, 0)),
        ),
        compiler_params=pltpu.CompilerParams(
            dimension_semantics=("parallel",)),
    )(x, s1, b1, w1, b2, w2)

    # (N, H*W, Ctot) -> NCHW
    return jnp.transpose(out.reshape(N, H, W, Ctot), (0, 3, 1, 2))


# ----------------------- deterministic parameter setup -----------------------

def make_layer_params(key, cin, growth):
    cmid = 4 * growth
    eps = 1e-5
    ks = jax.random.split(key, 10)
    gamma1 = 1.0 + 0.1 * jax.random.normal(ks[0], (cin,), jnp.float32)
    beta1 = 0.1 * jax.random.normal(ks[1], (cin,), jnp.float32)
    mean1 = 0.1 * jax.random.normal(ks[2], (cin,), jnp.float32)
    var1 = jax.random.uniform(ks[3], (cin,), jnp.float32, 0.5, 1.5)
    gamma2 = 1.0 + 0.1 * jax.random.normal(ks[4], (cmid,), jnp.float32)
    beta2 = 0.1 * jax.random.normal(ks[5], (cmid,), jnp.float32)
    mean2 = 0.1 * jax.random.normal(ks[6], (cmid,), jnp.float32)
    var2 = jax.random.uniform(ks[7], (cmid,), jnp.float32, 0.5, 1.5)
    w1_oihw = 0.2 * jax.random.normal(ks[8], (cmid, cin, 1, 1), jnp.float32)
    w2_oihw = 0.2 * jax.random.normal(ks[9], (growth, cmid, 3, 3), jnp.float32)

    scale1 = gamma1 * lax.rsqrt(var1 + eps)
    shift1 = beta1 - mean1 * scale1
    scale2 = gamma2 * lax.rsqrt(var2 + eps)
    shift2 = beta2 - mean2 * scale2

    return {
        "scale1": scale1, "shift1": shift1,
        "scale2": scale2, "shift2": shift2,
        "w1_oihw": w1_oihw, "w2_oihw": w2_oihw,
    }


# ----------------------------- pure-JAX reference ----------------------------

def reference_block(x_nchw, layer_params):
    dn = ("NCHW", "OIHW", "NCHW")
    feats = x_nchw
    for p in layer_params:
        t = jnp.maximum(
            feats * p["scale1"][None, :, None, None]
            + p["shift1"][None, :, None, None], 0.0)
        mid = lax.conv_general_dilated(
            t, p["w1_oihw"], (1, 1), "VALID", dimension_numbers=dn,
            precision=lax.Precision.HIGHEST)
        mid = jnp.maximum(
            mid * p["scale2"][None, :, None, None]
            + p["shift2"][None, :, None, None], 0.0)
        new = lax.conv_general_dilated(
            mid, p["w2_oihw"], (1, 1), ((1, 1), (1, 1)), dimension_numbers=dn,
            precision=lax.Precision.HIGHEST)
        feats = jnp.concatenate([feats, new], axis=1)
    return feats


if __name__ == "__main__":
    N, C0, H, W = 2, 8, 16, 16
    num_layer, growth = 3, 4

    key = jax.random.PRNGKey(0)
    key, kx = jax.random.split(key)
    x_nchw = jax.random.normal(kx, (N, C0, H, W), jnp.float32)

    layer_params = []
    cin = C0
    for _ in range(num_layer):
        key, sub = jax.random.split(key)
        layer_params.append(make_layer_params(sub, cin, growth))
        cin += growth

    out = jax.block_until_ready(dense_block_pallas(x_nchw, layer_params))
    assert out.shape == (N, C0 + num_layer * growth, H, W), out.shape

    ref = reference_block(x_nchw, layer_params)
    max_err = float(jnp.max(jnp.abs(out - ref)))
    # bf16 MXU inputs vs f32 HIGHEST reference -> small rounding differences.
    assert jnp.allclose(out, ref, atol=2e-2, rtol=2e-2), max_err

    print("KERNEL_OK")
</pallas_src>

<mosaic_0001>
module attributes {stable_mosaic.version = 11 : i64} {
  func.func @_dense_block_kernel(%arg0: i32, %arg1: memref<1x256x8xf32, #tpu.memory_space<vmem>>, %arg2: memref<3x1x20xf32, #tpu.memory_space<vmem>>, %arg3: memref<3x1x20xf32, #tpu.memory_space<vmem>>, %arg4: memref<3x20x16xbf16, #tpu.memory_space<vmem>>, %arg5: memref<3x1x16xf32, #tpu.memory_space<vmem>>, %arg6: memref<3x144x4xbf16, #tpu.memory_space<vmem>>, %arg7: memref<1x256x20xf32, #tpu.memory_space<vmem>>) attributes {dimension_semantics = [#tpu.dimension_semantics<parallel>], iteration_bounds = array<i64: 2>, scalar_prefetch = 0 : i64, scratch_operands = 0 : i64, tpu.core_type = #tpu.core_type<tc>, window_params = [{transform_indices = @transform_0, window_bounds = array<i64: 1, 256, 8>}, {pipeline_mode = #tpu.pipeline_mode<synchronous>, transform_indices = @transform_1, window_bounds = array<i64: 3, 1, 20>}, {pipeline_mode = #tpu.pipeline_mode<synchronous>, transform_indices = @transform_2, window_bounds = array<i64: 3, 1, 20>}, {pipeline_mode = #tpu.pipeline_mode<synchronous>, transform_indices = @transform_3, window_bounds = array<i64: 3, 20, 16>}, {pipeline_mode = #tpu.pipeline_mode<synchronous>, transform_indices = @transform_4, window_bounds = array<i64: 3, 1, 16>}, {pipeline_mode = #tpu.pipeline_mode<synchronous>, transform_indices = @transform_5, window_bounds = array<i64: 3, 144, 4>}, {transform_indices = @transform_6, window_bounds = array<i64: 1, 256, 20>}]} {
    %c0 = arith.constant 0 : index
    %c0_0 = arith.constant 0 : index
    %c0_1 = arith.constant 0 : index
    %0 = vector.load %arg1[%c0, %c0_0, %c0_1] : memref<1x256x8xf32, #tpu.memory_space<vmem>>, vector<1x256x8xf32>
    %1 = vector.shape_cast %0 : vector<1x256x8xf32> to vector<256x8xf32>
    %c0_2 = arith.constant 0 : index
    %c0_3 = arith.constant 0 : index
    %c0_4 = arith.constant 0 : index
    %2 = vector.load %arg7[%c0_2, %c0_3, %c0_4] : memref<1x256x20xf32, #tpu.memory_space<vmem>>, vector<1x256x8xf32>
    %3 = vector.shape_cast %2 : vector<1x256x8xf32> to vector<256x8xf32>
    %4 = vector.shape_cast %1 : vector<256x8xf32> to vector<1x256x8xf32>
    tpu.vector_store %arg7[%c0_2, %c0_3, %c0_4], %4 {strides = array<i32>} : memref<1x256x20xf32, #tpu.memory_space<vmem>>, vector<1x256x8xf32>,
    %cst = arith.constant 0.000000e+00 : f32
    %5 = vector.broadcast %cst : f32 to vector<256x12xf32>
    %c0_5 = arith.constant 0 : index
    %c0_6 = arith.constant 0 : index
    %c8 = arith.constant 8 : index
    %6 = vector.load %arg7[%c0_5, %c0_6, %c8] : memref<1x256x20xf32, #tpu.memory_space<vmem>>, vector<1x256x12xf32>
    %7 = vector.shape_cast %6 : vector<1x256x12xf32> to vector<256x12xf32>
    %8 = vector.shape_cast %5 : vector<256x12xf32> to vector<1x256x12xf32>
    tpu.vector_store %arg7[%c0_5, %c0_6, %c8], %8 {strides = array<i32>} : memref<1x256x20xf32, #tpu.memory_space<vmem>>, vector<1x256x12xf32>,
    %c0_7 = arith.constant 0 : index
    %c0_8 = arith.constant 0 : index
    %c0_9 = arith.constant 0 : index
    %9 = vector.load %arg7[%c0_7, %c0_8, %c0_9] : memref<1x256x20xf32, #tpu.memory_space<vmem>>, vector<1x256x20xf32>
    %10 = vector.shape_cast %9 : vector<1x256x20xf32> to vector<256x20xf32>
    %c0_10 = arith.constant 0 : index
    %c0_11 = arith.constant 0 : index
    %c0_12 = arith.constant 0 : index
    %11 = vector.load %arg2[%c0_10, %c0_11, %c0_12] : memref<3x1x20xf32, #tpu.memory_space<vmem>>, vector<1x1x20xf32>
    %12 = vector.shape_cast %11 : vector<1x1x20xf32> to vector<1x20xf32>
    %13 = vector.broadcast %12 : vector<1x20xf32> to vector<256x20xf32>
    %14 = arith.mulf %10, %13 : vector<256x20xf32>
    %c0_13 = arith.constant 0 : index
    %c0_14 = arith.constant 0 : index
    %c0_15 = arith.constant 0 : index
    %15 = vector.load %arg3[%c0_13, %c0_14, %c0_15] : memref<3x1x20xf32, #tpu.memory_space<vmem>>, vector<1x1x20xf32>
    %16 = vector.shape_cast %15 : vector<1x1x20xf32> to vector<1x20xf32>
    %17 = vector.broadcast %16 : vector<1x20xf32> to vector<256x20xf32>
    %18 = arith.addf %14, %17 : vector<256x20xf32>
    %cst_16 = arith.constant 0.000000e+00 : f32
    %19 = vector.broadcast %cst_16 : f32 to vector<256x20xf32>
    %20 = arith.maximumf %18, %19 : vector<256x20xf32>
    %21 = arith.truncf %20 : vector<256x20xf32> to vector<256x20xbf16>
    %c0_17 = arith.constant 0 : index
    %c0_18 = arith.constant 0 : index
    %c0_19 = arith.constant 0 : index
    %22 = vector.load %arg4[%c0_17, %c0_18, %c0_19] : memref<3x20x16xbf16, #tpu.memory_space<vmem>>, vector<1x20x16xbf16>
    %23 = vector.shape_cast %22 : vector<1x20x16xbf16> to vector<20x16xbf16>
    %cst_20 = arith.constant dense<0.000000e+00> : vector<256x16xf32>
    %24 = tpu.matmul %21, %23, %cst_20 {dimension_numbers = #tpu.dot_dimension_numbers<[1], [0], [0], [1], [0, 0, 1, 1], [], []>} : vector<256x20xbf16>, vector<20x16xbf16>, vector<256x16xf32> -> vector<256x16xf32>
    %c0_21 = arith.constant 0 : index
    %c0_22 = arith.constant 0 : index
    %c0_23 = arith.constant 0 : index
    %25 = vector.load %arg5[%c0_21, %c0_22, %c0_23] : memref<3x1x16xf32, #tpu.memory_space<vmem>>, vector<1x1x16xf32>
    %26 = vector.shape_cast %25 : vector<1x1x16xf32> to vector<1x16xf32>
    %27 = vector.broadcast %26 : vector<1x16xf32> to vector<256x16xf32>
    %28 = arith.addf %24, %27 : vector<256x16xf32>
    %cst_24 = arith.constant 0.000000e+00 : f32
    %29 = vector.broadcast %cst_24 : f32 to vector<256x16xf32>
    %30 = arith.maximumf %28, %29 : vector<256x16xf32>
    %31 = arith.truncf %30 : vector<256x16xf32> to vector<256x16xbf16>
    %c0_25 = arith.constant 0 : index
    %c0_26 = arith.constant 0 : index
    %c0_27 = arith.constant 0 : index
    %32 = vector.load %arg6[%c0_25, %c0_26, %c0_27] : memref<3x144x4xbf16, #tpu.memory_space<vmem>>, vector<1x144x4xbf16>
    %33 = vector.shape_cast %32 : vector<1x144x4xbf16> to vector<144x4xbf16>
    %34 = vector.shape_cast %31 : vector<256x16xbf16> to vector<16x16x16xbf16>
    %cst_28 = arith.constant 0.000000e+00 : bf16
    %35 = vector.broadcast %cst_28 : bf16 to vector<16x1x16xbf16>
    %36 = vector.extract_strided_slice %34 {offsets = [0, 0, 0], sizes = [16, 15, 16], strides = [1, 1, 1]} : vector<16x16x16xbf16> to vector<16x15x16xbf16>
    %37 = tpu.concatenate %35, %36 in 1 : vector<16x1x16xbf16>, vector<16x15x16xbf16> -> vector<16x16x16xbf16>
    %38 = vector.extract_strided_slice %34 {offsets = [0, 1, 0], sizes = [16, 15, 16], strides = [1, 1, 1]} : vector<16x16x16xbf16> to vector<16x15x16xbf16>
    %39 = tpu.concatenate %38, %35 in 1 : vector<16x15x16xbf16>, vector<16x1x16xbf16> -> vector<16x16x16xbf16>
    %40 = tpu.concatenate %37, %34, %39 in 2 : vector<16x16x16xbf16>, vector<16x16x16xbf16>, vector<16x16x16xbf16> -> vector<16x16x48xbf16>
    %cst_29 = arith.constant 0.000000e+00 : bf16
    %41 = vector.broadcast %cst_29 : bf16 to vector<1x16x48xbf16>
    %42 = vector.extract_strided_slice %40 {offsets = [0, 0, 0], sizes = [15, 16, 48], strides = [1, 1, 1]} : vector<16x16x48xbf16> to vector<15x16x48xbf16>
    %43 = tpu.concatenate %41, %42 in 0 : vector<1x16x48xbf16>, vector<15x16x48xbf16> -> vector<16x16x48xbf16>
    %44 = vector.extract_strided_slice %40 {offsets = [1, 0, 0], sizes = [15, 16, 48], strides = [1, 1, 1]} : vector<16x16x48xbf16> to vector<15x16x48xbf16>
    %45 = tpu.concatenate %44, %41 in 0 : vector<15x16x48xbf16>, vector<1x16x48xbf16> -> vector<16x16x48xbf16>
    %46 = vector.shape_cast %43 : vector<16x16x48xbf16> to vector<256x48xbf16>
    %47 = vector.extract_strided_slice %33 {offsets = [0, 0], sizes = [48, 4], strides = [1, 1]} : vector<144x4xbf16> to vector<48x4xbf16>
    %cst_30 = arith.constant dense<0.000000e+00> : vector<256x4xf32>
    %48 = tpu.matmul %46, %47, %cst_30 {dimension_numbers = #tpu.dot_dimension_numbers<[1], [0], [0], [1], [0, 0, 1, 1], [], []>} : vector<256x48xbf16>, vector<48x4xbf16>, vector<256x4xf32> -> vector<256x4xf32>
    %49 = vector.shape_cast %40 : vector<16x16x48xbf16> to vector<256x48xbf16>
    %50 = vector.extract_strided_slice %33 {offsets = [48, 0], sizes = [48, 4], strides = [1, 1]} : vector<144x4xbf16> to vector<48x4xbf16>
    %cst_31 = arith.constant dense<0.000000e+00> : vector<256x4xf32>
    %51 = tpu.matmul %49, %50, %cst_31 {dimension_numbers = #tpu.dot_dimension_numbers<[1], [0], [0], [1], [0, 0, 1, 1], [], []>} : vector<256x48xbf16>, vector<48x4xbf16>, vector<256x4xf32> -> vector<256x4xf32>
    %52 = arith.addf %48, %51 : vector<256x4xf32>
    %53 = vector.shape_cast %45 : vector<16x16x48xbf16> to vector<256x48xbf16>
    %54 = vector.extract_strided_slice %33 {offsets = [96, 0], sizes = [48, 4], strides = [1, 1]} : vector<144x4xbf16> to vector<48x4xbf16>
    %cst_32 = arith.constant dense<0.000000e+00> : vector<256x4xf32>
    %55 = tpu.matmul %53, %54, %cst_32 {dimension_numbers = #tpu.dot_dimension_numbers<[1], [0], [0], [1], [0, 0, 1, 1], [], []>} : vector<256x48xbf16>, vector<48x4xbf16>, vector<256x4xf32> -> vector<256x4xf32>
    %56 = arith.addf %52, %55 : vector<256x4xf32>
    %c0_33 = arith.constant 0 : index
    %c0_34 = arith.constant 0 : index
    %c8_35 = arith.constant 8 : index
    %57 = vector.load %arg7[%c0_33, %c0_34, %c8_35] : memref<1x256x20xf32, #tpu.memory_space<vmem>>, vector<1x256x4xf32>
    %58 = vector.shape_cast %57 : vector<1x256x4xf32> to vector<256x4xf32>
    %59 = vector.shape_cast %56 : vector<256x4xf32> to vector<1x256x4xf32>
    tpu.vector_store %arg7[%c0_33, %c0_34, %c8_35], %59 {strides = array<i32>} : memref<1x256x20xf32, #tpu.memory_space<vmem>>, vector<1x256x4xf32>,
    %c0_36 = arith.constant 0 : index
    %c0_37 = arith.constant 0 : index
    %c0_38 = arith.constant 0 : index
    %60 = vector.load %arg7[%c0_36, %c0_37, %c0_38] : memref<1x256x20xf32, #tpu.memory_space<vmem>>, vector<1x256x20xf32>
    %61 = vector.shape_cast %60 : vector<1x256x20xf32> to vector<256x20xf32>
    %c1 = arith.constant 1 : index
    %c0_39 = arith.constant 0 : index
    %c0_40 = arith.constant 0 : index
    %62 = vector.load %arg2[%c1, %c0_39, %c0_40] : memref<3x1x20xf32, #tpu.memory_space<vmem>>, vector<1x1x20xf32>
    %63 = vector.shape_cast %62 : vector<1x1x20xf32> to vector<1x20xf32>
    %64 = vector.broadcast %63 : vector<1x20xf32> to vector<256x20xf32>
    %65 = arith.mulf %61, %64 : vector<256x20xf32>
    %c1_41 = arith.constant 1 : index
    %c0_42 = arith.constant 0 : index
    %c0_43 = arith.constant 0 : index
    %66 = vector.load %arg3[%c1_41, %c0_42, %c0_43] : memref<3x1x20xf32, #tpu.memory_space<vmem>>, vector<1x1x20xf32>
    %67 = vector.shape_cast %66 : vector<1x1x20xf32> to vector<1x20xf32>
    %68 = vector.broadcast %67 : vector<1x20xf32> to vector<256x20xf32>
    %69 = arith.addf %65, %68 : vector<256x20xf32>
    %cst_44 = arith.constant 0.000000e+00 : f32
    %70 = vector.broadcast %cst_44 : f32 to vector<256x20xf32>
    %71 = arith.maximumf %69, %70 : vector<256x20xf32>
    %72 = arith.truncf %71 : vector<256x20xf32> to vector<256x20xbf16>
    %c1_45 = arith.constant 1 : index
    %c0_46 = arith.constant 0 : index
    %c0_47 = arith.constant 0 : index
    %73 = vector.load %arg4[%c1_45, %c0_46, %c0_47] : memref<3x20x16xbf16, #tpu.memory_space<vmem>>, vector<1x20x16xbf16>
    %74 = vector.shape_cast %73 : vector<1x20x16xbf16> to vector<20x16xbf16>
    %cst_48 = arith.constant dense<0.000000e+00> : vector<256x16xf32>
    %75 = tpu.matmul %72, %74, %cst_48 {dimension_numbers = #tpu.dot_dimension_numbers<[1], [0], [0], [1], [0, 0, 1, 1], [], []>} : vector<256x20xbf16>, vector<20x16xbf16>, vector<256x16xf32> -> vector<256x16xf32>
    %c1_49 = arith.constant 1 : index
    %c0_50 = arith.constant 0 : index
    %c0_51 = arith.constant 0 : index
    %76 = vector.load %arg5[%c1_49, %c0_50, %c0_51] : memref<3x1x16xf32, #tpu.memory_space<vmem>>, vector<1x1x16xf32>
    %77 = vector.shape_cast %76 : vector<1x1x16xf32> to vector<1x16xf32>
    %78 = vector.broadcast %77 : vector<1x16xf32> to vector<256x16xf32>
    %79 = arith.addf %75, %78 : vector<256x16xf32>
    %cst_52 = arith.constant 0.000000e+00 : f32
    %80 = vector.broadcast %cst_52 : f32 to vector<256x16xf32>
    %81 = arith.maximumf %79, %80 : vector<256x16xf32>
    %82 = arith.truncf %81 : vector<256x16xf32> to vector<256x16xbf16>
    %c1_53 = arith.constant 1 : index
    %c0_54 = arith.constant 0 : index
    %c0_55 = arith.constant 0 : index
    %83 = vector.load %arg6[%c1_53, %c0_54, %c0_55] : memref<3x144x4xbf16, #tpu.memory_space<vmem>>, vector<1x144x4xbf16>
    %84 = vector.shape_cast %83 : vector<1x144x4xbf16> to vector<144x4xbf16>
    %85 = vector.shape_cast %82 : vector<256x16xbf16> to vector<16x16x16xbf16>
    %cst_56 = arith.constant 0.000000e+00 : bf16
    %86 = vector.broadcast %cst_56 : bf16 to vector<16x1x16xbf16>
    %87 = vector.extract_strided_slice %85 {offsets = [0, 0, 0], sizes = [16, 15, 16], strides = [1, 1, 1]} : vector<16x16x16xbf16> to vector<16x15x16xbf16>
    %88 = tpu.concatenate %86, %87 in 1 : vector<16x1x16xbf16>, vector<16x15x16xbf16> -> vector<16x16x16xbf16>
    %89 = vector.extract_strided_slice %85 {offsets = [0, 1, 0], sizes = [16, 15, 16], strides = [1, 1, 1]} : vector<16x16x16xbf16> to vector<16x15x16xbf16>
    %90 = tpu.concatenate %89, %86 in 1 : vector<16x15x16xbf16>, vector<16x1x16xbf16> -> vector<16x16x16xbf16>
    %91 = tpu.concatenate %88, %85, %90 in 2 : vector<16x16x16xbf16>, vector<16x16x16xbf16>, vector<16x16x16xbf16> -> vector<16x16x48xbf16>
    %cst_57 = arith.constant 0.000000e+00 : bf16
    %92 = vector.broadcast %cst_57 : bf16 to vector<1x16x48xbf16>
    %93 = vector.extract_strided_slice %91 {offsets = [0, 0, 0], sizes = [15, 16, 48], strides = [1, 1, 1]} : vector<16x16x48xbf16> to vector<15x16x48xbf16>
    %94 = tpu.concatenate %92, %93 in 0 : vector<1x16x48xbf16>, vector<15x16x48xbf16> -> vector<16x16x48xbf16>
    %95 = vector.extract_strided_slice %91 {offsets = [1, 0, 0], sizes = [15, 16, 48], strides = [1, 1, 1]} : vector<16x16x48xbf16> to vector<15x16x48xbf16>
    %96 = tpu.concatenate %95, %92 in 0 : vector<15x16x48xbf16>, vector<1x16x48xbf16> -> vector<16x16x48xbf16>
    %97 = vector.shape_cast %94 : vector<16x16x48xbf16> to vector<256x48xbf16>
    %98 = vector.extract_strided_slice %84 {offsets = [0, 0], sizes = [48, 4], strides = [1, 1]} : vector<144x4xbf16> to vector<48x4xbf16>
    %cst_58 = arith.constant dense<0.000000e+00> : vector<256x4xf32>
    %99 = tpu.matmul %97, %98, %cst_58 {dimension_numbers = #tpu.dot_dimension_numbers<[1], [0], [0], [1], [0, 0, 1, 1], [], []>} : vector<256x48xbf16>, vector<48x4xbf16>, vector<256x4xf32> -> vector<256x4xf32>
    %100 = vector.shape_cast %91 : vector<16x16x48xbf16> to vector<256x48xbf16>
    %101 = vector.extract_strided_slice %84 {offsets = [48, 0], sizes = [48, 4], strides = [1, 1]} : vector<144x4xbf16> to vector<48x4xbf16>
    %cst_59 = arith.constant dense<0.000000e+00> : vector<256x4xf32>
    %102 = tpu.matmul %100, %101, %cst_59 {dimension_numbers = #tpu.dot_dimension_numbers<[1], [0], [0], [1], [0, 0, 1, 1], [], []>} : vector<256x48xbf16>, vector<48x4xbf16>, vector<256x4xf32> -> vector<256x4xf32>
    %103 = arith.addf %99, %102 : vector<256x4xf32>
    %104 = vector.shape_cast %96 : vector<16x16x48xbf16> to vector<256x48xbf16>
    %105 = vector.extract_strided_slice %84 {offsets = [96, 0], sizes = [48, 4], strides = [1, 1]} : vector<144x4xbf16> to vector<48x4xbf16>
    %cst_60 = arith.constant dense<0.000000e+00> : vector<256x4xf32>
    %106 = tpu.matmul %104, %105, %cst_60 {dimension_numbers = #tpu.dot_dimension_numbers<[1], [0], [0], [1], [0, 0, 1, 1], [], []>} : vector<256x48xbf16>, vector<48x4xbf16>, vector<256x4xf32> -> vector<256x4xf32>
    %107 = arith.addf %103, %106 : vector<256x4xf32>
    %c0_61 = arith.constant 0 : index
    %c0_62 = arith.constant 0 : index
    %c12 = arith.constant 12 : index
    %108 = vector.load %arg7[%c0_61, %c0_62, %c12] : memref<1x256x20xf32, #tpu.memory_space<vmem>>, vector<1x256x4xf32>
    %109 = vector.shape_cast %108 : vector<1x256x4xf32> to vector<256x4xf32>
    %110 = vector.shape_cast %107 : vector<256x4xf32> to vector<1x256x4xf32>
    tpu.vector_store %arg7[%c0_61, %c0_62, %c12], %110 {strides = array<i32>} : memref<1x256x20xf32, #tpu.memory_space<vmem>>, vector<1x256x4xf32>,
    %c0_63 = arith.constant 0 : index
    %c0_64 = arith.constant 0 : index
    %c0_65 = arith.constant 0 : index
    %111 = vector.load %arg7[%c0_63, %c0_64, %c0_65] : memref<1x256x20xf32, #tpu.memory_space<vmem>>, vector<1x256x20xf32>
    %112 = vector.shape_cast %111 : vector<1x256x20xf32> to vector<256x20xf32>
    %c2 = arith.constant 2 : index
    %c0_66 = arith.constant 0 : index
    %c0_67 = arith.constant 0 : index
    %113 = vector.load %arg2[%c2, %c0_66, %c0_67] : memref<3x1x20xf32, #tpu.memory_space<vmem>>, vector<1x1x20xf32>
    %114 = vector.shape_cast %113 : vector<1x1x20xf32> to vector<1x20xf32>
    %115 = vector.broadcast %114 : vector<1x20xf32> to vector<256x20xf32>
    %116 = arith.mulf %112, %115 : vector<256x20xf32>
    %c2_68 = arith.constant 2 : index
    %c0_69 = arith.constant 0 : index
    %c0_70 = arith.constant 0 : index
    %117 = vector.load %arg3[%c2_68, %c0_69, %c0_70] : memref<3x1x20xf32, #tpu.memory_space<vmem>>, vector<1x1x20xf32>
    %118 = vector.shape_cast %117 : vector<1x1x20xf32> to vector<1x20xf32>
    %119 = vector.broadcast %118 : vector<1x20xf32> to vector<256x20xf32>
    %120 = arith.addf %116, %119 : vector<256x20xf32>
    %cst_71 = arith.constant 0.000000e+00 : f32
    %121 = vector.broadcast %cst_71 : f32 to vector<256x20xf32>
    %122 = arith.maximumf %120, %121 : vector<256x20xf32>
    %123 = arith.truncf %122 : vector<256x20xf32> to vector<256x20xbf16>
    %c2_72 = arith.constant 2 : index
    %c0_73 = arith.constant 0 : index
    %c0_74 = arith.constant 0 : index
    %124 = vector.load %arg4[%c2_72, %c0_73, %c0_74] : memref<3x20x16xbf16, #tpu.memory_space<vmem>>, vector<1x20x16xbf16>
    %125 = vector.shape_cast %124 : vector<1x20x16xbf16> to vector<20x16xbf16>
    %cst_75 = arith.constant dense<0.000000e+00> : vector<256x16xf32>
    %126 = tpu.matmul %123, %125, %cst_75 {dimension_numbers = #tpu.dot_dimension_numbers<[1], [0], [0], [1], [0, 0, 1, 1], [], []>} : vector<256x20xbf16>, vector<20x16xbf16>, vector<256x16xf32> -> vector<256x16xf32>
    %c2_76 = arith.constant 2 : index
    %c0_77 = arith.constant 0 : index
    %c0_78 = arith.constant 0 : index
    %127 = vector.load %arg5[%c2_76, %c0_77, %c0_78] : memref<3x1x16xf32, #tpu.memory_space<vmem>>, vector<1x1x16xf32>
    %128 = vector.shape_cast %127 : vector<1x1x16xf32> to vector<1x16xf32>
    %129 = vector.broadcast %128 : vector<1x16xf32> to vector<256x16xf32>
    %130 = arith.addf %126, %129 : vector<256x16xf32>
    %cst_79 = arith.constant 0.000000e+00 : f32
    %131 = vector.broadcast %cst_79 : f32 to vector<256x16xf32>
    %132 = arith.maximumf %130, %131 : vector<256x16xf32>
    %133 = arith.truncf %132 : vector<256x16xf32> to vector<256x16xbf16>
    %c2_80 = arith.constant 2 : index
    %c0_81 = arith.constant 0 : index
    %c0_82 = arith.constant 0 : index
    %134 = vector.load %arg6[%c2_80, %c0_81, %c0_82] : memref<3x144x4xbf16, #tpu.memory_space<vmem>>, vector<1x144x4xbf16>
    %135 = vector.shape_cast %134 : vector<1x144x4xbf16> to vector<144x4xbf16>
    %136 = vector.shape_cast %133 : vector<256x16xbf16> to vector<16x16x16xbf16>
    %cst_83 = arith.constant 0.000000e+00 : bf16
    %137 = vector.broadcast %cst_83 : bf16 to vector<16x1x16xbf16>
    %138 = vector.extract_strided_slice %136 {offsets = [0, 0, 0], sizes = [16, 15, 16], strides = [1, 1, 1]} : vector<16x16x16xbf16> to vector<16x15x16xbf16>
    %139 = tpu.concatenate %137, %138 in 1 : vector<16x1x16xbf16>, vector<16x15x16xbf16> -> vector<16x16x16xbf16>
    %140 = vector.extract_strided_slice %136 {offsets = [0, 1, 0], sizes = [16, 15, 16], strides = [1, 1, 1]} : vector<16x16x16xbf16> to vector<16x15x16xbf16>
    %141 = tpu.concatenate %140, %137 in 1 : vector<16x15x16xbf16>, vector<16x1x16xbf16> -> vector<16x16x16xbf16>
    %142 = tpu.concatenate %139, %136, %141 in 2 : vector<16x16x16xbf16>, vector<16x16x16xbf16>, vector<16x16x16xbf16> -> vector<16x16x48xbf16>
    %cst_84 = arith.constant 0.000000e+00 : bf16
    %143 = vector.broadcast %cst_84 : bf16 to vector<1x16x48xbf16>
    %144 = vector.extract_strided_slice %142 {offsets = [0, 0, 0], sizes = [15, 16, 48], strides = [1, 1, 1]} : vector<16x16x48xbf16> to vector<15x16x48xbf16>
    %145 = tpu.concatenate %143, %144 in 0 : vector<1x16x48xbf16>, vector<15x16x48xbf16> -> vector<16x16x48xbf16>
    %146 = vector.extract_strided_slice %142 {offsets = [1, 0, 0], sizes = [15, 16, 48], strides = [1, 1, 1]} : vector<16x16x48xbf16> to vector<15x16x48xbf16>
    %147 = tpu.concatenate %146, %143 in 0 : vector<15x16x48xbf16>, vector<1x16x48xbf16> -> vector<16x16x48xbf16>
    %148 = vector.shape_cast %145 : vector<16x16x48xbf16> to vector<256x48xbf16>
    %149 = vector.extract_strided_slice %135 {offsets = [0, 0], sizes = [48, 4], strides = [1, 1]} : vector<144x4xbf16> to vector<48x4xbf16>
    %cst_85 = arith.constant dense<0.000000e+00> : vector<256x4xf32>
    %150 = tpu.matmul %148, %149, %cst_85 {dimension_numbers = #tpu.dot_dimension_numbers<[1], [0], [0], [1], [0, 0, 1, 1], [], []>} : vector<256x48xbf16>, vector<48x4xbf16>, vector<256x4xf32> -> vector<256x4xf32>
    %151 = vector.shape_cast %142 : vector<16x16x48xbf16> to vector<256x48xbf16>
    %152 = vector.extract_strided_slice %135 {offsets = [48, 0], sizes = [48, 4], strides = [1, 1]} : vector<144x4xbf16> to vector<48x4xbf16>
    %cst_86 = arith.constant dense<0.000000e+00> : vector<256x4xf32>
    %153 = tpu.matmul %151, %152, %cst_86 {dimension_numbers = #tpu.dot_dimension_numbers<[1], [0], [0], [1], [0, 0, 1, 1], [], []>} : vector<256x48xbf16>, vector<48x4xbf16>, vector<256x4xf32> -> vector<256x4xf32>
    %154 = arith.addf %150, %153 : vector<256x4xf32>
    %155 = vector.shape_cast %147 : vector<16x16x48xbf16> to vector<256x48xbf16>
    %156 = vector.extract_strided_slice %135 {offsets = [96, 0], sizes = [48, 4], strides = [1, 1]} : vector<144x4xbf16> to vector<48x4xbf16>
    %cst_87 = arith.constant dense<0.000000e+00> : vector<256x4xf32>
    %157 = tpu.matmul %155, %156, %cst_87 {dimension_numbers = #tpu.dot_dimension_numbers<[1], [0], [0], [1], [0, 0, 1, 1], [], []>} : vector<256x48xbf16>, vector<48x4xbf16>, vector<256x4xf32> -> vector<256x4xf32>
    %158 = arith.addf %154, %157 : vector<256x4xf32>
    %c0_88 = arith.constant 0 : index
    %c0_89 = arith.constant 0 : index
    %c16 = arith.constant 16 : index
    %159 = vector.load %arg7[%c0_88, %c0_89, %c16] : memref<1x256x20xf32, #tpu.memory_space<vmem>>, vector<1x256x4xf32>
    %160 = vector.shape_cast %159 : vector<1x256x4xf32> to vector<256x4xf32>
    %161 = vector.shape_cast %158 : vector<256x4xf32> to vector<1x256x4xf32>
    tpu.vector_store %arg7[%c0_88, %c0_89, %c16], %161 {strides = array<i32>} : memref<1x256x20xf32, #tpu.memory_space<vmem>>, vector<1x256x4xf32>,
    return
  }
  func.func @transform_0(%arg0: i32) -> (i32, i32, i32) {
    %c0_i32 = arith.constant 0 : i32
    %c0_i32_0 = arith.constant 0 : i32
    %c0_i32_1 = arith.constant 0 : i32
    return %arg0, %c0_i32, %c0_i32_0 : i32, i32, i32
  }
  func.func @transform_1(%arg0: i32) -> (i32, i32, i32) {
    %c0_i32 = arith.constant 0 : i32
    %c0_i32_0 = arith.constant 0 : i32
    %c0_i32_1 = arith.constant 0 : i32
    %c0_i32_2 = arith.constant 0 : i32
    return %c0_i32, %c0_i32_0, %c0_i32_1 : i32, i32, i32
  }
  func.func @transform_2(%arg0: i32) -> (i32, i32, i32) {
    %c0_i32 = arith.constant 0 : i32
    %c0_i32_0 = arith.constant 0 : i32
    %c0_i32_1 = arith.constant 0 : i32
    %c0_i32_2 = arith.constant 0 : i32
    return %c0_i32, %c0_i32_0, %c0_i32_1 : i32, i32, i32
  }
  func.func @transform_3(%arg0: i32) -> (i32, i32, i32) {
    %c0_i32 = arith.constant 0 : i32
    %c0_i32_0 = arith.constant 0 : i32
    %c0_i32_1 = arith.constant 0 : i32
    %c0_i32_2 = arith.constant 0 : i32
    return %c0_i32, %c0_i32_0, %c0_i32_1 : i32, i32, i32
  }
  func.func @transform_4(%arg0: i32) -> (i32, i32, i32) {
    %c0_i32 = arith.constant 0 : i32
    %c0_i32_0 = arith.constant 0 : i32
    %c0_i32_1 = arith.constant 0 : i32
    %c0_i32_2 = arith.constant 0 : i32
    return %c0_i32, %c0_i32_0, %c0_i32_1 : i32, i32, i32
  }
  func.func @transform_5(%arg0: i32) -> (i32, i32, i32) {
    %c0_i32 = arith.constant 0 : i32
    %c0_i32_0 = arith.constant 0 : i32
    %c0_i32_1 = arith.constant 0 : i32
    %c0_i32_2 = arith.constant 0 : i32
    return %c0_i32, %c0_i32_0, %c0_i32_1 : i32, i32, i32
  }
  func.func @transform_6(%arg0: i32) -> (i32, i32, i32) {
    %c0_i32 = arith.constant 0 : i32
    %c0_i32_0 = arith.constant 0 : i32
    %c0_i32_1 = arith.constant 0 : i32
    return %arg0, %c0_i32, %c0_i32_0 : i32, i32, i32
  }
}

</mosaic_0001>

<bundles_post_ra>
// kernel: tpu_custom_call.1
= control target key start
LH: loop header
LB: loop body
LE: loop exit
PB: predicated region body
PF: predicated region fallthrough
CT: control target
= control target key end

     0   :  { %s5058_s21 = smov 0   ;;  %s6967_s0 = inlined_call_operand.vmem [shape: f32[2,256,8], index: 0, kind: input, shape index: {}]   ;;  %s6968_s1 = inlined_call_operand.vmem [shape: f32[3,1,20], index: 1, kind: input, shape index: {}]   ;;  %s6969_s2 = inlined_call_operand.vmem [shape: f32[3,1,20], index: 2, kind: input, shape index: {}]   ;;  %s6970_s3 = inlined_call_operand.vmem [shape: bf16[3,20,16], index: 3, kind: input, shape index: {}]   ;;  %s6971_s4 = inlined_call_operand.vmem [shape: f32[3,1,16], index: 4, kind: input, shape index: {}]   ;;  %s6972_s5 = inlined_call_operand.vmem [shape: bf16[3,144,4], index: 5, kind: input, shape index: {}]   ;;  %s6973_s6 = inlined_call_operand.vmem [shape: f32[2,256,20], index: 6, kind: output, shape index: {}]  }
   0x1 LB: > { %s4582_s22 = sadd.s32 4294967295, %s5015_s21   ;;  %p4586_p0 = scmp.ge.s32.totalorder %s5015_s21, 1  ;;  %s5015_s21 = sphi %s5058_s21, %s16_s21  }
   0x2   : > { %p212_p1 = scmp.lt.s32.totalorder %s5015_s21, 3 }
   0x4   : > { %p213_p2 = pnand %p4586_p0, %p212_p1 }
   0x5   : > { %p242_p3 = scmp.lt.s32.totalorder (!%p213_p2), %s4582_s22, 1  ;;  %s5018_s16 = smov (!%p213_p2), 16  }
   0x6   : > { %216 = sbr.rel (%p213_p2) target bundleno = 2003 (0x7d3), region = 44  ;;  %s5019_s17 = smov (!%p213_p2), 32  }
   0x7   : > { %s5021_s23 = smov (!%p213_p2), 8   ;;  %s5022_s14 = smov (!%p213_p2), 12  }
   0xb   : > { %v505_v0 = vld [vmem:[%s6970_s3 + $0x8] sm:$0x3]  ;;  %vm568_vm0 = vcmask 1041408   ;;  %s6979_s22 = smov (!%p242_p3, %s4582_s22), 1  ;;  %vm285_vm1 = vcmask 64512   ;;  %v4949_v4 = vld [vmem:[%s6970_s3] sm:$0xff] }
   0xc   : > { %v515_v1 = vunpack.c.l.b16 %v505_v0  ;;  %s4947_s25 = sshll.u32 %s6979_s22, 8  ;;  %vm318_vm2 = vcmask 162880   ;;  %v5017_v8 = vmov 0.0   ;;  %v5105_v11 = vld [vmem:[%s6968_s1] ss:$0 sm:$0xff]  ;;  %vm519_vm3 = vcmask 162816  }
   0xd   : > { %s5073_s28 = scalar_lea.vmem %s6967_s0, %s4947_s25  ;;  %s5078_s7 = scalar_lea.vmem %s6973_s6, %s4947_s25  ;;  %v5117_v13 = vld [vmem:[%s6969_s2] ss:$0 sm:$0xff]  ;;  %vm1018_vm4 = vcmask 1047552   ;;  %vm1019_vm5 = vsmask.f32 7424  ;;  %vm951_vm7 = vcmask 1040384  }
   0xe   : > { %v517_v2 = vpack.c.b16 %v515_v1, %v515_v1  ;;  %v253_v5 = vld [vmem:[%s5073_s28] sm:$0xff]  ;;  %v254_v6 = vld [vmem:[%s5073_s28 + $0x8] sm:$0xff]  ;;  %v255_v7 = vld [vmem:[%s5073_s28 + $0x10] sm:$0xff]  ;;  %vm952_vm8 = vsmask.f32 256  ;;  %vm1117_vm10 = vcmask 130048  }
   0xf   : > { %286 = vst.msk [vmem:[%s5078_s7] sm:$0xff] %vm285_vm1, %v253_v5  ;;  %v256_v9 = vld [vmem:[%s5073_s28 + $0x18] sm:$0xff]  ;;  %v257_v10 = vld [vmem:[%s5073_s28 + $0x20] sm:$0xff]  ;;  %v258_v12 = vld [vmem:[%s5073_s28 + $0x28] sm:$0xff]  ;;  %vm1166_vm11 = vcmask 261120   ;;  %vm1217_vm12 = vcmask 392192  }
  0x10   : > { %v570_v3 = vsel %vm568_vm0, %v517_v2, 0  ;;  %287 = vst.msk [vmem:[%s5078_s7 + $0x8] sm:$0xff] %vm285_vm1, %v254_v6  ;;  %v259_v25 = vld [vmem:[%s5073_s28 + $0x30] sm:$0xff]  ;;  %v260_v26 = vld [vmem:[%s5073_s28 + $0x38] sm:$0xff]  ;;  %v261_v36 = vld [vmem:[%s5073_s28 + $0x40] sm:$0xff]  ;;  %vm1716_vm13 = vcmask 97344  }
  0x11   : > { %578 = vmatpush.bf16.msra.mxu0 %v570_v3  ;;  %319 = vst.msk [vmem:[%s5078_s7] sm:$0xff] %vm318_vm2, %v5017_v8  ;;  %v262_v37 = vld [vmem:[%s5073_s28 + $0x48] sm:$0xff]  ;;  %v263_v47 = vld [vmem:[%s5073_s28 + $0x50] sm:$0xff]  ;;  %v264_v48 = vld [vmem:[%s5073_s28 + $0x58] sm:$0xff]  ;;  %vm3105_vm14 = vcmask 130144   ;;  %vm4494_vm15 = vcmask 162944  }
  0x12   : > { %320 = vst.msk [vmem:[%s5078_s7 + $0x8] sm:$0xff] %vm318_vm2, %v5017_v8  ;;  %v265_v58 = vld [vmem:[%s5073_s28 + $0x60] sm:$0xff]  ;;  %v266_v59 = vld [vmem:[%s5073_s28 + $0x68] sm:$0xff]  ;;  %v267_v5 = vld [vmem:[%s5073_s28 + $0x70] sm:$0xff] }
  0x13   : > { %288 = vst.msk [vmem:[%s5078_s7 + $0x10] sm:$0xff] %vm285_vm1, %v255_v7  ;;  %v268_v6 = vld [vmem:[%s5073_s28 + $0x78] sm:$0xff]  ;;  %vm5334_vm6 = vmand %vm1018_vm4, %vm1019_vm5 }
  0x14   : > { %289 = vst.msk [vmem:[%s5078_s7 + $0x18] sm:$0xff] %vm285_vm1, %v256_v9  ;;  %vm5512_vm9 = vmand %vm951_vm7, %vm952_vm8 }
  0x15   : > { %579 = vmatpush.bf16.msra.mxu0 %v4949_v4  ;;  %321 = vst.msk [vmem:[%s5078_s7 + $0x10] sm:$0xff] %vm318_vm2, %v5017_v8 }
  0x16   : > { %322 = vst.msk [vmem:[%s5078_s7 + $0x18] sm:$0xff] %vm318_vm2, %v5017_v8 }
  0x17   : > { %290 = vst.msk [vmem:[%s5078_s7 + $0x20] sm:$0xff] %vm285_vm1, %v257_v10 }
  0x18   : > { %v351_v14 = vld [vmem:[%s5078_s7] sm:$0xff]  ;;  %291 = vst.msk [vmem:[%s5078_s7 + $0x28] sm:$0xff] %vm285_vm1, %v258_v12 }
  0x19   : > { %v352_v15 = vld [vmem:[%s5078_s7 + $0x8] sm:$0xff]  ;;  %v387_v16 = vmul.f32 %v5105_v11, %v351_v14  ;;  %323 = vst.msk [vmem:[%s5078_s7 + $0x20] sm:$0xff] %vm318_vm2, %v5017_v8 }
  0x1a   : > { %v388_v17 = vmul.f32 %v5105_v11, %v352_v15  ;;  %324 = vst.msk [vmem:[%s5078_s7 + $0x28] sm:$0xff] %vm318_vm2, %v5017_v8 }
  0x1b   : > { %v423_v18 = vadd.f32 %v5117_v13, %v387_v16  ;;  %292 = vst.msk [vmem:[%s5078_s7 + $0x30] sm:$0xff] %vm285_vm1, %v259_v25 }
  0x1c   : > { %v424_v19 = vadd.f32 %v5117_v13, %v388_v17  ;;  %v353_v22 = vld [vmem:[%s5078_s7 + $0x10] sm:$0xff]  ;;  %293 = vst.msk [vmem:[%s5078_s7 + $0x38] sm:$0xff] %vm285_vm1, %v260_v26 }
  0x1d   : > { %v455_v20 = vmax.f32 %v423_v18, 0.0  ;;  %v354_v23 = vld [vmem:[%s5078_s7 + $0x18] sm:$0xff]  ;;  %v389_v27 = vmul.f32 %v5105_v11, %v353_v22  ;;  %325 = vst.msk [vmem:[%s5078_s7 + $0x30] sm:$0xff] %vm318_vm2, %v5017_v8 }
  0x1e   : > { %v456_v21 = vmax.f32 %v424_v19, 0.0  ;;  %v390_v28 = vmul.f32 %v5105_v11, %v354_v23  ;;  %326 = vst.msk [vmem:[%s5078_s7 + $0x38] sm:$0xff] %vm318_vm2, %v5017_v8  ;;  %v269_v19 = vld [vmem:[%s5073_s28 + $0x80] sm:$0xff] }
  0x1f   : > { %v425_v29 = vadd.f32 %v5117_v13, %v389_v27  ;;  %294 = vst.msk [vmem:[%s5078_s7 + $0x40] sm:$0xff] %vm285_vm1, %v261_v36 }
  0x20   : > { %v487_v24 = vpack.c.bf16 %v456_v21, %v455_v20  ;;  %v426_v30 = vadd.f32 %v5117_v13, %v390_v28  ;;  %v355_v34 = vld [vmem:[%s5078_s7 + $0x20] sm:$0xff]  ;;  %295 = vst.msk [vmem:[%s5078_s7 + $0x48] sm:$0xff] %vm285_vm1, %v262_v37  ;;  %v270_v20 = vld [vmem:[%s5073_s28 + $0x88] sm:$0xff] }
  0x21   : > { %v457_v31 = vmax.f32 %v425_v29, 0.0  ;;  %v356_v35 = vld [vmem:[%s5078_s7 + $0x28] sm:$0xff]  ;;  %v391_v38 = vmul.f32 %v5105_v11, %v355_v34  ;;  %327 = vst.msk [vmem:[%s5078_s7 + $0x40] sm:$0xff] %vm318_vm2, %v5017_v8 }
  0x22   : > { %4595 = vmatmul.msk.bf16.vlgmr.msra.gmra.mxu0 %vm519_vm3, %v487_v24  ;;  %v458_v32 = vmax.f32 %v426_v30, 0.0  ;;  %v392_v39 = vmul.f32 %v5105_v11, %v356_v35  ;;  %328 = vst.msk [vmem:[%s5078_s7 + $0x48] sm:$0xff] %vm318_vm2, %v5017_v8  ;;  %v271_v30 = vld [vmem:[%s5073_s28 + $0x90] sm:$0xff] }
  0x23   : > { %v427_v40 = vadd.f32 %v5117_v13, %v391_v38  ;;  %296 = vst.msk [vmem:[%s5078_s7 + $0x50] sm:$0xff] %vm285_vm1, %v263_v47 }
  0x24   : > { %v488_v33 = vpack.c.bf16 %v458_v32, %v457_v31  ;;  %v428_v41 = vadd.f32 %v5117_v13, %v392_v39  ;;  %v357_v45 = vld [vmem:[%s5078_s7 + $0x30] sm:$0xff]  ;;  %297 = vst.msk [vmem:[%s5078_s7 + $0x58] sm:$0xff] %vm285_vm1, %v264_v48  ;;  %v272_v31 = vld [vmem:[%s5073_s28 + $0x98] sm:$0xff] }
  0x25   : > { %v459_v42 = vmax.f32 %v427_v40, 0.0  ;;  %v358_v46 = vld [vmem:[%s5078_s7 + $0x38] sm:$0xff]  ;;  %v393_v49 = vmul.f32 %v5105_v11, %v357_v45  ;;  %329 = vst.msk [vmem:[%s5078_s7 + $0x50] sm:$0xff] %vm318_vm2, %v5017_v8 }
  0x26   : > { %v460_v43 = vmax.f32 %v428_v41, 0.0  ;;  %v394_v50 = vmul.f32 %v5105_v11, %v358_v46  ;;  %330 = vst.msk [vmem:[%s5078_s7 + $0x58] sm:$0xff] %vm318_vm2, %v5017_v8  ;;  %v273_v41 = vld [vmem:[%s5073_s28 + $0xa0] sm:$0xff] }
  0x27   : > { %v429_v51 = vadd.f32 %v5117_v13, %v393_v49  ;;  %298 = vst.msk [vmem:[%s5078_s7 + $0x60] sm:$0xff] %vm285_vm1, %v265_v58  ;;  %v5290_v49 = vld [vmem:[%s6971_s4] ss:$0 sm:$0xff] }
  0x28   : > { %v489_v44 = vpack.c.bf16 %v460_v43, %v459_v42  ;;  %v430_v52 = vadd.f32 %v5117_v13, %v394_v50  ;;  %v359_v56 = vld [vmem:[%s5078_s7 + $0x40] sm:$0xff]  ;;  %299 = vst.msk [vmem:[%s5078_s7 + $0x68] sm:$0xff] %vm285_vm1, %v266_v59  ;;  %v274_v42 = vld [vmem:[%s5073_s28 + $0xa8] sm:$0xff] }
  0x29   : > { %v461_v53 = vmax.f32 %v429_v51, 0.0  ;;  %v360_v57 = vld [vmem:[%s5078_s7 + $0x48] sm:$0xff]  ;;  %v395_v60 = vmul.f32 %v5105_v11, %v359_v56  ;;  %331 = vst.msk [vmem:[%s5078_s7 + $0x60] sm:$0xff] %vm318_vm2, %v5017_v8 }
  0x2a   : > { %v462_v54 = vmax.f32 %v430_v52, 0.0  ;;  %v396_v61 = vmul.f32 %v5105_v11, %v360_v57  ;;  %332 = vst.msk [vmem:[%s5078_s7 + $0x68] sm:$0xff] %vm318_vm2, %v5017_v8 }
  0x2b   : > { %v431_v62 = vadd.f32 %v5117_v13, %v395_v60  ;;  %300 = vst.msk [vmem:[%s5078_s7 + $0x70] sm:$0xff] %vm285_vm1, %v267_v5 }
  0x2c   : > { %v490_v55 = vpack.c.bf16 %v462_v54, %v461_v53  ;;  %v432_v63 = vadd.f32 %v5117_v13, %v396_v61  ;;  %v361_v3 = vld [vmem:[%s5078_s7 + $0x50] sm:$0xff]  ;;  %301 = vst.msk [vmem:[%s5078_s7 + $0x78] sm:$0xff] %vm285_vm1, %v268_v6 }
  0x2d   : > { %v463_v0 = vmax.f32 %v431_v62, 0.0  ;;  %v362_v4 = vld [vmem:[%s5078_s7 + $0x58] sm:$0xff]  ;;  %v397_v7 = vmul.f32 %v5105_v11, %v361_v3  ;;  %333 = vst.msk [vmem:[%s5078_s7 + $0x70] sm:$0xff] %vm318_vm2, %v5017_v8  ;;  %v275_v54 = vld [vmem:[%s5073_s28 + $0xb0] sm:$0xff] }
  0x2e   : > { %v464_v1 = vmax.f32 %v432_v63, 0.0  ;;  %v398_v9 = vmul.f32 %v5105_v11, %v362_v4  ;;  %334 = vst.msk [vmem:[%s5078_s7 + $0x78] sm:$0xff] %vm318_vm2, %v5017_v8 }
  0x2f   : > { %v433_v10 = vadd.f32 %v5117_v13, %v397_v7  ;;  %302 = vst.msk [vmem:[%s5078_s7 + $0x80] sm:$0xff] %vm285_vm1, %v269_v19 }
  0x30   : > { %v491_v2 = vpack.c.bf16 %v464_v1, %v463_v0  ;;  %v434_v12 = vadd.f32 %v5117_v13, %v398_v9  ;;  %v363_v17 = vld [vmem:[%s5078_s7 + $0x60] sm:$0xff]  ;;  %303 = vst.msk [vmem:[%s5078_s7 + $0x88] sm:$0xff] %vm285_vm1, %v270_v20 }
  0x31   : > { %v465_v14 = vmax.f32 %v433_v10, 0.0  ;;  %v364_v18 = vld [vmem:[%s5078_s7 + $0x68] sm:$0xff]  ;;  %v399_v21 = vmul.f32 %v5105_v11, %v363_v17  ;;  %335 = vst.msk [vmem:[%s5078_s7 + $0x80] sm:$0xff] %vm318_vm2, %v5017_v8 }
  0x32   : > { %4596 = vmatmul.msk.bf16.gmra.mxu0 %vm519_vm3, %v488_v33  ;;  %v466_v15 = vmax.f32 %v434_v12, 0.0  ;;  %v400_v22 = vmul.f32 %v5105_v11, %v364_v18  ;;  %336 = vst.msk [vmem:[%s5078_s7 + $0x88] sm:$0xff] %vm318_vm2, %v5017_v8 }
  0x33   : > { %v435_v23 = vadd.f32 %v5117_v13, %v399_v21  ;;  %304 = vst.msk [vmem:[%s5078_s7 + $0x90] sm:$0xff] %vm285_vm1, %v271_v30 }
  0x34   : > { %v492_v16 = vpack.c.bf16 %v466_v15, %v465_v14  ;;  %v436_v24 = vadd.f32 %v5117_v13, %v400_v22  ;;  %v365_v28 = vld [vmem:[%s5078_s7 + $0x70] sm:$0xff]  ;;  %305 = vst.msk [vmem:[%s5078_s7 + $0x98] sm:$0xff] %vm285_vm1, %v272_v31  ;;  %v277_v15 = vld [vmem:[%s5073_s28 + $0xc0] sm:$0xff] }
  0x35   : > { %v467_v25 = vmax.f32 %v435_v23, 0.0  ;;  %v366_v29 = vld [vmem:[%s5078_s7 + $0x78] sm:$0xff]  ;;  %v401_v32 = vmul.f32 %v5105_v11, %v365_v28  ;;  %337 = vst.msk [vmem:[%s5078_s7 + $0x90] sm:$0xff] %vm318_vm2, %v5017_v8 }
  0x36   : > { %v468_v26 = vmax.f32 %v436_v24, 0.0  ;;  %v402_v33 = vmul.f32 %v5105_v11, %v366_v29  ;;  %338 = vst.msk [vmem:[%s5078_s7 + $0x98] sm:$0xff] %vm318_vm2, %v5017_v8 }
  0x37   : > { %v437_v34 = vadd.f32 %v5117_v13, %v401_v32  ;;  %306 = vst.msk [vmem:[%s5078_s7 + $0xa0] sm:$0xff] %vm285_vm1, %v273_v41 }
  0x38   : > { %v493_v27 = vpack.c.bf16 %v468_v26, %v467_v25  ;;  %v438_v35 = vadd.f32 %v5117_v13, %v402_v33  ;;  %v367_v39 = vld [vmem:[%s5078_s7 + $0x80] sm:$0xff]  ;;  %307 = vst.msk [vmem:[%s5078_s7 + $0xa8] sm:$0xff] %vm285_vm1, %v274_v42 }
  0x39   : > { %v469_v36 = vmax.f32 %v437_v34, 0.0  ;;  %v368_v40 = vld [vmem:[%s5078_s7 + $0x88] sm:$0xff]  ;;  %v403_v43 = vmul.f32 %v5105_v11, %v367_v39  ;;  %339 = vst.msk [vmem:[%s5078_s7 + $0xa0] sm:$0xff] %vm318_vm2, %v5017_v8 }
  0x3a   : > { %v470_v37 = vmax.f32 %v438_v35, 0.0  ;;  %340 = vst.msk [vmem:[%s5078_s7 + $0xa8] sm:$0xff] %vm318_vm2, %v5017_v8 }
  0x3b   : > { %v439_v45 = vadd.f32 %v5117_v13, %v403_v43  ;;  %308 = vst.msk [vmem:[%s5078_s7 + $0xb0] sm:$0xff] %vm285_vm1, %v275_v54 }
  0x3c   : > { %v494_v38 = vpack.c.bf16 %v470_v37, %v469_v36  ;;  %v369_v52 = vld [vmem:[%s5078_s7 + $0x90] sm:$0xff]  ;;  %341 = vst.msk [vmem:[%s5078_s7 + $0xb0] sm:$0xff] %vm318_vm2, %v5017_v8 }
  0x3d   : > { %v471_v47 = vmax.f32 %v439_v45, 0.0  ;;  %v370_v53 = vld [vmem:[%s5078_s7 + $0x98] sm:$0xff]  ;;  %v405_v57 = vmul.f32 %v5105_v11, %v369_v52  ;;  %310 = vst.msk [vmem:[%s5078_s7 + $0xc0] sm:$0xff] %vm285_vm1, %v277_v15 }
  0x3e   : > { %v406_v58 = vmul.f32 %v5105_v11, %v370_v53  ;;  %343 = vst.msk [vmem:[%s5078_s7 + $0xc0] sm:$0xff] %vm318_vm2, %v5017_v8 }
  0x3f   : > { %v441_v60 = vadd.f32 %v5117_v13, %v405_v57 }
  0x40   : > { %v442_v61 = vadd.f32 %v5117_v13, %v406_v58  ;;  %v371_v9 = vld [vmem:[%s5078_s7 + $0xa0] sm:$0xff] }
  0x41   : > { %v372_v12 = vld [vmem:[%s5078_s7 + $0xa8] sm:$0xff]  ;;  %v407_v17 = vmul.f32 %v5105_v11, %v371_v9 }
  0x42   : > { %4597 = vmatmul.msk.bf16.gmra.mxu0 %vm519_vm3, %v489_v44  ;;  %v404_v44 = vmul.f32 %v5105_v11, %v368_v40  ;;  %v474_v3 = vmax.f32 %v442_v61, 0.0  ;;  %v408_v21 = vmul.f32 %v5105_v11, %v372_v12 }
  0x43   : > { %v443_v25 = vadd.f32 %v5117_v13, %v407_v17  ;;  %v373_v42 = vld [vmem:[%s5078_s7 + $0xb0] sm:$0xff] }
  0x44   : > { %v440_v46 = vadd.f32 %v5117_v13, %v404_v44  ;;  %v444_v28 = vadd.f32 %v5117_v13, %v408_v21 }
  0x45   : > { %v475_v35 = vmax.f32 %v443_v25, 0.0  ;;  %v375_v9 = vld [vmem:[%s5078_s7 + $0xc0] sm:$0xff] }
  0x46   : > { %v472_v48 = vmax.f32 %v440_v46, 0.0  ;;  %v476_v36 = vmax.f32 %v444_v28, 0.0  ;;  %v279_v46 = vld [vmem:[%s5073_s28 + $0xd0] sm:$0xff]  ;;  %v411_v17 = vmul.f32 %v5105_v11, %v375_v9 }
  0x47   : > { %312 = vst.msk [vmem:[%s5078_s7 + $0xd0] sm:$0xff] %vm285_vm1, %v279_v46 }
  0x48   : > { %v495_v50 = vpack.c.bf16 %v472_v48, %v471_v47  ;;  %v497_v40 = vpack.c.bf16 %v476_v36, %v475_v35  ;;  %v280_v47 = vld [vmem:[%s5073_s28 + $0xd8] sm:$0xff]  ;;  %345 = vst.msk [vmem:[%s5078_s7 + $0xd0] sm:$0xff] %vm318_vm2, %v5017_v8 }
  0x49   : > { %313 = vst.msk [vmem:[%s5078_s7 + $0xd8] sm:$0xff] %vm285_vm1, %v280_v47 }
  0x4a   : > { %346 = vst.msk [vmem:[%s5078_s7 + $0xd8] sm:$0xff] %vm318_vm2, %v5017_v8 }
  0x52   : > { %4598 = vmatmul.msk.bf16.gmra.mxu0 %vm519_vm3, %v490_v55  ;;  %v276_v55 = vld [vmem:[%s5073_s28 + $0xb8] sm:$0xff] }
  0x53   : > { %309 = vst.msk [vmem:[%s5078_s7 + $0xb8] sm:$0xff] %vm285_vm1, %v276_v55 }
  0x54   : > { %342 = vst.msk [vmem:[%s5078_s7 + $0xb8] sm:$0xff] %vm318_vm2, %v5017_v8 }
  0x5b   : > { %v374_v43 = vld [vmem:[%s5078_s7 + $0xb8] sm:$0xff] }
  0x5c   : > { %v410_v52 = vmul.f32 %v5105_v11, %v374_v43 }
  0x5e   : > { %v446_v58 = vadd.f32 %v5117_v13, %v410_v52 }
  0x62   : > { %4599 = vmatmul.msk.bf16.gmra.mxu0 %vm519_vm3, %v491_v2  ;;  %v473_v2 = vmax.f32 %v441_v60, 0.0 }
  0x64   : > { %v496_v7 = vpack.c.bf16 %v474_v3, %v473_v2  ;;  %v478_v2 = vmax.f32 %v446_v58, 0.0 }
  0x72   : > { %4600 = vmatmul.msk.bf16.gmra.mxu0 %vm519_vm3, %v492_v16  ;;  %v278_v16 = vld [vmem:[%s5073_s28 + $0xc8] sm:$0xff] }
  0x73   : > { %311 = vst.msk [vmem:[%s5078_s7 + $0xc8] sm:$0xff] %vm285_vm1, %v278_v16 }
  0x74   : > { %344 = vst.msk [vmem:[%s5078_s7 + $0xc8] sm:$0xff] %vm318_vm2, %v5017_v8 }
  0x82   : > { %4601 = vmatmul.msk.bf16.gmra.mxu0 %vm519_vm3, %v493_v27 }
  0x92   : > { %4602 = vmatmul.msk.bf16.gmra.mxu0 %vm519_vm3, %v494_v38 }
  0x9f   : > { %v581_v51 = vpop.f32.mrf.mxu0 }
  0xa0   : > { %v582_v56 = vadd.f32 %v5290_v49, %v581_v51  ;;  %v409_v51 = vmul.f32 %v5105_v11, %v373_v42 }
  0xa2   : > { %4603 = vmatmul.msk.bf16.gmra.mxu0 %vm519_vm3, %v495_v50  ;;  %v661_v59 = vmax.f32 %v582_v56, 0.0  ;;  %v445_v57 = vadd.f32 %v5117_v13, %v409_v51 }
  0xa4   : > { %v693_v0 = vpack.c.bf16 %v661_v59, %v661_v59 }
  0xa6   : > { %v775_v5 = vunpack.c.l.b16 %v693_v0 }
  0xa7   : > { %v583_v62 = vpop.f32.mrf.mxu0 }
  0xa8   : > { %v584_v63 = vadd.f32 %v5290_v49, %v583_v62 }
  0xaa   : > { %v662_v1 = vmax.f32 %v584_v63, 0.0 }
  0xac   : > { %v694_v4 = vpack.c.bf16 %v662_v1, %v662_v1  ;;  %v477_v1 = vmax.f32 %v445_v57, 0.0 }
  0xae   : > { %v776_v6 = vunpack.c.l.b16 %v694_v4 }
  0xaf   : > { %v586_v10 = vpop.f32.mrf.mxu0 }
  0xb0   : > { %v807_v14 = vpack.c.b16 %v776_v6, %v775_v5  ;;  %v587_v18 = vadd.f32 %v5290_v49, %v586_v10  ;;  %v498_v6 = vpack.c.bf16 %v478_v2, %v477_v1  ;;  %v376_v10 = vld [vmem:[%s5078_s7 + $0xc8] sm:$0xff] }
  0xb2   : > { %4604 = vmatmul.msk.bf16.gmra.mxu0 %vm519_vm3, %v496_v7  ;;  %1037 = vrot.lane.b32.xlu1 %v807_v14, %s5018_s16  ;;  %v824_v19 = vshrl.u32 %v807_v14, 16  ;;  %v827_v20 = vshll.u32 %v807_v14, 16  ;;  %v663_v26 = vmax.f32 %v587_v18, 0.0  ;;  %v412_v18 = vmul.f32 %v5105_v11, %v376_v10 }
  0xb4   : > { %v970_v22 = vrot.slane %v827_v20, 1  ;;  %v826_v23 = vrot.slane %v824_v19, 7  ;;  %v695_v33 = vpack.c.bf16 %v663_v26, %v663_v26  ;;  %v448_v25 = vadd.f32 %v5117_v13, %v412_v18 }
  0xb6   : > { %v971_v27 = vor.u32 %v970_v22, %v824_v19  ;;  %v5340_v29 = vor.u32 %v827_v20, %v826_v23  ;;  %v777_v38 = vunpack.c.l.b16 %v695_v33  ;;  %v447_v23 = vadd.f32 %v5117_v13, %v411_v17 }
  0xb7   : > { %v588_v30 = vpop.f32.mrf.mxu0 }
  0xb8   : > { %v589_v31 = vadd.f32 %v5290_v49, %v588_v30  ;;  %v1021_v32 = vsel %vm5334_vm6, %v971_v27, 0  ;;  %v479_v33 = vmax.f32 %v447_v23, 0.0  ;;  %v4950_v23 = vld [vmem:[%s6972_s5] sm:$0xff] }
  0xba   : > { %v664_v34 = vmax.f32 %v589_v31, 0.0  ;;  %1085 = vrot.lane.b32.xlu1 %v1021_v32, %s5019_s17 }
  0xbc   : > { %v696_v37 = vpack.c.bf16 %v664_v34, %v664_v34  ;;  %v480_v34 = vmax.f32 %v448_v25, 0.0 }
  0xbe   : > { %v778_v39 = vunpack.c.l.b16 %v696_v37 }
  0xbf   : > { %v591_v41 = vpop.f32.mrf.mxu0 }
  0xc0   : > { %v592_v44 = vadd.f32 %v5290_v49, %v591_v41  ;;  %v808_v45 = vpack.c.b16 %v778_v39, %v777_v38  ;;  %v499_v38 = vpack.c.bf16 %v480_v34, %v479_v33  ;;  %v378_v41 = vld [vmem:[%s5078_s7 + $0xd8] sm:$0xff] }
  0xc1   : > { %v414_v47 = vmul.f32 %v5105_v11, %v378_v41 }
  0xc2   : > { %4605 = vmatmul.msk.bf16.gmra.mxu0 %vm519_vm3, %v497_v40  ;;  %1039 = vrot.lane.b32.xlu0 %v808_v45, %s5018_s16  ;;  %v831_v48 = vshrl.u32 %v808_v45, 16  ;;  %v834_v50 = vshll.u32 %v808_v45, 16  ;;  %v665_v53 = vmax.f32 %v592_v44, 0.0  ;;  %v377_v40 = vld [vmem:[%s5078_s7 + $0xd0] sm:$0xff] }
  0xc3   : > { %v413_v46 = vmul.f32 %v5105_v11, %v377_v40  ;;  %v4954_v40 = vld [vmem:[%s6972_s5 + $0x20] sm:$0xff] }
  0xc4   : > { %v972_v54 = vrot.slane %v834_v50, 1  ;;  %v833_v55 = vrot.slane %v831_v48, 7  ;;  %v697_v61 = vpack.c.bf16 %v665_v53, %v665_v53 }
  0xc5   : > { %v449_v53 = vadd.f32 %v5117_v13, %v413_v46  ;;  %v4953_v46 = vld [vmem:[%s6972_s5 + $0x18] sm:$0xff] }
  0xc6   : > { %v973_v56 = vor.u32 %v972_v54, %v831_v48  ;;  %v5367_v59 = vor.u32 %v834_v50, %v833_v55  ;;  %v779_v3 = vunpack.c.l.b16 %v697_v61  ;;  %v450_v54 = vadd.f32 %v5117_v13, %v414_v47 }
  0xc7   : > { %v593_v60 = vpop.f32.mrf.mxu0 }
  0xc8   : > { %v594_v62 = vadd.f32 %v5290_v49, %v593_v60  ;;  %v1022_v63 = vsel %vm5334_vm6, %v973_v56, 0 }
  0xca   : > { %v666_v0 = vmax.f32 %v594_v62, 0.0  ;;  %1087 = vrot.lane.b32.xlu0 %v1022_v63, %s5019_s17  ;;  %v481_v62 = vmax.f32 %v449_v53, 0.0  ;;  %v482_v63 = vmax.f32 %v450_v54, 0.0 }
  0xcc   : > { %v698_v4 = vpack.c.bf16 %v666_v0, %v666_v0 }
  0xce   : > { %v780_v5 = vunpack.c.l.b16 %v698_v4 }
  0xcf   : > { %v596_v7 = vpop.f32.mrf.mxu0 }
  0xd0   : > { %v597_v12 = vadd.f32 %v5290_v49, %v596_v7  ;;  %v809_v14 = vpack.c.b16 %v780_v5, %v779_v3  ;;  %v500_v3 = vpack.c.bf16 %v482_v63, %v481_v62  ;;  %v4952_v7 = vld [vmem:[%s6972_s5 + $0x10] sm:$0xff] }
  0xd1   : > { %1365 = vmatpush.bf16.msra.mxu2 %v4952_v7 }
  0xd2   : > { %4606 = vmatmul.msk.bf16.gmra.mxu0 %vm519_vm3, %v498_v6  ;;  %1041 = vrot.lane.b32.xlu2 %v809_v14, %s5018_s16  ;;  %v838_v15 = vshrl.u32 %v809_v14, 16  ;;  %v841_v16 = vshll.u32 %v809_v14, 16  ;;  %v667_v19 = vmax.f32 %v597_v12, 0.0 }
  0xd4   : > { %v974_v20 = vrot.slane %v841_v16, 1  ;;  %v840_v21 = vrot.slane %v838_v15, 7  ;;  %v699_v28 = vpack.c.bf16 %v667_v19, %v667_v19 }
  0xd6   : > { %v975_v22 = vor.u32 %v974_v20, %v838_v15  ;;  %v5382_v26 = vor.u32 %v841_v16, %v840_v21  ;;  %v781_v35 = vunpack.c.l.b16 %v699_v28  ;;  %v4951_v16 = vld [vmem:[%s6972_s5 + $0x8] sm:$0xff] }
  0xd7   : > { %v598_v27 = vpop.f32.mrf.mxu0  ;;  %1366 = vmatpush.bf16.msra.mxu2 %v4951_v16 }
  0xd8   : > { %v599_v30 = vadd.f32 %v5290_v49, %v598_v27  ;;  %v1023_v31 = vsel %vm5334_vm6, %v975_v22, 0 }
  0xda   : > { %v668_v32 = vmax.f32 %v599_v30, 0.0  ;;  %1089 = vrot.lane.b32.xlu2 %v1023_v31, %s5019_s17  ;;  %v5020_v31 = vmov 0  }
  0xdb   : > { %1367 = vmatpush.bf16.msra.mxu2 %v4950_v23 }
  0xdc   : > { %v700_v36 = vpack.c.bf16 %v668_v32, %v668_v32 }
  0xde   : > { %v782_v37 = vunpack.c.l.b16 %v700_v36  ;;  %1368 = vmatmul.bf16.vlgmr.msra.gmra.mxu2 %v5020_v31 }
  0xdf   : > { %v601_v39 = vpop.f32.mrf.mxu0 }
  0xe0   : > { %v602_v42 = vadd.f32 %v5290_v49, %v601_v39  ;;  %v810_v43 = vpack.c.b16 %v782_v37, %v781_v35  ;;  %v4955_v35 = vld [vmem:[%s6972_s5 + $0x28] sm:$0xff] }
  0xe1   : > { %1255 = vmatpush.bf16.msra.mxu1 %v4955_v35 }
  0xe2   : > { %4607 = vmatmul.msk.bf16.gmra.mxu0 %vm519_vm3, %v499_v38  ;;  %1043 = vrot.lane.b32.xlu0 %v810_v43, %s5018_s16  ;;  %v845_v44 = vshrl.u32 %v810_v43, 16  ;;  %v848_v45 = vshll.u32 %v810_v43, 16  ;;  %v669_v48 = vmax.f32 %v602_v42, 0.0 }
  0xe4   : > { %v847_v50 = vrot.slane %v845_v44, 7  ;;  %v976_v51 = vrot.slane %v848_v45, 1  ;;  %v701_v57 = vpack.c.bf16 %v669_v48, %v669_v48 }
  0xe5   : > { %1256 = vmatpush.bf16.msra.mxu1 %v4954_v40 }
  0xe6   : > { %v977_v52 = vor.u32 %v976_v51, %v845_v44  ;;  %v5397_v55 = vor.u32 %v848_v45, %v847_v50  ;;  %v783_v0 = vunpack.c.l.b16 %v701_v57 }
  0xe7   : > { %v603_v56 = vpop.f32.mrf.mxu0 }
  0xe8   : > { %v604_v58 = vadd.f32 %v5290_v49, %v603_v56  ;;  %v1024_v60 = vsel %vm5334_vm6, %v977_v52, 0  ;;  %v4958_v56 = vld [vmem:[%s6972_s5 + $0x40] sm:$0xff] }
  0xe9   : > { %1091 = vrot.lane.b32.xlu1 %v1024_v60, %s5019_s17  ;;  %1257 = vmatpush.bf16.msra.mxu1 %v4953_v46  ;;  %v281_v60 = vld [vmem:[%s5073_s28 + $0xe0] sm:$0xff] }
  0xea   : > { %v670_v61 = vmax.f32 %v604_v58, 0.0  ;;  %1472 = vmatpush.bf16.msra.mxu3 %v4958_v56  ;;  %314 = vst.msk [vmem:[%s5078_s7 + $0xe0] sm:$0xff] %vm285_vm1, %v281_v60 }
  0xeb   : > { %347 = vst.msk [vmem:[%s5078_s7 + $0xe0] sm:$0xff] %vm318_vm2, %v5017_v8 }
  0xec   : > { %v702_v1 = vpack.c.bf16 %v670_v61, %v670_v61  ;;  %v282_v61 = vld [vmem:[%s5073_s28 + $0xe8] sm:$0xff] }
  0xed   : > { %315 = vst.msk [vmem:[%s5078_s7 + $0xe8] sm:$0xff] %vm285_vm1, %v282_v61 }
  0xee   : > { %v784_v2 = vunpack.c.l.b16 %v702_v1  ;;  %348 = vst.msk [vmem:[%s5078_s7 + $0xe8] sm:$0xff] %vm318_vm2, %v5017_v8 }
  0xef   : > { %v606_v4 = vpop.f32.mrf.mxu0 }
  0xf0   : > { %v607_v5 = vadd.f32 %v5290_v49, %v606_v4  ;;  %v811_v6 = vpack.c.b16 %v784_v2, %v783_v0  ;;  %v4957_v0 = vld [vmem:[%s6972_s5 + $0x38] sm:$0xff] }
  0xf1   : > { %1473 = vmatpush.bf16.msra.mxu3 %v4957_v0 }
  0xf2   : > { %4608 = vmatmul.msk.bf16.gmra.mxu0 %vm519_vm3, %v500_v3  ;;  %1045 = vrot.lane.b32.xlu2 %v811_v6, %s5018_s16  ;;  %v852_v9 = vshrl.u32 %v811_v6, 16  ;;  %v855_v10 = vshll.u32 %v811_v6, 16  ;;  %v671_v12 = vmax.f32 %v607_v5, 0.0  ;;  %v4956_v6 = vld [vmem:[%s6972_s5 + $0x30] sm:$0xff] }
  0xf4   : > { %v854_v14 = vrot.slane %v852_v9, 7  ;;  %v978_v15 = vrot.slane %v855_v10, 1  ;;  %v703_v20 = vpack.c.bf16 %v671_v12, %v671_v12  ;;  %v379_v12 = vld [vmem:[%s5078_s7 + $0xe0] sm:$0xff] }
  0xf5   : > { %1474 = vmatpush.bf16.msra.mxu3 %v4956_v6  ;;  %v415_v16 = vmul.f32 %v5105_v11, %v379_v12 }
  0xf6   : > { %v979_v17 = vor.u32 %v978_v15, %v852_v9  ;;  %v5412_v18 = vor.u32 %v855_v10, %v854_v14  ;;  %v785_v27 = vunpack.c.l.b16 %v703_v20  ;;  %v380_v15 = vld [vmem:[%s5078_s7 + $0xe8] sm:$0xff] }
  0xf7   : > { %v608_v19 = vpop.f32.mrf.mxu0 }
  0xf8   : > { %v609_v21 = vadd.f32 %v5290_v49, %v608_v19  ;;  %v1025_v22 = vsel %vm5334_vm6, %v979_v17, 0  ;;  %v416_v19 = vmul.f32 %v5105_v11, %v380_v15 }
  0xf9   : > { %1093 = vrot.lane.b32.xlu0 %v1025_v22, %s5019_s17  ;;  %v451_v22 = vadd.f32 %v5117_v13, %v415_v16 }
  0xfa   : > { %v672_v25 = vmax.f32 %v609_v21, 0.0  ;;  %v452_v23 = vadd.f32 %v5117_v13, %v416_v19 }
  0xfc   : > { %v704_v28 = vpack.c.bf16 %v672_v25, %v672_v25 }
  0xfe   : > { %v786_v30 = vunpack.c.l.b16 %v704_v28  ;;  %v483_v28 = vmax.f32 %v451_v22, 0.0 }
  0xff   : > { %v611_v32 = vpop.f32.mrf.mxu0 }
 0x100   : > { %v612_v33 = vadd.f32 %v5290_v49, %v611_v32  ;;  %v5423_v34 = vpack.c.b16 %v786_v30, %v785_v27  ;;  %v484_v30 = vmax.f32 %v452_v23, 0.0  ;;  %v283_v32 = vld [vmem:[%s5073_s28 + $0xf0] sm:$0xff] }
 0x101   : > { %316 = vst.msk [vmem:[%s5078_s7 + $0xf0] sm:$0xff] %vm285_vm1, %v283_v32 }
 0x102   : > { %1047 = vrot.lane.b32.xlu1 %v5423_v34, %s5018_s16  ;;  %v859_v36 = vshrl.u32 %v5423_v34, 16  ;;  %v862_v37 = vshll.u32 %v5423_v34, 16  ;;  %v673_v38 = vmax.f32 %v612_v33, 0.0  ;;  %v284_v33 = vld [vmem:[%s5073_s28 + $0xf8] sm:$0xff]  ;;  %v501_v40 = vpack.c.bf16 %v484_v30, %v483_v28  ;;  %349 = vst.msk [vmem:[%s5078_s7 + $0xf0] sm:$0xff] %vm318_vm2, %v5017_v8 }
 0x103   : > { %317 = vst.msk [vmem:[%s5078_s7 + $0xf8] sm:$0xff] %vm285_vm1, %v284_v33  ;;  %v955_v28 = vsel %vm5512_vm9, 0, %v5367_v59 }
 0x104   : > { %v980_v39 = vrot.slane %v862_v37, 1  ;;  %v705_v43 = vpack.c.bf16 %v673_v38, %v673_v38  ;;  %4609 = vmatmul.msk.bf16.gmra.mxu0 %vm519_vm3, %v501_v40  ;;  %350 = vst.msk [vmem:[%s5078_s7 + $0xf8] sm:$0xff] %vm318_vm2, %v5017_v8  ;;  %v954_v8 = vsel %vm5512_vm9, 0, %v5340_v29 }
 0x106   : > { %v981_v41 = vor.u32 %v980_v39, %v859_v36  ;;  %v787_v48 = vunpack.c.l.b16 %v705_v43 }
 0x107   : > { %v613_v42 = vpop.f32.mrf.mxu0 }
 0x108   : > { %v614_v44 = vadd.f32 %v5290_v49, %v613_v42  ;;  %v1026_v45 = vsel %vm5334_vm6, %v981_v41, 0 }
 0x109   : > { %1095 = vrot.lane.b32.xlu2 %v1026_v45, %s5019_s17  ;;  %v381_v60 = vld [vmem:[%s5078_s7 + $0xf0] sm:$0xff] }
 0x10a   : > { %v674_v47 = vmax.f32 %v614_v44, 0.0 }
 0x10c   : > { %v706_v50 = vpack.c.bf16 %v674_v47, %v674_v47  ;;  %v861_v47 = vrot.slane %v859_v36, 7  ;;  %v382_v36 = vld [vmem:[%s5078_s7 + $0xf8] sm:$0xff] }
 0x10d   : > { %v418_v0 = vmul.f32 %v5105_v11, %v382_v36 }
 0x10e   : > { %v788_v51 = vunpack.c.l.b16 %v706_v50  ;;  %v5534_v29 = vor.u32 %v862_v37, %v861_v47 }
 0x10f   : > { %v616_v52 = vpop.f32.mrf.mxu0 }
 0x110   : > { %v617_v53 = vadd.f32 %v5290_v49, %v616_v52  ;;  %v5447_v54 = vpack.c.b16 %v788_v51, %v787_v48 }
 0x112   : > { %1049 = vrot.lane.b32.xlu0 %v5447_v54, %s5018_s16  ;;  %v866_v57 = vshrl.u32 %v5447_v54, 16  ;;  %v869_v58 = vshll.u32 %v5447_v54, 16  ;;  %v675_v62 = vmax.f32 %v617_v53, 0.0 }
 0x114   : > { %v982_v63 = vrot.slane %v869_v58, 1  ;;  %v707_v3 = vpack.c.bf16 %v675_v62, %v675_v62  ;;  %v417_v62 = vmul.f32 %v5105_v11, %v381_v60  ;;  %v868_v22 = vrot.slane %v866_v57, 7 }
 0x115   : > { %v956_v60 = vsel %vm5512_vm9, 0, %v5382_v26 }
 0x116   : > { %v983_v1 = vor.u32 %v982_v63, %v866_v57  ;;  %v789_v9 = vunpack.c.l.b16 %v707_v3  ;;  %v453_v3 = vadd.f32 %v5117_v13, %v417_v62  ;;  %v5570_v57 = vor.u32 %v869_v58, %v868_v22 }
 0x117   : > { %v618_v2 = vpop.f32.mrf.mxu0 }
 0x118   : > { %v619_v4 = vadd.f32 %v5290_v49, %v618_v2  ;;  %v1027_v5 = vsel %vm5334_vm6, %v983_v1, 0  ;;  %v485_v37 = vmax.f32 %v453_v3, 0.0 }
 0x119   : > { %1097 = vrot.lane.b32.xlu1 %v1027_v5, %s5019_s17 }
 0x11a   : > { %v676_v7 = vmax.f32 %v619_v4, 0.0  ;;  %v454_v4 = vadd.f32 %v5117_v13, %v418_v0  ;;  %v4697_v13 = vld [vmem:[%s6970_s3 + $0x14] sm:$0x3] }
 0x11b   : > { %v1917_v15 = vunpack.c.l.b16 %v4697_v13 }
 0x11c   : > { %v708_v10 = vpack.c.bf16 %v676_v7, %v676_v7  ;;  %v486_v6 = vmax.f32 %v454_v4, 0.0 }
 0x11e   : > { %v790_v14 = vunpack.c.l.b16 %v708_v10  ;;  %v502_v10 = vpack.c.bf16 %v486_v6, %v485_v37 }
 0x11f   : > { %v621_v17 = vpop.f32.mrf.mxu0 }
 0x120   : > { %v622_v20 = vadd.f32 %v5290_v49, %v621_v17  ;;  %v5487_v21 = vpack.c.b16 %v790_v14, %v789_v9  ;;  %4610 = vmatmul.msk.bf16.gmra.mxu0 %vm519_vm3, %v502_v10 }
 0x122   : > { %1051 = vrot.lane.b32.xlu2 %v5487_v21, %s5018_s16  ;;  %v873_v25 = vshrl.u32 %v5487_v21, 16  ;;  %v876_v27 = vshll.u32 %v5487_v21, 16  ;;  %v677_v35 = vmax.f32 %v622_v20, 0.0  ;;  %v1919_v20 = vpack.c.b16 %v1917_v15, %v1917_v15 }
 0x124   : > { %v1038_v38 = vpop.permute.xlu1 %1037  ;;  %v984_v39 = vrot.slane %v876_v27, 1  ;;  %v709_v43 = vpack.c.bf16 %v677_v35, %v677_v35  ;;  %v1970_v30 = vsel %vm568_vm0, %v1919_v20, 0 }
 0x125   : > { %v1120_v51 = vsel %vm1117_vm10, %v954_v8, %v1038_v38  ;;  %1978 = vmatpush.bf16.msrb.mxu0 %v1970_v30 }
 0x126   : > { %v985_v41 = vor.u32 %v984_v39, %v873_v25  ;;  %v791_v50 = vunpack.c.l.b16 %v709_v43 }
 0x127   : > { %v623_v42 = vpop.f32.mrf.mxu0 }
 0x128   : > { %v624_v45 = vadd.f32 %v5290_v49, %v623_v42  ;;  %v1028_v46 = vsel %vm5334_vm6, %v985_v41, 0 }
 0x129   : > { %1099 = vrot.lane.b32.xlu0 %v1028_v46, %s5019_s17 }
 0x12a   : > { %v678_v48 = vmax.f32 %v624_v45, 0.0 }
 0x12c   : > { %v710_v52 = vpack.c.bf16 %v678_v48, %v678_v48  ;;  %v1086_v53 = vpop.permute.xlu1 %1085  ;;  %v1042_v41 = vpop.permute.xlu2 %1041 }
 0x12d   : > { %v1168_v56 = vsel %vm1166_vm11, %v1120_v51, %v1086_v53 }
 0x12e   : > { %v792_v61 = vunpack.c.l.b16 %v710_v52  ;;  %4623 = vmatmul.msk.bf16.vlgmr.msra.gmra.mxu1 %vm1217_vm12, %v1168_v56  ;;  %4651 = vmatmul.msk.bf16.gmra.mxu2 %vm1217_vm12, %v1168_v56  ;;  %v875_v52 = vrot.slane %v873_v25, 7 }
 0x12f   : > { %v626_v63 = vpop.f32.mrf.mxu0 }
 0x130   : > { %v627_v1 = vadd.f32 %v5290_v49, %v626_v63  ;;  %v5538_v2 = vpack.c.b16 %v792_v61, %v791_v50  ;;  %v1126_v61 = vsel %vm1117_vm10, %v956_v60, %v1042_v41  ;;  %v5599_v25 = vor.u32 %v876_v27, %v875_v52 }
 0x132   : > { %1053 = vrot.lane.b32.xlu1 %v5538_v2, %s5018_s16  ;;  %v880_v5 = vshrl.u32 %v5538_v2, 16  ;;  %v883_v34 = vshll.u32 %v5538_v2, 16  ;;  %v679_v7 = vmax.f32 %v627_v1, 0.0 }
 0x134   : > { %v1040_v9 = vpop.permute.xlu0 %1039  ;;  %v986_v11 = vrot.slane %v883_v34, 1  ;;  %v711_v16 = vpack.c.bf16 %v679_v7, %v679_v7  ;;  %v1090_v53 = vpop.permute.xlu2 %1089  ;;  %v882_v13 = vrot.slane %v880_v5, 7 }
 0x135   : > { %v1123_v33 = vsel %vm1117_vm10, %v955_v28, %v1040_v9  ;;  %v1172_v63 = vsel %vm1166_vm11, %v1126_v61, %v1090_v53 }
 0x136   : > { %v987_v12 = vor.u32 %v986_v11, %v880_v5  ;;  %v793_v32 = vunpack.c.l.b16 %v711_v16  ;;  %v5628_v5 = vor.u32 %v883_v34, %v882_v13 }
 0x137   : > { %v628_v14 = vpop.f32.mrf.mxu0 }
 0x138   : > { %v629_v17 = vadd.f32 %v5290_v49, %v628_v14  ;;  %v1029_v19 = vsel %vm5334_vm6, %v987_v12, 0  ;;  %v957_v14 = vsel %vm5512_vm9, 0, %v5397_v55 }
 0x139   : > { %1101 = vrot.lane.b32.xlu2 %v1029_v19, %s5019_s17 }
 0x13a   : > { %v680_v23 = vmax.f32 %v629_v17, 0.0 }
 0x13c   : > { %v712_v35 = vpack.c.bf16 %v680_v23, %v680_v23  ;;  %v1088_v38 = vpop.permute.xlu0 %1087 }
 0x13d   : > { %v1170_v39 = vsel %vm1166_vm11, %v1123_v33, %v1088_v38 }
 0x13e   : > { %v794_v40 = vunpack.c.l.b16 %v712_v35  ;;  %4624 = vmatmul.msk.bf16.gmra.mxu1 %vm1217_vm12, %v1170_v39  ;;  %4652 = vmatmul.msk.bf16.gmra.mxu2 %vm1217_vm12, %v1170_v39 }
 0x13f   : > { %4678 = vmatmul.msk.bf16.vlgmr.msra.gmra.mxu3 %vm1217_vm12, %v1170_v39  ;;  %v631_v59 = vpop.f32.mrf.mxu0 }
 0x140   : > { %v632_v42 = vadd.f32 %v5290_v49, %v631_v59  ;;  %v5574_v43 = vpack.c.b16 %v794_v40, %v793_v32 }
 0x142   : > { %1055 = vrot.lane.b32.xlu0 %v5574_v43, %s5018_s16  ;;  %v887_v45 = vshrl.u32 %v5574_v43, 16  ;;  %v890_v46 = vshll.u32 %v5574_v43, 16  ;;  %v681_v47 = vmax.f32 %v632_v42, 0.0 }
 0x144   : > { %v988_v54 = vrot.slane %v890_v46, 1  ;;  %v713_v8 = vpack.c.bf16 %v681_v47, %v681_v47  ;;  %v889_v42 = vrot.slane %v887_v45, 7  ;;  %v958_v47 = vsel %vm5512_vm9, 0, %v5412_v18 }
 0x146   : > { %v989_v58 = vor.u32 %v988_v54, %v887_v45  ;;  %v795_v36 = vunpack.c.l.b16 %v713_v8  ;;  %v5653_v45 = vor.u32 %v890_v46, %v889_v42 }
 0x147   : > { %v633_v48 = vpop.f32.mrf.mxu0 }
 0x148   : > { %v634_v50 = vadd.f32 %v5290_v49, %v633_v48  ;;  %v1030_v51 = vsel %vm5334_vm6, %v989_v58, 0 }
 0x149   : > { %1103 = vrot.lane.b32.xlu1 %v1030_v51, %s5019_s17 }
 0x14a   : > { %v682_v56 = vmax.f32 %v634_v50, 0.0 }
 0x14c   : > { %v714_v62 = vpack.c.bf16 %v682_v56, %v682_v56  ;;  %v1046_v34 = vpop.permute.xlu2 %1045 }
 0x14d   : > { %v1132_v58 = vsel %vm1117_vm10, %v958_v47, %v1046_v34 }
 0x14e   : > { %v796_v0 = vunpack.c.l.b16 %v714_v62  ;;  %4625 = vmatmul.msk.bf16.gmra.mxu1 %vm1217_vm12, %v1172_v63  ;;  %4653 = vmatmul.msk.bf16.gmra.mxu2 %vm1217_vm12, %v1172_v63 }
 0x14f   : > { %4679 = vmatmul.msk.bf16.gmra.mxu3 %vm1217_vm12, %v1172_v63  ;;  %v636_v1 = vpop.f32.mrf.mxu0 }
 0x150   : > { %v637_v26 = vadd.f32 %v5290_v49, %v636_v1  ;;  %v5603_v3 = vpack.c.b16 %v796_v0, %v795_v36 }
 0x152   : > { %1057 = vrot.lane.b32.xlu2 %v5603_v3, %s5018_s16  ;;  %v894_v4 = vshrl.u32 %v5603_v3, 16  ;;  %v897_v37 = vshll.u32 %v5603_v3, 16  ;;  %v683_v6 = vmax.f32 %v637_v26, 0.0 }
 0x154   : > { %v990_v21 = vrot.slane %v897_v37, 1  ;;  %v715_v9 = vpack.c.bf16 %v683_v6, %v683_v6  ;;  %v1044_v11 = vpop.permute.xlu0 %1043  ;;  %v959_v6 = vsel %vm5512_vm9, 0, %v5534_v29 }
 0x155   : > { %v1129_v16 = vsel %vm1117_vm10, %v957_v14, %v1044_v11 }
 0x156   : > { %v991_v27 = vor.u32 %v990_v21, %v894_v4  ;;  %v797_v19 = vunpack.c.l.b16 %v715_v9  ;;  %v896_v21 = vrot.slane %v894_v4, 7 }
 0x157   : > { %v638_v7 = vpop.f32.mrf.mxu0 }
 0x158   : > { %v639_v10 = vadd.f32 %v5290_v49, %v638_v7  ;;  %v1031_v12 = vsel %vm5334_vm6, %v991_v27, 0  ;;  %v5673_v29 = vor.u32 %v897_v37, %v896_v21 }
 0x159   : > { %1105 = vrot.lane.b32.xlu0 %v1031_v12, %s5019_s17 }
 0x15a   : > { %v684_v15 = vmax.f32 %v639_v10, 0.0 }
 0x15b   : > { %v1092_v17 = vpop.permute.xlu1 %1091 }
 0x15c   : > { %v716_v20 = vpack.c.bf16 %v684_v15, %v684_v15  ;;  %v1174_v22 = vsel %vm1166_vm11, %v1129_v16, %v1092_v17  ;;  %v960_v16 = vsel %vm5512_vm9, 0, %v5570_v57 }
 0x15e   : > { %v798_v23 = vunpack.c.l.b16 %v716_v20  ;;  %4626 = vmatmul.msk.bf16.gmra.mxu1 %vm1217_vm12, %v1174_v22  ;;  %4654 = vmatmul.msk.bf16.gmra.mxu2 %vm1217_vm12, %v1174_v22 }
 0x15f   : > { %4680 = vmatmul.msk.bf16.gmra.mxu3 %vm1217_vm12, %v1174_v22  ;;  %v641_v55 = vpop.f32.mrf.mxu0 }
 0x160   : > { %v642_v28 = vadd.f32 %v5290_v49, %v641_v55  ;;  %v5632_v30 = vpack.c.b16 %v798_v23, %v797_v19  ;;  %v961_v23 = vsel %vm5512_vm9, 0, %v5599_v25 }
 0x162   : > { %1059 = vrot.lane.b32.xlu1 %v5632_v30, %s5018_s16  ;;  %v901_v32 = vshrl.u32 %v5632_v30, 16  ;;  %v904_v33 = vshll.u32 %v5632_v30, 16  ;;  %v685_v35 = vmax.f32 %v642_v28, 0.0  ;;  %v1369_v30 = vpop.f32.mrf.mxu2 }
 0x163   : > { %v1096_v27 = vpop.permute.xlu2 %1095 }
 0x164   : > { %v992_v38 = vrot.slane %v904_v33, 1  ;;  %v717_v40 = vpack.c.bf16 %v685_v35, %v685_v35  ;;  %v903_v15 = vrot.slane %v901_v32, 7 }
 0x166   : > { %v993_v39 = vor.u32 %v992_v38, %v901_v32  ;;  %v799_v8 = vunpack.c.l.b16 %v717_v40  ;;  %v5687_v37 = vor.u32 %v904_v33, %v903_v15 }
 0x167   : > { %v643_v2 = vpop.f32.mrf.mxu0 }
 0x168   : > { %v644_v59 = vadd.f32 %v5290_v49, %v643_v2  ;;  %v1032_v41 = vsel %vm5334_vm6, %v993_v39, 0  ;;  %v962_v39 = vsel %vm5512_vm9, 0, %v5628_v5 }
 0x169   : > { %1107 = vrot.lane.b32.xlu2 %v1032_v41, %s5019_s17 }
 0x16a   : > { %v686_v54 = vmax.f32 %v644_v59, 0.0  ;;  %v5700_v38 = vpop.f32.mrf.mxu2 }
 0x16b   : > { %v1094_v48 = vpop.permute.xlu0 %1093 }
 0x16c   : > { %v718_v50 = vpack.c.bf16 %v686_v54, %v686_v54  ;;  %v1176_v51 = vsel %vm1166_vm11, %v1132_v58, %v1094_v48 }
 0x16e   : > { %v800_v52 = vunpack.c.l.b16 %v718_v50  ;;  %4627 = vmatmul.msk.bf16.gmra.mxu1 %vm1217_vm12, %v1176_v51  ;;  %4655 = vmatmul.msk.bf16.gmra.mxu2 %vm1217_vm12, %v1176_v51  ;;  %v4959_v50 = vld [vmem:[%s6970_s3 + $0xc] sm:$0xff] }
 0x16f   : > { %4681 = vmatmul.msk.bf16.gmra.mxu3 %vm1217_vm12, %v1176_v51  ;;  %v646_v18 = vpop.f32.mrf.mxu0  ;;  %1979 = vmatpush.bf16.msrb.mxu0 %v4959_v50 }
 0x170   : > { %v647_v53 = vadd.f32 %v5290_v49, %v646_v18  ;;  %v819_v56 = vpack.c.b16 %v800_v52, %v799_v8 }
 0x172   : > { %1061 = vrot.lane.b32.xlu0 %v819_v56, %s5018_s16  ;;  %v908_v60 = vshrl.u32 %v819_v56, 16  ;;  %v911_v61 = vshll.u32 %v819_v56, 16  ;;  %v687_v36 = vmax.f32 %v647_v53, 0.0 }
 0x174   : > { %v994_v62 = vrot.slane %v911_v61, 1  ;;  %v1048_v0 = vpop.permute.xlu1 %1047  ;;  %v719_v26 = vpack.c.bf16 %v687_v36, %v687_v36  ;;  %v910_v22 = vrot.slane %v908_v60, 7 }
 0x175   : > { %v1135_v7 = vsel %vm1117_vm10, %v959_v6, %v1048_v0 }
 0x176   : > { %v995_v63 = vor.u32 %v994_v62, %v908_v60  ;;  %v801_v11 = vunpack.c.l.b16 %v719_v26  ;;  %v1178_v12 = vsel %vm1166_vm11, %v1135_v7, %v1096_v27  ;;  %v5697_v32 = vor.u32 %v911_v61, %v910_v22 }
 0x177   : > { %v648_v1 = vpop.f32.mrf.mxu0 }
 0x178   : > { %v649_v43 = vadd.f32 %v5290_v49, %v648_v1  ;;  %v1033_v46 = vsel %vm5334_vm6, %v995_v63, 0  ;;  %v963_v1 = vsel %vm5512_vm9, 0, %v5653_v45 }
 0x179   : > { %1109 = vrot.lane.b32.xlu1 %v1033_v46, %s5019_s17 }
 0x17a   : > { %v688_v9 = vmax.f32 %v649_v43, 0.0 }
 0x17c   : > { %v720_v10 = vpack.c.bf16 %v688_v9, %v688_v9  ;;  %v1052_v20 = vpop.permute.xlu2 %1051 }
 0x17d   : > { %v1141_v57 = vsel %vm1117_vm10, %v961_v23, %v1052_v20 }
 0x17e   : > { %v802_v13 = vunpack.c.l.b16 %v720_v10  ;;  %4628 = vmatmul.msk.bf16.gmra.mxu1 %vm1217_vm12, %v1178_v12  ;;  %4656 = vmatmul.msk.bf16.gmra.mxu2 %vm1217_vm12, %v1178_v12 }
 0x17f   : > { %4682 = vmatmul.msk.bf16.gmra.mxu3 %vm1217_vm12, %v1178_v12 }
 0x180   : > { %v5676_v4 = vpack.c.b16 %v802_v13, %v801_v11 }
 0x181   : > { %v651_v33 = vpop.f32.mrf.mxu0 }
 0x182   : > { %1063 = vrot.lane.b32.xlu1 %v5676_v4, %s5018_s16  ;;  %v652_v25 = vadd.f32 %v5290_v49, %v651_v33  ;;  %v915_v40 = vshrl.u32 %v5676_v4, 16  ;;  %v918_v54 = vshll.u32 %v5676_v4, 16 }
 0x184   : > { %v1050_v14 = vpop.permute.xlu0 %1049  ;;  %v689_v41 = vmax.f32 %v652_v25, 0.0  ;;  %v917_v47 = vrot.slane %v915_v40, 7 }
 0x185   : > { %v1138_v17 = vsel %vm1117_vm10, %v960_v16, %v1050_v14 }
 0x186   : > { %v5713_v5 = vor.u32 %v918_v54, %v917_v47  ;;  %v721_v51 = vpack.c.bf16 %v689_v41, %v689_v41 }
 0x188   : > { %v803_v56 = vunpack.c.l.b16 %v721_v51 }
 0x189   : > { %v653_v42 = vpop.f32.mrf.mxu0 }
 0x18a   : > { %v654_v48 = vadd.f32 %v5290_v49, %v653_v42 }
 0x18b   : > { %v1098_v19 = vpop.permute.xlu1 %1097 }
 0x18c   : > { %v1180_v3 = vsel %vm1166_vm11, %v1138_v17, %v1098_v19  ;;  %v690_v8 = vmax.f32 %v654_v48, 0.0  ;;  %v996_v17 = vrot.slane %v918_v54, 1 }
 0x18e   : > { %4629 = vmatmul.msk.bf16.gmra.mxu1 %vm1217_vm12, %v1180_v3  ;;  %4657 = vmatmul.msk.bf16.gmra.mxu2 %vm1217_vm12, %v1180_v3  ;;  %v722_v18 = vpack.c.bf16 %v690_v8, %v690_v8  ;;  %v997_v23 = vor.u32 %v996_v17, %v915_v40 }
 0x18f   : > { %4683 = vmatmul.msk.bf16.gmra.mxu3 %vm1217_vm12, %v1180_v3 }
 0x190   : > { %v804_v60 = vunpack.c.l.b16 %v722_v18  ;;  %v1034_v25 = vsel %vm5334_vm6, %v997_v23, 0 }
 0x192   : > { %v821_v63 = vpack.c.b16 %v804_v60, %v803_v56  ;;  %v965_v56 = vsel %vm5512_vm9, 0, %v5687_v37 }
 0x193   : > { %v1102_v2 = vpop.permute.xlu2 %1101 }
 0x194   : > { %v922_v26 = vshrl.u32 %v821_v63, 16  ;;  %v925_v10 = vshll.u32 %v821_v63, 16 }
 0x196   : > { %v924_v9 = vrot.slane %v922_v26, 7  ;;  %v998_v48 = vrot.slane %v925_v10, 1 }
 0x198   : > { %v5731_v12 = vor.u32 %v925_v10, %v924_v9  ;;  %v999_v51 = vor.u32 %v998_v48, %v922_v26 }
 0x19b   : > { %v1100_v55 = vpop.permute.xlu0 %1099 }
 0x19c   : > { %v1182_v28 = vsel %vm1166_vm11, %v1141_v57, %v1100_v55 }
 0x19d   : > { %v656_v61 = vpop.f32.mrf.mxu0 }
 0x19e   : > { %4630 = vmatmul.msk.bf16.gmra.mxu1 %vm1217_vm12, %v1182_v28  ;;  %4658 = vmatmul.msk.bf16.gmra.mxu2 %vm1217_vm12, %v1182_v28  ;;  %v657_v62 = vadd.f32 %v5290_v49, %v656_v61  ;;  %v5002_v49 = vld [vmem:[%s6971_s4] ss:$0 sm:$0xff] }
 0x19f   : > { %4684 = vmatmul.msk.bf16.gmra.mxu3 %vm1217_vm12, %v1182_v28 }
 0x1a0   : > { %v691_v27 = vmax.f32 %v657_v62, 0.0  ;;  %v1035_v62 = vsel %vm5334_vm6, %v999_v51, 0 }
 0x1a2   : > { %v723_v13 = vpack.c.bf16 %v691_v27, %v691_v27 }
 0x1a4   : > { %v1054_v35 = vpop.permute.xlu1 %1053  ;;  %v805_v20 = vunpack.c.l.b16 %v723_v13 }
 0x1a5   : > { %v1144_v34 = vsel %vm1117_vm10, %v962_v39, %v1054_v35  ;;  %v658_v7 = vpop.f32.mrf.mxu0 }
 0x1a6   : > { %v1184_v58 = vsel %vm1166_vm11, %v1144_v34, %v1102_v2  ;;  %v659_v11 = vadd.f32 %v5002_v49, %v658_v7  ;;  %v966_v49 = vsel %vm5512_vm9, 0, %v5697_v32 }
 0x1a8   : > { %v692_v45 = vmax.f32 %v659_v11, 0.0 }
 0x1aa   : > { %v724_v15 = vpack.c.bf16 %v692_v45, %v692_v45 }
 0x1ab   : > { %v1259_v59 = vpop.f32.mrf.mxu1 }
 0x1ac   : > { %v1370_v4 = vadd.f32 %v1369_v30, %v1259_v59  ;;  %v806_v22 = vunpack.c.l.b16 %v724_v15  ;;  %v1058_v57 = vpop.permute.xlu2 %1057  ;;  %v964_v30 = vsel %vm5512_vm9, 0, %v5673_v29 }
 0x1ad   : > { %v1150_v2 = vsel %vm1117_vm10, %v964_v30, %v1058_v57 }
 0x1ae   : > { %4631 = vmatmul.msk.bf16.gmra.mxu1 %vm1217_vm12, %v1184_v58  ;;  %4659 = vmatmul.msk.bf16.gmra.mxu2 %vm1217_vm12, %v1184_v58  ;;  %v822_v55 = vpack.c.b16 %v806_v22, %v805_v20 }
 0x1af   : > { %4685 = vmatmul.msk.bf16.gmra.mxu3 %vm1217_vm12, %v1184_v58 }
 0x1b0   : > { %v929_v39 = vshrl.u32 %v822_v55, 16 }
 0x1b1   : > { %v1374_v52 = vpop.f32.mrf.mxu2 }
 0x1b2   : > { %v931_v42 = vrot.slane %v929_v39, 7 }
 0x1b3   : > { %v1261_v53 = vpop.f32.mrf.mxu1 }
 0x1b4   : > { %v1056_v36 = vpop.permute.xlu0 %1055  ;;  %v1372_v28 = vadd.f32 %v5700_v38, %v1261_v53  ;;  %v932_v38 = vshll.u32 %v822_v55, 16 }
 0x1b5   : > { %v1147_v43 = vsel %vm1117_vm10, %v963_v1, %v1056_v36 }
 0x1b6   : > { %v5747_v29 = vor.u32 %v932_v38, %v931_v42 }
 0x1b9   : > { %v1376_v0 = vpop.f32.mrf.mxu2 }
 0x1bb   : > { %v1104_v46 = vpop.permute.xlu1 %1103  ;;  %v1264_v6 = vpop.f32.mrf.mxu1 }
 0x1bc   : > { %v1186_v21 = vsel %vm1166_vm11, %v1147_v43, %v1104_v46  ;;  %v1375_v47 = vadd.f32 %v1374_v52, %v1264_v6  ;;  %v1000_v46 = vrot.slane %v932_v38, 1 }
 0x1be   : > { %4632 = vmatmul.msk.bf16.gmra.mxu1 %vm1217_vm12, %v1186_v21  ;;  %4660 = vmatmul.msk.bf16.gmra.mxu2 %vm1217_vm12, %v1186_v21  ;;  %v1001_v27 = vor.u32 %v1000_v46, %v929_v39 }
 0x1bf   : > { %4686 = vmatmul.msk.bf16.gmra.mxu3 %vm1217_vm12, %v1186_v21 }
 0x1c0   : > { %v1036_v10 = vsel %vm5334_vm6, %v1001_v27, 0 }
 0x1c1   : > { %v1379_v14 = vpop.f32.mrf.mxu2 }
 0x1c2   : > { %v1476_v16 = vpop.f32.mrf.mxu3 }
 0x1c3   : > { %v1556_v19 = vadd.f32 %v1476_v16, %v1370_v4  ;;  %v1266_v3 = vpop.f32.mrf.mxu1  ;;  %v1108_v52 = vpop.permute.xlu2 %1107 }
 0x1c4   : > { %v1377_v53 = vadd.f32 %v1376_v0, %v1266_v3 }
 0x1c5   : > { %1620 = vrot.lane.b32.xlu2 %v1556_v19, %s5021_s23 }
 0x1c9   : > { %v1381_v33 = vpop.f32.mrf.mxu2 }
 0x1ca   : > { %v1478_v35 = vpop.f32.mrf.mxu3 }
 0x1cb   : > { %v1557_v34 = vadd.f32 %v1478_v35, %v1372_v28  ;;  %v1106_v59 = vpop.permute.xlu0 %1105  ;;  %v1269_v41 = vpop.f32.mrf.mxu1 }
 0x1cc   : > { %v1188_v40 = vsel %vm1166_vm11, %v1150_v2, %v1106_v59  ;;  %v1380_v37 = vadd.f32 %v1379_v14, %v1269_v41 }
 0x1cd   : > { %1111 = vrot.lane.b32.xlu2 %v1034_v25, %s5019_s17  ;;  %1622 = vrot.lane.b32.xlu0 %v1557_v34, %s5021_s23 }
 0x1ce   : > { %4633 = vmatmul.msk.bf16.gmra.mxu1 %vm1217_vm12, %v1188_v40  ;;  %4661 = vmatmul.msk.bf16.gmra.mxu2 %vm1217_vm12, %v1188_v40 }
 0x1cf   : > { %4687 = vmatmul.msk.bf16.gmra.mxu3 %vm1217_vm12, %v1188_v40 }
 0x1d1   : > { %v1384_v54 = vpop.f32.mrf.mxu2 }
 0x1d2   : > { %v1481_v58 = vpop.f32.mrf.mxu3 }
 0x1d3   : > { %v1558_v8 = vadd.f32 %v1481_v58, %v1375_v47  ;;  %v1271_v50 = vpop.f32.mrf.mxu1 }
 0x1d4   : > { %v1060_v18 = vpop.permute.xlu1 %1059  ;;  %v1382_v9 = vadd.f32 %v1381_v33, %v1271_v50 }
 0x1d5   : > { %1065 = vrot.lane.b32.xlu2 %v821_v63, %s5018_s16  ;;  %1624 = vrot.lane.b32.xlu0 %v1558_v8, %s5021_s23  ;;  %v1153_v61 = vsel %vm1117_vm10, %v965_v56, %v1060_v18 }
 0x1d6   : > { %v1190_v63 = vsel %vm1166_vm11, %v1153_v61, %v1108_v52  ;;  %v967_v52 = vsel %vm5512_vm9, 0, %v5713_v5 }
 0x1d9   : > { %v1386_v60 = vpop.f32.mrf.mxu2 }
 0x1da   : > { %v1483_v36 = vpop.f32.mrf.mxu3 }
 0x1db   : > { %v1559_v1 = vadd.f32 %v1483_v36, %v1377_v53  ;;  %v1274_v43 = vpop.f32.mrf.mxu1 }
 0x1dc   : > { %v1385_v32 = vadd.f32 %v1384_v54, %v1274_v43 }
 0x1dd   : > { %1113 = vrot.lane.b32.xlu0 %v1035_v62, %s5019_s17  ;;  %1626 = vrot.lane.b32.xlu1 %v1559_v1, %s5021_s23 }
 0x1de   : > { %4634 = vmatmul.msk.bf16.gmra.mxu1 %vm1217_vm12, %v1190_v63  ;;  %4662 = vmatmul.msk.bf16.gmra.mxu2 %vm1217_vm12, %v1190_v63 }
 0x1df   : > { %4688 = vmatmul.msk.bf16.gmra.mxu3 %vm1217_vm12, %v1190_v63 }
 0x1e1   : > { %v1389_v0 = vpop.f32.mrf.mxu2 }
 0x1e2   : > { %v1486_v26 = vpop.f32.mrf.mxu3 }
 0x1e3   : > { %v1560_v6 = vadd.f32 %v1486_v26, %v1380_v37  ;;  %v1276_v21 = vpop.f32.mrf.mxu1 }
 0x1e4   : > { %v1062_v7 = vpop.permute.xlu0 %1061  ;;  %v1387_v22 = vadd.f32 %v1386_v60, %v1276_v21 }
 0x1e5   : > { %1067 = vrot.lane.b32.xlu0 %v822_v55, %s5018_s16  ;;  %1628 = vrot.lane.b32.xlu1 %v1560_v6, %s5021_s23  ;;  %v1156_v45 = vsel %vm1117_vm10, %v966_v49, %v1062_v7 }
 0x1e9   : > { %v1391_v15 = vpop.f32.mrf.mxu2 }
 0x1ea   : > { %v1488_v11 = vpop.f32.mrf.mxu3 }
 0x1eb   : > { %v1561_v13 = vadd.f32 %v1488_v11, %v1382_v9  ;;  %v1110_v4 = vpop.permute.xlu1 %1109  ;;  %v1279_v14 = vpop.f32.mrf.mxu1 }
 0x1ec   : > { %v1192_v16 = vsel %vm1166_vm11, %v1156_v45, %v1110_v4  ;;  %v1390_v33 = vadd.f32 %v1389_v0, %v1279_v14  ;;  %v5802_v4 = vld [vmem:[%s6968_s1 + $0x1] ss:$0 sm:$0xff] }
 0x1ed   : > { %1115 = vrot.lane.b32.xlu1 %v1036_v10, %s5019_s17  ;;  %1630 = vrot.lane.b32.xlu2 %v1561_v13, %s5021_s23 }
 0x1ee   : > { %4635 = vmatmul.msk.bf16.gmra.mxu1 %vm1217_vm12, %v1192_v16  ;;  %4663 = vmatmul.msk.bf16.gmra.mxu2 %vm1217_vm12, %v1192_v16 }
 0x1ef   : > { %4689 = vmatmul.msk.bf16.gmra.mxu3 %vm1217_vm12, %v1192_v16 }
 0x1f1   : > { %v1394_v20 = vpop.f32.mrf.mxu2 }
 0x1f2   : > { %v1491_v17 = vpop.f32.mrf.mxu3 }
 0x1f3   : > { %v1562_v19 = vadd.f32 %v1491_v17, %v1385_v32  ;;  %v1281_v3 = vpop.f32.mrf.mxu1 }
 0x1f4   : > { %v1392_v39 = vadd.f32 %v1391_v15, %v1281_v3  ;;  %v1064_v61 = vpop.permute.xlu1 %1063  ;;  %v5809_v3 = vld [vmem:[%s6969_s2 + $0x1] ss:$0 sm:$0xff] }
 0x1f5   : > { %1632 = vrot.lane.b32.xlu2 %v1562_v19, %s5021_s23  ;;  %v1159_v62 = vsel %vm1117_vm10, %v967_v52, %v1064_v61 }
 0x1f9   : > { %v1396_v28 = vpop.f32.mrf.mxu2 }
 0x1fa   : > { %v1493_v23 = vpop.f32.mrf.mxu3 }
 0x1fb   : > { %v1563_v57 = vadd.f32 %v1493_v23, %v1387_v22  ;;  %v1284_v55 = vpop.f32.mrf.mxu1 }
 0x1fc   : > { %v1395_v40 = vadd.f32 %v1394_v20, %v1284_v55 }
 0x1fd   : > { %1634 = vrot.lane.b32.xlu0 %v1563_v57, %s5021_s23 }
 0x201   : > { %v1399_v2 = vpop.f32.mrf.mxu2 }
 0x202   : > { %v1496_v30 = vpop.f32.mrf.mxu3 }
 0x203   : > { %v1564_v35 = vadd.f32 %v1496_v30, %v1390_v33  ;;  %v1286_v25 = vpop.f32.mrf.mxu1 }
 0x204   : > { %v1397_v58 = vadd.f32 %v1396_v28, %v1286_v25 }
 0x205   : > { %1636 = vrot.lane.b32.xlu1 %v1564_v35, %s5021_s23 }
 0x209   : > { %v1401_v54 = vpop.f32.mrf.mxu2 }
 0x20a   : > { %v1498_v34 = vpop.f32.mrf.mxu3 }
 0x20b   : > { %v1565_v59 = vadd.f32 %v1498_v34, %v1392_v39  ;;  %v1289_v41 = vpop.f32.mrf.mxu1  ;;  %v4962_v34 = vld [vmem:[%s6972_s5 + $0x58] sm:$0xff] }
 0x20c   : > { %v1400_v53 = vadd.f32 %v1399_v2, %v1289_v41  ;;  %2754 = vmatpush.bf16.msrb.mxu2 %v4962_v34 }
 0x20d   : > { %1638 = vrot.lane.b32.xlu2 %v1565_v59, %s5021_s23  ;;  %v968_v59 = vsel %vm5512_vm9, 0, %v5731_v12  ;;  %v4968_v12 = vld [vmem:[%s6972_s5 + $0x88] sm:$0xff] }
 0x20e   : > { %2861 = vmatpush.bf16.msrb.mxu3 %v4968_v12 }
 0x211   : > { %v1404_v51 = vpop.f32.mrf.mxu2 }
 0x212   : > { %v1501_v42 = vpop.f32.mrf.mxu3 }
 0x213   : > { %v1566_v38 = vadd.f32 %v1501_v42, %v1395_v40  ;;  %v1291_v47 = vpop.f32.mrf.mxu1 }
 0x214   : > { %v1402_v37 = vadd.f32 %v1401_v54, %v1291_v47 }
 0x215   : > { %1640 = vrot.lane.b32.xlu0 %v1566_v38, %s5021_s23 }
 0x219   : > { %v1406_v43 = vpop.f32.mrf.mxu2 }
 0x21a   : > { %v1503_v48 = vpop.f32.mrf.mxu3 }
 0x21b   : > { %v1567_v8 = vadd.f32 %v1503_v48, %v1397_v58  ;;  %v1294_v50 = vpop.f32.mrf.mxu1 }
 0x21c   : > { %v1405_v46 = vadd.f32 %v1404_v51, %v1294_v50 }
 0x21d   : > { %1642 = vrot.lane.b32.xlu1 %v1567_v8, %s5021_s23 }
 0x21f   : > { %v1621_v18 = vpop.permute.xlu2 %1620 }
 0x220   : > { %1717 = vst.msk [vmem:[%s5078_s7] sm:$0xff] %vm1716_vm13, %v1621_v18 }
 0x221   : > { %v1409_v6 = vpop.f32.mrf.mxu2 }
 0x222   : > { %v1506_v56 = vpop.f32.mrf.mxu3 }
 0x223   : > { %v1568_v60 = vadd.f32 %v1506_v56, %v1400_v53  ;;  %v1296_v36 = vpop.f32.mrf.mxu1  ;;  %v4965_v56 = vld [vmem:[%s6972_s5 + $0x70] sm:$0xff] }
 0x224   : > { %v1407_v7 = vadd.f32 %v1406_v43, %v1296_v36  ;;  %2647 = vmatpush.bf16.msrb.mxu1 %v4965_v56 }
 0x225   : > { %1644 = vrot.lane.b32.xlu2 %v1568_v60, %s5021_s23 }
 0x227   : > { %v1112_v1 = vpop.permute.xlu2 %1111  ;;  %v1749_v15 = vld [vmem:[%s5078_s7] sm:$0xff] }
 0x228   : > { %v1194_v63 = vsel %vm1166_vm11, %v1159_v62, %v1112_v1  ;;  %v1786_v19 = vmul.f32 %v5802_v4, %v1749_v15 }
 0x229   : > { %4636 = vmatmul.msk.bf16.gmra.mxu1 %vm1217_vm12, %v1194_v63  ;;  %4664 = vmatmul.msk.bf16.gmra.mxu2 %vm1217_vm12, %v1194_v63  ;;  %v1411_v10 = vpop.f32.mrf.mxu2 }
 0x22a   : > { %4690 = vmatmul.msk.bf16.gmra.mxu3 %vm1217_vm12, %v1194_v63  ;;  %v1508_v0 = vpop.f32.mrf.mxu3  ;;  %v1823_v28 = vadd.f32 %v5809_v3, %v1786_v19 }
 0x22b   : > { %v1569_v26 = vadd.f32 %v1508_v0, %v1402_v37  ;;  %v1299_v5 = vpop.f32.mrf.mxu1 }
 0x22c   : > { %v1410_v14 = vadd.f32 %v1409_v6, %v1299_v5  ;;  %v1855_v39 = vmax.f32 %v1823_v28, 0.0  ;;  %v969_v6 = vsel %vm5512_vm9, 0, %v5747_v29 }
 0x22d   : > { %1646 = vrot.lane.b32.xlu0 %v1569_v26, %s5021_s23 }
 0x22f   : > { %v1066_v45 = vpop.permute.xlu2 %1065 }
 0x230   : > { %v1162_v42 = vsel %vm1117_vm10, %v968_v59, %v1066_v45 }
 0x231   : > { %v1414_v20 = vpop.f32.mrf.mxu2 }
 0x232   : > { %v1511_v21 = vpop.f32.mrf.mxu3 }
 0x233   : > { %v1570_v27 = vadd.f32 %v1511_v21, %v1405_v46  ;;  %v1301_v9 = vpop.f32.mrf.mxu1 }
 0x234   : > { %v1412_v33 = vadd.f32 %v1411_v10, %v1301_v9 }
 0x235   : > { %1648 = vrot.lane.b32.xlu1 %v1570_v27, %s5021_s23 }
 0x239   : > { %v1416_v54 = vpop.f32.mrf.mxu2 }
 0x23a   : > { %v1513_v49 = vpop.f32.mrf.mxu3 }
 0x23b   : > { %v1571_v11 = vadd.f32 %v1513_v49, %v1407_v7  ;;  %v1304_v17 = vpop.f32.mrf.mxu1 }
 0x23c   : > { %v1415_v8 = vadd.f32 %v1414_v20, %v1304_v17 }
 0x23d   : > { %1650 = vrot.lane.b32.xlu2 %v1571_v11, %s5021_s23 }
 0x23f   : > { %v1623_v13 = vpop.permute.xlu0 %1622 }
 0x240   : > { %1718 = vst.msk [vmem:[%s5078_s7 + $0x8] sm:$0xff] %vm1716_vm13, %v1623_v13 }
 0x241   : > { %v1419_v43 = vpop.f32.mrf.mxu2 }
 0x242   : > { %v1516_v16 = vpop.f32.mrf.mxu3 }
 0x243   : > { %v1572_v32 = vadd.f32 %v1516_v16, %v1410_v14  ;;  %v1306_v41 = vpop.f32.mrf.mxu1 }
 0x244   : > { %v1417_v1 = vadd.f32 %v1416_v54, %v1306_v41 }
 0x245   : > { %1652 = vrot.lane.b32.xlu0 %v1572_v32, %s5021_s23 }
 0x247   : > { %v1625_v22 = vpop.permute.xlu0 %1624  ;;  %v1631_v23 = vpop.permute.xlu2 %1630  ;;  %v1750_v57 = vld [vmem:[%s5078_s7 + $0x8] sm:$0xff] }
 0x248   : > { %1719 = vst.msk [vmem:[%s5078_s7 + $0x10] sm:$0xff] %vm1716_vm13, %v1625_v22  ;;  %v1787_v55 = vmul.f32 %v5802_v4, %v1750_v57 }
 0x249   : > { %1722 = vst.msk [vmem:[%s5078_s7 + $0x28] sm:$0xff] %vm1716_vm13, %v1631_v23  ;;  %v1421_v15 = vpop.f32.mrf.mxu2 }
 0x24a   : > { %v1518_v30 = vpop.f32.mrf.mxu3  ;;  %v1824_v35 = vadd.f32 %v5809_v3, %v1787_v55 }
 0x24b   : > { %v1573_v25 = vadd.f32 %v1518_v30, %v1412_v33  ;;  %v1309_v52 = vpop.f32.mrf.mxu1 }
 0x24c   : > { %v1856_v2 = vmax.f32 %v1824_v35, 0.0  ;;  %v1420_v11 = vadd.f32 %v1419_v43, %v1309_v52 }
 0x24d   : > { %1654 = vrot.lane.b32.xlu1 %v1573_v25, %s5021_s23 }
 0x24e   : > { %v1887_v40 = vpack.c.bf16 %v1856_v2, %v1855_v39 }
 0x24f   : > { %v1114_v38 = vpop.permute.xlu0 %1113  ;;  %v1627_v47 = vpop.permute.xlu1 %1626  ;;  %v1751_v50 = vld [vmem:[%s5078_s7 + $0x10] sm:$0xff] }
 0x250   : > { %v1196_v58 = vsel %vm1166_vm11, %v1162_v42, %v1114_v38  ;;  %1720 = vst.msk [vmem:[%s5078_s7 + $0x18] sm:$0xff] %vm1716_vm13, %v1627_v47  ;;  %v1633_v48 = vpop.permute.xlu2 %1632  ;;  %4703 = vmatmul.msk.bf16.vlgmr.msrb.gmra.mxu0 %vm519_vm3, %v1887_v40  ;;  %v1788_v53 = vmul.f32 %v5802_v4, %v1751_v50  ;;  %v1754_v10 = vld [vmem:[%s5078_s7 + $0x28] sm:$0xff] }
 0x251   : > { %1723 = vst.msk [vmem:[%s5078_s7 + $0x30] sm:$0xff] %vm1716_vm13, %v1633_v48  ;;  %4637 = vmatmul.msk.bf16.gmra.mxu1 %vm1217_vm12, %v1196_v58  ;;  %4665 = vmatmul.msk.bf16.gmra.mxu2 %vm1217_vm12, %v1196_v58  ;;  %v1791_v16 = vmul.f32 %v5802_v4, %v1754_v10  ;;  %v1424_v33 = vpop.f32.mrf.mxu2 }
 0x252   : > { %4691 = vmatmul.msk.bf16.gmra.mxu3 %vm1217_vm12, %v1196_v58  ;;  %v1521_v51 = vpop.f32.mrf.mxu3  ;;  %v1825_v62 = vadd.f32 %v5809_v3, %v1788_v53 }
 0x253   : > { %v1574_v18 = vadd.f32 %v1521_v51, %v1415_v8  ;;  %v1311_v45 = vpop.f32.mrf.mxu1  ;;  %v1828_v19 = vadd.f32 %v5809_v3, %v1791_v16 }
 0x254   : > { %v1857_v5 = vmax.f32 %v1825_v62, 0.0  ;;  %v1422_v20 = vadd.f32 %v1421_v15, %v1311_v45  ;;  %v4961_v45 = vld [vmem:[%s6972_s5 + $0x50] sm:$0xff] }
 0x255   : > { %1656 = vrot.lane.b32.xlu2 %v1574_v18, %s5021_s23  ;;  %v1860_v28 = vmax.f32 %v1828_v19, 0.0  ;;  %2755 = vmatpush.bf16.msrb.mxu2 %v4961_v45 }
 0x257   : > { %v1629_v60 = vpop.permute.xlu1 %1628  ;;  %v1752_v61 = vld [vmem:[%s5078_s7 + $0x18] sm:$0xff]  ;;  %v1068_v26 = vpop.permute.xlu0 %1067 }
 0x258   : > { %1721 = vst.msk [vmem:[%s5078_s7 + $0x20] sm:$0xff] %vm1716_vm13, %v1629_v60  ;;  %v1789_v36 = vmul.f32 %v5802_v4, %v1752_v61  ;;  %v1165_v27 = vsel %vm1117_vm10, %v969_v6, %v1068_v26  ;;  %v1755_v39 = vld [vmem:[%s5078_s7 + $0x30] sm:$0xff] }
 0x259   : > { %v1792_v59 = vmul.f32 %v5802_v4, %v1755_v39  ;;  %v1426_v38 = vpop.f32.mrf.mxu2 }
 0x25a   : > { %v1523_v63 = vpop.f32.mrf.mxu3  ;;  %v1826_v37 = vadd.f32 %v5809_v3, %v1789_v36 }
 0x25b   : > { %v1575_v0 = vadd.f32 %v1523_v63, %v1417_v1  ;;  %v1314_v55 = vpop.f32.mrf.mxu1  ;;  %v1829_v54 = vadd.f32 %v5809_v3, %v1792_v59 }
 0x25c   : > { %v1858_v46 = vmax.f32 %v1826_v37, 0.0  ;;  %v1425_v25 = vadd.f32 %v1424_v33, %v1314_v55 }
 0x25d   : > { %1658 = vrot.lane.b32.xlu0 %v1575_v0, %s5021_s23  ;;  %v1861_v50 = vmax.f32 %v1829_v54, 0.0 }
 0x25e   : > { %v1888_v21 = vpack.c.bf16 %v1858_v46, %v1857_v5 }
 0x25f   : > { %v1116_v7 = vpop.permute.xlu1 %1115  ;;  %v1753_v9 = vld [vmem:[%s5078_s7 + $0x20] sm:$0xff] }
 0x260   : > { %v1198_v49 = vsel %vm1166_vm11, %v1165_v27, %v1116_v7  ;;  %4704 = vmatmul.msk.bf16.gmra.mxu0 %vm519_vm3, %v1888_v21  ;;  %v1790_v29 = vmul.f32 %v5802_v4, %v1753_v9 }
 0x261   : > { %4638 = vmatmul.msk.bf16.gmra.mxu1 %vm1217_vm12, %v1198_v49 }
 0x262   : > { %4692 = vmatmul.msk.bf16.gmra.mxu3 %vm1217_vm12, %v1198_v49  ;;  %v1526_v13 = vpop.f32.mrf.mxu3  ;;  %v1827_v32 = vadd.f32 %v5809_v3, %v1790_v29 }
 0x263   : > { %v1576_v14 = vadd.f32 %v1526_v13, %v1420_v11  ;;  %v1316_v41 = vpop.f32.mrf.mxu1  ;;  %v4967_v13 = vld [vmem:[%s6972_s5 + $0x80] sm:$0xff] }
 0x264   : > { %v1859_v23 = vmax.f32 %v1827_v32, 0.0  ;;  %v1427_v58 = vadd.f32 %v1426_v38, %v1316_v41  ;;  %2862 = vmatpush.bf16.msrb.mxu3 %v4967_v13 }
 0x265   : > { %1660 = vrot.lane.b32.xlu1 %v1576_v14, %s5021_s23 }
 0x266   : > { %v1889_v30 = vpack.c.bf16 %v1860_v28, %v1859_v23 }
 0x267   : > { %v1639_v17 = vpop.permute.xlu2 %1638 }
 0x268   : > { %1726 = vst.msk [vmem:[%s5078_s7 + $0x48] sm:$0xff] %vm1716_vm13, %v1639_v17 }
 0x26a   : > { %v1528_v22 = vpop.f32.mrf.mxu3 }
 0x26b   : > { %v1577_v57 = vadd.f32 %v1528_v22, %v1422_v20  ;;  %v1319_v15 = vpop.f32.mrf.mxu1  ;;  %v4964_v20 = vld [vmem:[%s6972_s5 + $0x68] sm:$0xff]  ;;  %v1429_v22 = vpop.f32.mrf.mxu2 }
 0x26c   : > { %2648 = vmatpush.bf16.msrb.mxu1 %v4964_v20 }
 0x26d   : > { %1662 = vrot.lane.b32.xlu2 %v1577_v57, %s5021_s23  ;;  %v1430_v57 = vadd.f32 %v1429_v22, %v1319_v15 }
 0x26f   : > { %v1635_v35 = vpop.permute.xlu0 %1634  ;;  %v1758_v60 = vld [vmem:[%s5078_s7 + $0x48] sm:$0xff] }
 0x270   : > { %1724 = vst.msk [vmem:[%s5078_s7 + $0x38] sm:$0xff] %vm1716_vm13, %v1635_v35  ;;  %4705 = vmatmul.msk.bf16.gmra.mxu0 %vm519_vm3, %v1889_v30  ;;  %v1795_v52 = vmul.f32 %v5802_v4, %v1758_v60 }
 0x272   : > { %1550 = vmatmul.bf16.gmra.mxu3 %v5020_v31  ;;  %v1531_v2 = vpop.f32.mrf.mxu3  ;;  %v1832_v1 = vadd.f32 %v5809_v3, %v1795_v52 }
 0x273   : > { %v1578_v34 = vadd.f32 %v1531_v2, %v1425_v25  ;;  %v1321_v2 = vpop.f32.mrf.mxu1  ;;  %v1431_v41 = vpop.f32.mrf.mxu2 }
 0x274   : > { %v1864_v63 = vmax.f32 %v1832_v1, 0.0  ;;  %v5954_v1 = vld [vmem:[%s6971_s4 + $0x1] ss:$0 sm:$0xff] }
 0x275   : > { %1664 = vrot.lane.b32.xlu0 %v1578_v34, %s5021_s23 }
 0x277   : > { %v1637_v40 = vpop.permute.xlu1 %1636  ;;  %v1756_v42 = vld [vmem:[%s5078_s7 + $0x38] sm:$0xff] }
 0x278   : > { %1725 = vst.msk [vmem:[%s5078_s7 + $0x40] sm:$0xff] %vm1716_vm13, %v1637_v40  ;;  %v1793_v47 = vmul.f32 %v5802_v4, %v1756_v42  ;;  %v1432_v40 = vadd.f32 %v1431_v41, %v1321_v2 }
 0x27a   : > { %v1533_v48 = vpop.f32.mrf.mxu3  ;;  %v1830_v12 = vadd.f32 %v5809_v3, %v1793_v47 }
 0x27b   : > { %v1579_v8 = vadd.f32 %v1533_v48, %v1427_v58 }
 0x27c   : > { %v1862_v51 = vmax.f32 %v1830_v12, 0.0 }
 0x27d   : > { %1666 = vrot.lane.b32.xlu1 %v1579_v8, %s5021_s23 }
 0x27e   : > { %v1890_v18 = vpack.c.bf16 %v1862_v51, %v1861_v50 }
 0x27f   : > { %v1645_v53 = vpop.permute.xlu2 %1644  ;;  %v1757_v56 = vld [vmem:[%s5078_s7 + $0x40] sm:$0xff] }
 0x280   : > { %1729 = vst.msk [vmem:[%s5078_s7 + $0x60] sm:$0xff] %vm1716_vm13, %v1645_v53  ;;  %4706 = vmatmul.msk.bf16.gmra.mxu0 %vm519_vm3, %v1890_v18  ;;  %v1794_v61 = vmul.f32 %v5802_v4, %v1757_v56 }
 0x282   : > { %v1831_v36 = vadd.f32 %v5809_v3, %v1794_v61 }
 0x284   : > { %v1863_v43 = vmax.f32 %v1831_v36, 0.0 }
 0x286   : > { %v1891_v37 = vpack.c.bf16 %v1864_v63, %v1863_v43 }
 0x287   : > { %v1641_v62 = vpop.permute.xlu0 %1640  ;;  %v1761_v29 = vld [vmem:[%s5078_s7 + $0x60] sm:$0xff] }
 0x288   : > { %1727 = vst.msk [vmem:[%s5078_s7 + $0x50] sm:$0xff] %vm1716_vm13, %v1641_v62  ;;  %v1798_v14 = vmul.f32 %v5802_v4, %v1761_v29 }
 0x28a   : > { %v1835_v19 = vadd.f32 %v5809_v3, %v1798_v14 }
 0x28c   : > { %v1867_v55 = vmax.f32 %v1835_v19, 0.0 }
 0x28f   : > { %v1643_v0 = vpop.permute.xlu1 %1642  ;;  %v1759_v26 = vld [vmem:[%s5078_s7 + $0x50] sm:$0xff] }
 0x290   : > { %1728 = vst.msk [vmem:[%s5078_s7 + $0x58] sm:$0xff] %vm1716_vm13, %v1643_v0  ;;  %4707 = vmatmul.msk.bf16.gmra.mxu0 %vm519_vm3, %v1891_v37  ;;  %v1796_v5 = vmul.f32 %v5802_v4, %v1759_v26  ;;  %v1434_v0 = vpop.f32.mrf.mxu2 }
 0x292   : > { %v1833_v27 = vadd.f32 %v5809_v3, %v1796_v5 }
 0x294   : > { %v1865_v9 = vmax.f32 %v1833_v27, 0.0 }
 0x297   : > { %v1651_v46 = vpop.permute.xlu2 %1650  ;;  %v1760_v6 = vld [vmem:[%s5078_s7 + $0x58] sm:$0xff] }
 0x298   : > { %1732 = vst.msk [vmem:[%s5078_s7 + $0x78] sm:$0xff] %vm1716_vm13, %v1651_v46  ;;  %v1797_v21 = vmul.f32 %v5802_v4, %v1760_v6  ;;  %v1436_v14 = vpop.f32.mrf.mxu2 }
 0x29a   : > { %v1834_v7 = vadd.f32 %v5809_v3, %v1797_v21 }
 0x29c   : > { %v1866_v49 = vmax.f32 %v1834_v7, 0.0 }
 0x29e   : > { %v1892_v11 = vpack.c.bf16 %v1866_v49, %v1865_v9 }
 0x29f   : > { %v1647_v10 = vpop.permute.xlu0 %1646  ;;  %v1764_v34 = vld [vmem:[%s5078_s7 + $0x78] sm:$0xff] }
 0x2a0   : > { %1730 = vst.msk [vmem:[%s5078_s7 + $0x68] sm:$0xff] %vm1716_vm13, %v1647_v10  ;;  %4708 = vmatmul.msk.bf16.gmra.mxu0 %vm519_vm3, %v1892_v11  ;;  %v1801_v42 = vmul.f32 %v5802_v4, %v1764_v34 }
 0x2a2   : > { %v1838_v48 = vadd.f32 %v5809_v3, %v1801_v42 }
 0x2a4   : > { %v1870_v8 = vmax.f32 %v1838_v48, 0.0 }
 0x2a6   : > { %v1324_v36 = vpop.f32.mrf.mxu1 }
 0x2a7   : > { %v1649_v16 = vpop.permute.xlu1 %1648  ;;  %v1762_v32 = vld [vmem:[%s5078_s7 + $0x68] sm:$0xff]  ;;  %v1435_v21 = vadd.f32 %v1434_v0, %v1324_v36 }
 0x2a8   : > { %1731 = vst.msk [vmem:[%s5078_s7 + $0x70] sm:$0xff] %vm1716_vm13, %v1649_v16  ;;  %v1799_v17 = vmul.f32 %v5802_v4, %v1762_v32 }
 0x2aa   : > { %v1836_v23 = vadd.f32 %v5809_v3, %v1799_v17 }
 0x2ac   : > { %v1868_v28 = vmax.f32 %v1836_v23, 0.0 }
 0x2ad   : > { %v1536_v33 = vpop.f32.mrf.mxu3 }
 0x2ae   : > { %v1580_v30 = vadd.f32 %v1536_v33, %v1430_v57  ;;  %v1893_v35 = vpack.c.bf16 %v1868_v28, %v1867_v55  ;;  %v1326_v27 = vpop.f32.mrf.mxu1 }
 0x2af   : > { %v1657_v25 = vpop.permute.xlu2 %1656  ;;  %v1763_v39 = vld [vmem:[%s5078_s7 + $0x70] sm:$0xff]  ;;  %v1437_v22 = vadd.f32 %v1436_v14, %v1326_v27 }
 0x2b0   : > { %1735 = vst.msk [vmem:[%s5078_s7 + $0x90] sm:$0xff] %vm1716_vm13, %v1657_v25  ;;  %1668 = vrot.lane.b32.xlu2 %v1580_v30, %s5021_s23  ;;  %4709 = vmatmul.msk.bf16.gmra.mxu0 %vm519_vm3, %v1893_v35  ;;  %v1800_v59 = vmul.f32 %v5802_v4, %v1763_v39 }
 0x2b2   : > { %v1837_v54 = vadd.f32 %v5809_v3, %v1800_v59  ;;  %v1439_v59 = vpop.f32.mrf.mxu2 }
 0x2b4   : > { %v1869_v12 = vmax.f32 %v1837_v54, 0.0 }
 0x2b5   : > { %v1538_v38 = vpop.f32.mrf.mxu3 }
 0x2b6   : > { %v1581_v47 = vadd.f32 %v1538_v38, %v1432_v40  ;;  %v1894_v50 = vpack.c.bf16 %v1870_v8, %v1869_v12 }
 0x2b7   : > { %v1653_v58 = vpop.permute.xlu0 %1652  ;;  %v1767_v6 = vld [vmem:[%s5078_s7 + $0x90] sm:$0xff] }
 0x2b8   : > { %1733 = vst.msk [vmem:[%s5078_s7 + $0x80] sm:$0xff] %vm1716_vm13, %v1653_v58  ;;  %1670 = vrot.lane.b32.xlu0 %v1581_v47, %s5021_s23  ;;  %v1804_v9 = vmul.f32 %v5802_v4, %v1767_v6 }
 0x2ba   : > { %v1841_v17 = vadd.f32 %v5809_v3, %v1804_v9 }
 0x2bc   : > { %v1873_v28 = vmax.f32 %v1841_v17, 0.0 }
 0x2bf   : > { %v1655_v51 = vpop.permute.xlu1 %1654  ;;  %v1765_v18 = vld [vmem:[%s5078_s7 + $0x80] sm:$0xff] }
 0x2c0   : > { %1734 = vst.msk [vmem:[%s5078_s7 + $0x88] sm:$0xff] %vm1716_vm13, %v1655_v51  ;;  %4710 = vmatmul.msk.bf16.gmra.mxu0 %vm519_vm3, %v1894_v50  ;;  %v1802_v53 = vmul.f32 %v5802_v4, %v1765_v18 }
 0x2c2   : > { %v1839_v52 = vadd.f32 %v5809_v3, %v1802_v53 }
 0x2c4   : > { %v1871_v43 = vmax.f32 %v1839_v52, 0.0 }
 0x2c7   : > { %v1663_v56 = vpop.permute.xlu2 %1662  ;;  %v1766_v60 = vld [vmem:[%s5078_s7 + $0x88] sm:$0xff] }
 0x2c8   : > { %1738 = vst.msk [vmem:[%s5078_s7 + $0xa8] sm:$0xff] %vm1716_vm13, %v1663_v56  ;;  %v1803_v61 = vmul.f32 %v5802_v4, %v1766_v60 }
 0x2ca   : > { %v1840_v62 = vadd.f32 %v5809_v3, %v1803_v61 }
 0x2cc   : > { %v1872_v63 = vmax.f32 %v1840_v62, 0.0 }
 0x2cd   : > { %v1981_v37 = vpop.f32.mrf.mxu0 }
 0x2ce   : > { %v1895_v26 = vpack.c.bf16 %v1872_v63, %v1871_v43  ;;  %v1982_v46 = vadd.f32 %v5954_v1, %v1981_v37  ;;  %v1329_v57 = vpop.f32.mrf.mxu1  ;;  %v1441_v63 = vpop.f32.mrf.mxu2 }
 0x2cf   : > { %v1659_v5 = vpop.permute.xlu0 %1658  ;;  %v1770_v42 = vld [vmem:[%s5078_s7 + $0xa8] sm:$0xff]  ;;  %v1440_v58 = vadd.f32 %v1439_v59, %v1329_v57 }
 0x2d0   : > { %1736 = vst.msk [vmem:[%s5078_s7 + $0x98] sm:$0xff] %vm1716_vm13, %v1659_v5  ;;  %4711 = vmatmul.msk.bf16.gmra.mxu0 %vm519_vm3, %v1895_v26  ;;  %v2061_v7 = vmax.f32 %v1982_v46, 0.0  ;;  %v1807_v12 = vmul.f32 %v5802_v4, %v1770_v42 }
 0x2d2   : > { %v2093_v15 = vpack.c.bf16 %v2061_v7, %v2061_v7  ;;  %v1844_v43 = vadd.f32 %v5809_v3, %v1807_v12  ;;  %v4960_v12 = vld [vmem:[%s6972_s5 + $0x48] sm:$0xff] }
 0x2d3   : > { %2756 = vmatpush.bf16.msrb.mxu2 %v4960_v12 }
 0x2d4   : > { %v2176_v23 = vunpack.c.l.b16 %v2093_v15  ;;  %v1876_v6 = vmax.f32 %v1844_v43, 0.0 }
 0x2d5   : > { %v1541_v49 = vpop.f32.mrf.mxu3  ;;  %v1983_v11 = vpop.f32.mrf.mxu0 }
 0x2d6   : > { %v1582_v10 = vadd.f32 %v1541_v49, %v1435_v21  ;;  %v1984_v45 = vadd.f32 %v5954_v1, %v1983_v11  ;;  %v1331_v18 = vpop.f32.mrf.mxu1  ;;  %v1444_v15 = vpop.f32.mrf.mxu2  ;;  %2757 = vmatmul.bf16.vlgmr.msrb.gmra.mxu2 %v5020_v31 }
 0x2d7   : > { %v1661_v13 = vpop.permute.xlu1 %1660  ;;  %v1768_v29 = vld [vmem:[%s5078_s7 + $0x98] sm:$0xff]  ;;  %v1442_v57 = vadd.f32 %v1441_v63, %v1331_v18 }
 0x2d8   : > { %v2062_v16 = vmax.f32 %v1984_v45, 0.0  ;;  %1737 = vst.msk [vmem:[%s5078_s7 + $0xa0] sm:$0xff] %vm1716_vm13, %v1661_v13  ;;  %1672 = vrot.lane.b32.xlu1 %v1582_v10, %s5021_s23  ;;  %v1805_v32 = vmul.f32 %v5802_v4, %v1768_v29 }
 0x2da   : > { %v2094_v19 = vpack.c.bf16 %v2062_v16, %v2062_v16  ;;  %v1842_v20 = vadd.f32 %v5809_v3, %v1805_v32 }
 0x2dc   : > { %v2177_v55 = vunpack.c.l.b16 %v2094_v19  ;;  %v1874_v33 = vmax.f32 %v1842_v20, 0.0 }
 0x2dd   : > { %v1543_v30 = vpop.f32.mrf.mxu3  ;;  %v1986_v35 = vpop.f32.mrf.mxu0 }
 0x2de   : > { %v5970_v25 = vpack.c.b16 %v2177_v55, %v2176_v23  ;;  %v1583_v39 = vadd.f32 %v1543_v30, %v1437_v22  ;;  %v1896_v2 = vpack.c.bf16 %v1874_v33, %v1873_v28  ;;  %v1987_v41 = vadd.f32 %v5954_v1, %v1986_v35  ;;  %v1334_v10 = vpop.f32.mrf.mxu1  ;;  %v1446_v43 = vpop.f32.mrf.mxu2 }
 0x2df   : > { %v1769_v34 = vld [vmem:[%s5078_s7 + $0xa0] sm:$0xff]  ;;  %v1445_v17 = vadd.f32 %v1444_v15, %v1334_v10 }
 0x2e0   : > { %1674 = vrot.lane.b32.xlu2 %v1583_v39, %s5021_s23  ;;  %4712 = vmatmul.msk.bf16.gmra.mxu0 %vm519_vm3, %v1896_v2  ;;  %v2225_v40 = vshrl.u32 %v5970_v25, 16  ;;  %v2228_v47 = vshll.u32 %v5970_v25, 16  ;;  %v1806_v54 = vmul.f32 %v5802_v4, %v1769_v34  ;;  %v2063_v48 = vmax.f32 %v1987_v41, 0.0 }
 0x2e2   : > { %v2227_v38 = vrot.slane %v2225_v40, 7  ;;  %v1843_v60 = vadd.f32 %v5809_v3, %v1806_v54  ;;  %v2368_v52 = vrot.slane %v2228_v47, 1  ;;  %v2095_v36 = vpack.c.bf16 %v2063_v48, %v2063_v48 }
 0x2e4   : > { %v5981_v8 = vor.u32 %v2228_v47, %v2227_v38  ;;  %v1875_v0 = vmax.f32 %v1843_v60, 0.0  ;;  %v2369_v26 = vor.u32 %v2368_v52, %v2225_v40  ;;  %v2178_v5 = vunpack.c.l.b16 %v2095_v36 }
 0x2e5   : > { %v1546_v50 = vpop.f32.mrf.mxu3  ;;  %v1988_v51 = vpop.f32.mrf.mxu0 }
 0x2e6   : > { %v1584_v53 = vadd.f32 %v1546_v50, %v1440_v58  ;;  %v1989_v56 = vadd.f32 %v5954_v1, %v1988_v51  ;;  %v1897_v7 = vpack.c.bf16 %v1876_v6, %v1875_v0  ;;  %v2416_v11 = vsel %vm5334_vm6, %v2369_v26, 0  ;;  %v4966_v50 = vld [vmem:[%s6972_s5 + $0x78] sm:$0xff]  ;;  %v1336_v52 = vpop.f32.mrf.mxu1 }
 0x2e7   : > { %v1665_v61 = vpop.permute.xlu0 %1664  ;;  %2863 = vmatpush.bf16.msrb.mxu3 %v4966_v50 }
 0x2e8   : > { %v2064_v62 = vmax.f32 %v1989_v56, 0.0  ;;  %1739 = vst.msk [vmem:[%s5078_s7 + $0xb0] sm:$0xff] %vm1716_vm13, %v1665_v61  ;;  %1676 = vrot.lane.b32.xlu2 %v1584_v53, %s5021_s23 }
 0x2ea   : > { %v2096_v37 = vpack.c.bf16 %v2064_v62, %v2064_v62 }
 0x2ec   : > { %v2179_v46 = vunpack.c.l.b16 %v2096_v37 }
 0x2ed   : > { %v1548_v21 = vpop.f32.mrf.mxu3  ;;  %v1991_v27 = vpop.f32.mrf.mxu0 }
 0x2ee   : > { %v2209_v9 = vpack.c.b16 %v2179_v46, %v2178_v5  ;;  %v1992_v45 = vadd.f32 %v5954_v1, %v1991_v27  ;;  %v1585_v39 = vadd.f32 %v1548_v21, %v1442_v57  ;;  %v1447_v5 = vadd.f32 %v1446_v43, %v1336_v52 }
 0x2ef   : > { %v1667_v49 = vpop.permute.xlu1 %1666  ;;  %v1771_v14 = vld [vmem:[%s5078_s7 + $0xb0] sm:$0xff] }
 0x2f0   : > { %1740 = vst.msk [vmem:[%s5078_s7 + $0xb8] sm:$0xff] %vm1716_vm13, %v1667_v49  ;;  %2480 = vrot.lane.b32.xlu2 %v2416_v11, %s5019_s17  ;;  %4713 = vmatmul.msk.bf16.gmra.mxu0 %vm519_vm3, %v1897_v7  ;;  %v2232_v13 = vshrl.u32 %v2209_v9, 16  ;;  %v2235_v29 = vshll.u32 %v2209_v9, 16  ;;  %v2065_v19 = vmax.f32 %v1992_v45, 0.0  ;;  %v1808_v22 = vmul.f32 %v5802_v4, %v1771_v14 }
 0x2f1   : > { %2434 = vrot.lane.b32.xlu0 %v2209_v9, %s5018_s16 }
 0x2f2   : > { %v2234_v16 = vrot.slane %v2232_v13, 7  ;;  %v2370_v32 = vrot.slane %v2235_v29, 1  ;;  %v2097_v34 = vpack.c.bf16 %v2065_v19, %v2065_v19  ;;  %v1845_v40 = vadd.f32 %v5809_v3, %v1808_v22 }
 0x2f4   : > { %v2371_v20 = vor.u32 %v2370_v32, %v2232_v13  ;;  %v5999_v23 = vor.u32 %v2235_v29, %v2234_v16  ;;  %v2180_v47 = vunpack.c.l.b16 %v2097_v34  ;;  %v1877_v58 = vmax.f32 %v1845_v40, 0.0 }
 0x2f5   : > { %v1551_v55 = vpop.f32.mrf.mxu3  ;;  %v1993_v28 = vpop.f32.mrf.mxu0 }
 0x2f6   : > { %v1586_v33 = vadd.f32 %v1551_v55, %v1445_v17  ;;  %v1994_v30 = vadd.f32 %v5954_v1, %v1993_v28  ;;  %v2417_v35 = vsel %vm5334_vm6, %v2371_v20, 0 }
 0x2f7   : > { %2482 = vrot.lane.b32.xlu1 %v2417_v35, %s5019_s17  ;;  %v1772_v2 = vld [vmem:[%s5078_s7 + $0xb8] sm:$0xff] }
 0x2f8   : > { %v2066_v59 = vmax.f32 %v1994_v30, 0.0  ;;  %1680 = vrot.lane.b32.xlu2 %v1586_v33, %s5021_s23  ;;  %v1809_v41 = vmul.f32 %v5802_v4, %v1772_v2 }
 0x2f9   : > { %1678 = vrot.lane.b32.xlu0 %v1585_v39, %s5021_s23 }
 0x2fa   : > { %v2098_v42 = vpack.c.bf16 %v2066_v59, %v2066_v59  ;;  %v1846_v38 = vadd.f32 %v5809_v3, %v1809_v41 }
 0x2fc   : > { %v2181_v54 = vunpack.c.l.b16 %v2098_v42  ;;  %v1878_v48 = vmax.f32 %v1846_v38, 0.0 }
 0x2fd   : > { %v1996_v51 = vpop.f32.mrf.mxu0  ;;  %v1553_v63 = vpop.f32.mrf.mxu3 }
 0x2fe   : > { %v1898_v18 = vpack.c.bf16 %v1878_v48, %v1877_v58  ;;  %v2210_v53 = vpack.c.b16 %v2181_v54, %v2180_v47  ;;  %v1997_v56 = vadd.f32 %v5954_v1, %v1996_v51  ;;  %v1587_v27 = vadd.f32 %v1553_v63, %v1447_v5 }
 0x2ff   : > { %2432 = vrot.lane.b32.xlu1 %v5970_v25, %s5018_s16  ;;  %v4963_v25 = vld [vmem:[%s6972_s5 + $0x60] sm:$0xff] }
 0x300   : > { %4714 = vmatmul.msk.bf16.gmra.mxu0 %vm519_vm3, %v1898_v18  ;;  %v2239_v60 = vshrl.u32 %v2210_v53, 16  ;;  %v2242_v61 = vshll.u32 %v2210_v53, 16  ;;  %v2067_v37 = vmax.f32 %v1997_v56, 0.0  ;;  %2649 = vmatpush.bf16.msrb.mxu1 %v4963_v25 }
 0x301   : > { %2436 = vrot.lane.b32.xlu0 %v2210_v53, %s5018_s16 }
 0x302   : > { %v2241_v36 = vrot.slane %v2239_v60, 7  ;;  %v2372_v62 = vrot.slane %v2242_v61, 1  ;;  %v2099_v7 = vpack.c.bf16 %v2067_v37, %v2067_v37 }
 0x304   : > { %v2373_v0 = vor.u32 %v2372_v62, %v2239_v60  ;;  %v6026_v26 = vor.u32 %v2242_v61, %v2241_v36  ;;  %v2182_v10 = vunpack.c.l.b16 %v2099_v7 }
 0x305   : > { %v1998_v46 = vpop.f32.mrf.mxu0 }
 0x306   : > { %v1999_v6 = vadd.f32 %v5954_v1, %v1998_v46  ;;  %v2418_v21 = vsel %vm5334_vm6, %v2373_v0, 0 }
 0x307   : > { %2484 = vrot.lane.b32.xlu1 %v2418_v21, %s5019_s17 }
 0x308   : > { %v2068_v9 = vmax.f32 %v1999_v6, 0.0 }
 0x309   : > { %1682 = vrot.lane.b32.xlu0 %v1587_v27, %s5021_s23 }
 0x30a   : > { %v2100_v49 = vpack.c.bf16 %v2068_v9, %v2068_v9  ;;  %v1669_v11 = vpop.permute.xlu2 %1668 }
 0x30b   : > { %1741 = vst.msk [vmem:[%s5078_s7 + $0xc0] sm:$0xff] %vm1716_vm13, %v1669_v11 }
 0x30c   : > { %v2183_v45 = vunpack.c.l.b16 %v2100_v49 }
 0x30d   : > { %v2001_v13 = vpop.f32.mrf.mxu0 }
 0x30e   : > { %v2211_v29 = vpack.c.b16 %v2183_v45, %v2182_v10  ;;  %v2002_v14 = vadd.f32 %v5954_v1, %v2001_v13 }
 0x310   : > { %2438 = vrot.lane.b32.xlu1 %v2211_v29, %s5018_s16  ;;  %v2246_v15 = vshrl.u32 %v2211_v29, 16  ;;  %v2249_v16 = vshll.u32 %v2211_v29, 16  ;;  %v2069_v19 = vmax.f32 %v2002_v14, 0.0 }
 0x312   : > { %v2248_v32 = vrot.slane %v2246_v15, 7  ;;  %v2374_v17 = vrot.slane %v2249_v16, 1  ;;  %v2101_v33 = vpack.c.bf16 %v2069_v19, %v2069_v19  ;;  %v1773_v36 = vld [vmem:[%s5078_s7 + $0xc0] sm:$0xff] }
 0x313   : > { %v1810_v63 = vmul.f32 %v5802_v4, %v1773_v36 }
 0x314   : > { %v2375_v20 = vor.u32 %v2374_v17, %v2246_v15  ;;  %v6037_v22 = vor.u32 %v2249_v16, %v2248_v32  ;;  %v2184_v39 = vunpack.c.l.b16 %v2101_v33 }
 0x315   : > { %v2003_v57 = vpop.f32.mrf.mxu0  ;;  %v1847_v27 = vadd.f32 %v5809_v3, %v1810_v63 }
 0x316   : > { %v2004_v55 = vadd.f32 %v5954_v1, %v2003_v57  ;;  %v2419_v28 = vsel %vm5334_vm6, %v2375_v20, 0 }
 0x317   : > { %2486 = vrot.lane.b32.xlu2 %v2419_v28, %s5019_s17  ;;  %v1879_v29 = vmax.f32 %v1847_v27, 0.0 }
 0x318   : > { %v2070_v30 = vmax.f32 %v2004_v55, 0.0 }
 0x31a   : > { %v2102_v35 = vpack.c.bf16 %v2070_v30, %v2070_v30 }
 0x31c   : > { %v2185_v2 = vunpack.c.l.b16 %v2102_v35 }
 0x31d   : > { %v2006_v34 = vpop.f32.mrf.mxu0 }
 0x31e   : > { %v2212_v59 = vpack.c.b16 %v2185_v2, %v2184_v39  ;;  %v2007_v41 = vadd.f32 %v5954_v1, %v2006_v34 }
 0x320   : > { %2440 = vrot.lane.b32.xlu0 %v2212_v59, %s5018_s16  ;;  %v2253_v40 = vshrl.u32 %v2212_v59, 16  ;;  %v2256_v42 = vshll.u32 %v2212_v59, 16  ;;  %v2071_v54 = vmax.f32 %v2007_v41, 0.0 }
 0x322   : > { %v2255_v38 = vrot.slane %v2253_v40, 7  ;;  %v2376_v47 = vrot.slane %v2256_v42, 1  ;;  %v2103_v18 = vpack.c.bf16 %v2071_v54, %v2071_v54 }
 0x324   : > { %v2377_v58 = vor.u32 %v2376_v47, %v2253_v40  ;;  %v6045_v48 = vor.u32 %v2256_v42, %v2255_v38  ;;  %v2186_v61 = vunpack.c.l.b16 %v2103_v18 }
 0x325   : > { %v2008_v12 = vpop.f32.mrf.mxu0 }
 0x326   : > { %v2009_v50 = vadd.f32 %v5954_v1, %v2008_v12  ;;  %v2420_v51 = vsel %vm5334_vm6, %v2377_v58, 0 }
 0x327   : > { %2488 = vrot.lane.b32.xlu1 %v2420_v51, %s5019_s17 }
 0x328   : > { %v2072_v53 = vmax.f32 %v2009_v50, 0.0 }
 0x32a   : > { %v2104_v56 = vpack.c.bf16 %v2072_v53, %v2072_v53  ;;  %v1671_v60 = vpop.permute.xlu0 %1670 }
 0x32b   : > { %1742 = vst.msk [vmem:[%s5078_s7 + $0xc8] sm:$0xff] %vm1716_vm13, %v1671_v60 }
 0x32c   : > { %v2187_v52 = vunpack.c.l.b16 %v2104_v56 }
 0x32d   : > { %v2011_v62 = vpop.f32.mrf.mxu0 }
 0x32e   : > { %v2213_v43 = vpack.c.b16 %v2187_v52, %v2186_v61  ;;  %v2012_v37 = vadd.f32 %v5954_v1, %v2011_v62 }
 0x330   : > { %2442 = vrot.lane.b32.xlu2 %v2213_v43, %s5018_s16  ;;  %v2260_v0 = vshrl.u32 %v2213_v43, 16  ;;  %v2263_v25 = vshll.u32 %v2213_v43, 16  ;;  %v2073_v7 = vmax.f32 %v2012_v37, 0.0 }
 0x332   : > { %v2262_v5 = vrot.slane %v2260_v0, 7  ;;  %v2378_v46 = vrot.slane %v2263_v25, 1  ;;  %v1774_v6 = vld [vmem:[%s5078_s7 + $0xc8] sm:$0xff]  ;;  %v2105_v15 = vpack.c.bf16 %v2073_v7, %v2073_v7 }
 0x333   : > { %v1811_v21 = vmul.f32 %v5802_v4, %v1774_v6 }
 0x334   : > { %v2379_v9 = vor.u32 %v2378_v46, %v2260_v0  ;;  %v6060_v49 = vor.u32 %v2263_v25, %v2262_v5  ;;  %v2188_v20 = vunpack.c.l.b16 %v2105_v15 }
 0x335   : > { %v2013_v11 = vpop.f32.mrf.mxu0  ;;  %v1848_v10 = vadd.f32 %v5809_v3, %v1811_v21 }
 0x336   : > { %v2014_v45 = vadd.f32 %v5954_v1, %v2013_v11  ;;  %v2421_v13 = vsel %vm5334_vm6, %v2379_v9, 0 }
 0x337   : > { %2490 = vrot.lane.b32.xlu0 %v2421_v13, %s5019_s17  ;;  %v1880_v14 = vmax.f32 %v1848_v10, 0.0 }
 0x338   : > { %v2074_v16 = vmax.f32 %v2014_v45, 0.0 }
 0x339   : > { %v1899_v32 = vpack.c.bf16 %v1880_v14, %v1879_v29 }
 0x33a   : > { %v2106_v17 = vpack.c.bf16 %v2074_v16, %v2074_v16  ;;  %v1675_v19 = vpop.permute.xlu2 %1674 }
 0x33b   : > { %1744 = vst.msk [vmem:[%s5078_s7 + $0xd8] sm:$0xff] %vm1716_vm13, %v1675_v19  ;;  %4715 = vmatmul.msk.bf16.gmra.mxu0 %vm519_vm3, %v1899_v32 }
 0x33c   : > { %v2189_v57 = vunpack.c.l.b16 %v2106_v17 }
 0x33d   : > { %v2016_v55 = vpop.f32.mrf.mxu0 }
 0x33e   : > { %v2214_v28 = vpack.c.b16 %v2189_v57, %v2188_v20  ;;  %v2017_v33 = vadd.f32 %v5954_v1, %v2016_v55 }
 0x340   : > { %2444 = vrot.lane.b32.xlu1 %v2214_v28, %s5018_s16  ;;  %v2267_v30 = vshrl.u32 %v2214_v28, 16  ;;  %v2270_v35 = vshll.u32 %v2214_v28, 16  ;;  %v2075_v59 = vmax.f32 %v2017_v33, 0.0 }
 0x342   : > { %v1677_v39 = vpop.permute.xlu2 %1676  ;;  %v2269_v2 = vrot.slane %v2267_v30, 7  ;;  %v2380_v34 = vrot.slane %v2270_v35, 1  ;;  %v2107_v54 = vpack.c.bf16 %v2075_v59, %v2075_v59  ;;  %v1776_v56 = vld [vmem:[%s5078_s7 + $0xd8] sm:$0xff] }
 0x343   : > { %1745 = vst.msk [vmem:[%s5078_s7 + $0xe0] sm:$0xff] %vm1716_vm13, %v1677_v39  ;;  %v1813_v52 = vmul.f32 %v5802_v4, %v1776_v56  ;;  %v4823_v39 = vld [vmem:[%s6970_s3 + $0x20] sm:$0x3] }
 0x344   : > { %v2381_v41 = vor.u32 %v2380_v34, %v2267_v30  ;;  %v6074_v40 = vor.u32 %v2270_v35, %v2269_v2  ;;  %v2190_v18 = vunpack.c.l.b16 %v2107_v54  ;;  %v3306_v59 = vunpack.c.l.b16 %v4823_v39 }
 0x345   : > { %v2018_v42 = vpop.f32.mrf.mxu0  ;;  %v1850_v46 = vadd.f32 %v5809_v3, %v1813_v52  ;;  %v2353_v54 = vsel %vm5512_vm9, 0, %v5999_v23 }
 0x346   : > { %v2019_v38 = vadd.f32 %v5954_v1, %v2018_v42  ;;  %v2422_v47 = vsel %vm5334_vm6, %v2381_v41, 0 }
 0x347   : > { %2492 = vrot.lane.b32.xlu2 %v2422_v47, %s5019_s17  ;;  %v1882_v13 = vmax.f32 %v1850_v46, 0.0 }
 0x348   : > { %v2076_v58 = vmax.f32 %v2019_v38, 0.0  ;;  %v3308_v38 = vpack.c.b16 %v3306_v59, %v3306_v59 }
 0x34a   : > { %v2108_v12 = vpack.c.bf16 %v2076_v58, %v2076_v58  ;;  %v1673_v50 = vpop.permute.xlu1 %1672  ;;  %v6080_v51 = vpop.permute.xlu2 %2480 }
 0x34b   : > { %1743 = vst.msk [vmem:[%s5078_s7 + $0xd0] sm:$0xff] %vm1716_vm13, %v1673_v50 }
 0x34c   : > { %v2191_v53 = vunpack.c.l.b16 %v2108_v12 }
 0x34d   : > { %v2021_v60 = vpop.f32.mrf.mxu0 }
 0x34e   : > { %v2215_v61 = vpack.c.b16 %v2191_v53, %v2190_v18  ;;  %v2022_v36 = vadd.f32 %v5954_v1, %v2021_v60  ;;  %v3359_v18 = vsel %vm568_vm0, %v3308_v38, 0 }
 0x34f   : > { %3367 = vmatpush.bf16.msra.mxu0 %v3359_v18 }
 0x350   : > { %2446 = vrot.lane.b32.xlu0 %v2215_v61, %s5018_s16  ;;  %v2274_v62 = vshrl.u32 %v2215_v61, 16  ;;  %v2277_v43 = vshll.u32 %v2215_v61, 16  ;;  %v2077_v6 = vmax.f32 %v2022_v36, 0.0  ;;  %v1777_v36 = vld [vmem:[%s5078_s7 + $0xe0] sm:$0xff] }
 0x352   : > { %v1681_v63 = vpop.permute.xlu2 %1680  ;;  %v2276_v37 = vrot.slane %v2274_v62, 7  ;;  %v2382_v0 = vrot.slane %v2277_v43, 1  ;;  %v1775_v25 = vld [vmem:[%s5078_s7 + $0xd0] sm:$0xff]  ;;  %v2109_v29 = vpack.c.bf16 %v2077_v6, %v2077_v6 }
 0x353   : > { %1747 = vst.msk [vmem:[%s5078_s7 + $0xf0] sm:$0xff] %vm1716_vm13, %v1681_v63  ;;  %v1812_v5 = vmul.f32 %v5802_v4, %v1775_v25 }
 0x354   : > { %v2383_v21 = vor.u32 %v2382_v0, %v2274_v62  ;;  %v6093_v27 = vor.u32 %v2277_v43, %v2276_v37  ;;  %v2192_v16 = vunpack.c.l.b16 %v2109_v29  ;;  %v5003_v0 = vld [vmem:[%s6968_s1 + $0x1] ss:$0 sm:$0xff] }
 0x355   : > { %v2023_v7 = vpop.f32.mrf.mxu0  ;;  %v1849_v9 = vadd.f32 %v5809_v3, %v1812_v5  ;;  %v1814_v25 = vmul.f32 %v5003_v0, %v1777_v36  ;;  %v2352_v5 = vsel %vm5512_vm9, 0, %v5981_v8  ;;  %v5004_v8 = vld [vmem:[%s6969_s2 + $0x1] ss:$0 sm:$0xff] }
 0x356   : > { %v2024_v11 = vadd.f32 %v5954_v1, %v2023_v7  ;;  %v2423_v10 = vsel %vm5334_vm6, %v2383_v21, 0 }
 0x357   : > { %2494 = vrot.lane.b32.xlu1 %v2423_v10, %s5019_s17  ;;  %v1881_v45 = vmax.f32 %v1849_v9, 0.0 }
 0x358   : > { %v2078_v4 = vmax.f32 %v2024_v11, 0.0 }
 0x359   : > { %v1900_v14 = vpack.c.bf16 %v1882_v13, %v1881_v45 }
 0x35a   : > { %v2110_v15 = vpack.c.bf16 %v2078_v4, %v2078_v4  ;;  %v1851_v4 = vadd.f32 %v5004_v8, %v1814_v25 }
 0x35b   : > { %4716 = vmatmul.msk.bf16.gmra.mxu0 %vm519_vm3, %v1900_v14 }
 0x35c   : > { %v2193_v32 = vunpack.c.l.b16 %v2110_v15 }
 0x35d   : > { %v2026_v17 = vpop.f32.mrf.mxu0 }
 0x35e   : > { %v2216_v19 = vpack.c.b16 %v2193_v32, %v2192_v16  ;;  %v2027_v3 = vadd.f32 %v5954_v1, %v2026_v17  ;;  %v2354_v17 = vsel %vm5512_vm9, 0, %v6026_v26 }
 0x360   : > { %2448 = vrot.lane.b32.xlu2 %v2216_v19, %s5018_s16  ;;  %v2281_v20 = vshrl.u32 %v2216_v19, 16  ;;  %v2284_v57 = vshll.u32 %v2216_v19, 16  ;;  %v2079_v30 = vmax.f32 %v2027_v3, 0.0 }
 0x362   : > { %v2283_v55 = vrot.slane %v2281_v20, 7  ;;  %v2384_v28 = vrot.slane %v2284_v57, 1  ;;  %v2111_v47 = vpack.c.bf16 %v2079_v30, %v2079_v30 }
 0x363   : > { %v2435_v33 = vpop.permute.xlu0 %2434 }
 0x364   : > { %v2385_v35 = vor.u32 %v2384_v28, %v2281_v20  ;;  %v6106_v2 = vor.u32 %v2284_v57, %v2283_v55  ;;  %v2517_v12 = vsel %vm1117_vm10, %v2353_v54, %v2435_v33  ;;  %v2194_v61 = vunpack.c.l.b16 %v2111_v47 }
 0x365   : > { %v2028_v34 = vpop.f32.mrf.mxu0  ;;  %v1883_v20 = vmax.f32 %v1851_v4, 0.0 }
 0x366   : > { %v2029_v41 = vadd.f32 %v5954_v1, %v2028_v34  ;;  %v2424_v42 = vsel %vm5334_vm6, %v2385_v35, 0 }
 0x367   : > { %2496 = vrot.lane.b32.xlu0 %v2424_v42, %s5019_s17 }
 0x368   : > { %v2080_v58 = vmax.f32 %v2029_v41, 0.0  ;;  %v1779_v41 = vld [vmem:[%s5078_s7 + $0xf0] sm:$0xff] }
 0x369   : > { %v2483_v50 = vpop.permute.xlu1 %2482 }
 0x36a   : > { %v2112_v53 = vpack.c.bf16 %v2080_v58, %v2080_v58  ;;  %v6118_v56 = vsel %vm1166_vm11, %v2517_v12, %v2483_v50  ;;  %v1816_v58 = vmul.f32 %v5003_v0, %v1779_v41 }
 0x36b   : > { %v1679_v60 = vpop.permute.xlu0 %1678  ;;  %4804 = vmatmul.msk.bf16.vlgmr.msrb.gmra.mxu3 %vm1217_vm12, %v6118_v56 }
 0x36c   : > { %v2195_v52 = vunpack.c.l.b16 %v2112_v53  ;;  %1746 = vst.msk [vmem:[%s5078_s7 + $0xe8] sm:$0xff] %vm1716_vm13, %v1679_v60 }
 0x36d   : > { %v2031_v23 = vpop.f32.mrf.mxu0 }
 0x36e   : > { %v2217_v62 = vpack.c.b16 %v2195_v52, %v2194_v61  ;;  %v2032_v43 = vadd.f32 %v5954_v1, %v2031_v23  ;;  %v1853_v23 = vadd.f32 %v5004_v8, %v1816_v58 }
 0x370   : > { %2450 = vrot.lane.b32.xlu1 %v2217_v62, %s5018_s16  ;;  %v2288_v63 = vshrl.u32 %v2217_v62, 16  ;;  %v2291_v37 = vshll.u32 %v2217_v62, 16  ;;  %v2081_v45 = vmax.f32 %v2032_v43, 0.0  ;;  %v2355_v43 = vsel %vm5512_vm9, 0, %v6037_v22 }
 0x371   : > { %v2433_v46 = vpop.permute.xlu1 %2432 }
 0x372   : > { %v2514_v6 = vsel %vm1117_vm10, %v2352_v5, %v2433_v46  ;;  %v2290_v21 = vrot.slane %v2288_v63, 7  ;;  %v2386_v7 = vrot.slane %v2291_v37, 1  ;;  %v2113_v19 = vpack.c.bf16 %v2081_v45, %v2081_v45 }
 0x373   : > { %v2561_v9 = vsel %vm1166_vm11, %v2514_v6, %v6080_v51  ;;  %v2437_v11 = vpop.permute.xlu0 %2436  ;;  %v1778_v10 = vld [vmem:[%s5078_s7 + $0xe8] sm:$0xff]  ;;  %v1885_v46 = vmax.f32 %v1853_v23, 0.0 }
 0x374   : > { %4749 = vmatmul.msk.bf16.vlgmr.msrb.gmra.mxu1 %vm1217_vm12, %v2561_v9  ;;  %4777 = vmatmul.msk.bf16.gmra.mxu2 %vm1217_vm12, %v2561_v9  ;;  %v2387_v13 = vor.u32 %v2386_v7, %v2288_v63  ;;  %v1815_v29 = vmul.f32 %v5003_v0, %v1778_v10  ;;  %v6142_v15 = vor.u32 %v2291_v37, %v2290_v21  ;;  %v2196_v34 = vunpack.c.l.b16 %v2113_v19  ;;  %v2487_v21 = vpop.permute.xlu2 %2486 }
 0x375   : > { %v2033_v14 = vpop.f32.mrf.mxu0  ;;  %v2520_v55 = vsel %vm1117_vm10, %v2354_v17, %v2437_v11  ;;  %v2356_v17 = vsel %vm5512_vm9, 0, %v6045_v48 }
 0x376   : > { %v2034_v16 = vadd.f32 %v5954_v1, %v2033_v14  ;;  %v2425_v51 = vsel %vm5334_vm6, %v2387_v13, 0  ;;  %v1852_v32 = vadd.f32 %v5004_v8, %v1815_v29 }
 0x377   : > { %2498 = vrot.lane.b32.xlu2 %v2425_v51, %s5019_s17 }
 0x378   : > { %v2082_v3 = vmax.f32 %v2034_v16, 0.0  ;;  %v1884_v57 = vmax.f32 %v1852_v32, 0.0 }
 0x379   : > { %v2485_v28 = vpop.permute.xlu1 %2484 }
 0x37a   : > { %v2114_v33 = vpack.c.bf16 %v2082_v3, %v2082_v3  ;;  %v2565_v30 = vsel %vm1166_vm11, %v2520_v55, %v2485_v28  ;;  %v1901_v35 = vpack.c.bf16 %v1884_v57, %v1883_v20  ;;  %v2357_v55 = vsel %vm5512_vm9, 0, %v6060_v49 }
 0x37b   : > { %v1683_v39 = vpop.permute.xlu0 %1682  ;;  %4805 = vmatmul.msk.bf16.gmra.mxu3 %vm1217_vm12, %v2565_v30 }
 0x37c   : > { %v2197_v26 = vunpack.c.l.b16 %v2114_v33  ;;  %1748 = vst.msk [vmem:[%s5078_s7 + $0xf8] sm:$0xff] %vm1716_vm13, %v1683_v39  ;;  %4717 = vmatmul.msk.bf16.gmra.mxu0 %vm519_vm3, %v1901_v35  ;;  %v2358_v35 = vsel %vm5512_vm9, 0, %v6074_v40 }
 0x37d   : > { %v2036_v59 = vpop.f32.mrf.mxu0 }
 0x37e   : > { %v2218_v42 = vpack.c.b16 %v2197_v26, %v2196_v34  ;;  %v2037_v38 = vadd.f32 %v5954_v1, %v2036_v59 }
 0x380   : > { %2452 = vrot.lane.b32.xlu0 %v2218_v42, %s5018_s16  ;;  %v2295_v47 = vshrl.u32 %v2218_v42, 16  ;;  %v2298_v54 = vshll.u32 %v2218_v42, 16  ;;  %v2083_v53 = vmax.f32 %v2037_v38, 0.0 }
 0x382   : > { %v2297_v12 = vrot.slane %v2295_v47, 7  ;;  %v2388_v50 = vrot.slane %v2298_v54, 1  ;;  %v2439_v60 = vpop.permute.xlu1 %2438 }
 0x383   : > { %v1780_v18 = vld [vmem:[%s5078_s7 + $0xf8] sm:$0xff]  ;;  %v2523_v5 = vsel %vm1117_vm10, %v2355_v43, %v2439_v60 }
 0x384   : > { %4750 = vmatmul.msk.bf16.gmra.mxu1 %vm1217_vm12, %v6118_v56  ;;  %4778 = vmatmul.msk.bf16.gmra.mxu2 %vm1217_vm12, %v6118_v56  ;;  %v2389_v61 = vor.u32 %v2388_v50, %v2295_v47  ;;  %v1817_v52 = vmul.f32 %v5003_v0, %v1780_v18  ;;  %v6165_v62 = vor.u32 %v2298_v54, %v2297_v12  ;;  %v2359_v18 = vsel %vm5512_vm9, 0, %v6093_v27 }
 0x385   : > { %v2038_v36 = vpop.f32.mrf.mxu0  ;;  %v2115_v56 = vpack.c.bf16 %v2083_v53, %v2083_v53  ;;  %v2567_v11 = vsel %vm1166_vm11, %v2523_v5, %v2487_v21 }
 0x386   : > { %v2039_v63 = vadd.f32 %v5954_v1, %v2038_v36  ;;  %v2426_v37 = vsel %vm5334_vm6, %v2389_v61, 0  ;;  %v1854_v25 = vadd.f32 %v5004_v8, %v1817_v52 }
 0x387   : > { %2500 = vrot.lane.b32.xlu1 %v2426_v37, %s5019_s17  ;;  %v2198_v22 = vunpack.c.l.b16 %v2115_v56  ;;  %v2360_v56 = vsel %vm5512_vm9, 0, %v6106_v2 }
 0x388   : > { %v2084_v0 = vmax.f32 %v2039_v63, 0.0  ;;  %v1886_v6 = vmax.f32 %v1854_v25, 0.0 }
 0x38a   : > { %v2116_v7 = vpack.c.bf16 %v2084_v0, %v2084_v0  ;;  %v1902_v9 = vpack.c.bf16 %v1886_v6, %v1885_v46  ;;  %v2443_v57 = vpop.permute.xlu2 %2442 }
 0x38b   : > { %4806 = vmatmul.msk.bf16.gmra.mxu3 %vm1217_vm12, %v2567_v11  ;;  %v2529_v28 = vsel %vm1117_vm10, %v2357_v55, %v2443_v57 }
 0x38c   : > { %v2199_v10 = vunpack.c.l.b16 %v2116_v7  ;;  %4718 = vmatmul.msk.bf16.gmra.mxu0 %vm519_vm3, %v1902_v9 }
 0x38e   : > { %v2219_v45 = vpack.c.b16 %v2199_v10, %v2198_v22 }
 0x390   : > { %2454 = vrot.lane.b32.xlu2 %v2219_v45, %s5018_s16  ;;  %v2302_v13 = vshrl.u32 %v2219_v45, 16  ;;  %v2305_v29 = vshll.u32 %v2219_v45, 16 }
 0x392   : > { %v2304_v8 = vrot.slane %v2302_v13, 7  ;;  %v2390_v4 = vrot.slane %v2305_v29, 1  ;;  %v2441_v51 = vpop.permute.xlu0 %2440 }
 0x393   : > { %v2526_v19 = vsel %vm1117_vm10, %v2356_v17, %v2441_v51 }
 0x394   : > { %4751 = vmatmul.msk.bf16.gmra.mxu1 %vm1217_vm12, %v2565_v30  ;;  %4779 = vmatmul.msk.bf16.gmra.mxu2 %vm1217_vm12, %v2565_v30  ;;  %v2391_v14 = vor.u32 %v2390_v4, %v2302_v13  ;;  %v6181_v16 = vor.u32 %v2305_v29, %v2304_v8  ;;  %v2758_v13 = vpop.f32.mrf.mxu2  ;;  %v2361_v8 = vsel %vm5512_vm9, 0, %v6142_v15 }
 0x396   : > { %v2427_v32 = vsel %vm5334_vm6, %v2391_v14, 0 }
 0x397   : > { %2502 = vrot.lane.b32.xlu0 %v2427_v32, %s5019_s17 }
 0x399   : > { %v2489_v3 = vpop.permute.xlu1 %2488 }
 0x39a   : > { %v2569_v20 = vsel %vm1166_vm11, %v2526_v19, %v2489_v3 }
 0x39b   : > { %4807 = vmatmul.msk.bf16.gmra.mxu3 %vm1217_vm12, %v2569_v20 }
 0x3a1   : > { %v2493_v49 = vpop.permute.xlu2 %2492 }
 0x3a4   : > { %4752 = vmatmul.msk.bf16.gmra.mxu1 %vm1217_vm12, %v2567_v11  ;;  %4780 = vmatmul.msk.bf16.gmra.mxu2 %vm1217_vm12, %v2567_v11 }
 0x3a9   : > { %v2491_v33 = vpop.permute.xlu0 %2490 }
 0x3aa   : > { %v2571_v48 = vsel %vm1166_vm11, %v2529_v28, %v2491_v33 }
 0x3ab   : > { %4808 = vmatmul.msk.bf16.gmra.mxu3 %vm1217_vm12, %v2571_v48 }
 0x3b2   : > { %v2445_v30 = vpop.permute.xlu1 %2444 }
 0x3b3   : > { %v2532_v39 = vsel %vm1117_vm10, %v2358_v35, %v2445_v30 }
 0x3b4   : > { %4753 = vmatmul.msk.bf16.gmra.mxu1 %vm1217_vm12, %v2569_v20  ;;  %4781 = vmatmul.msk.bf16.gmra.mxu2 %vm1217_vm12, %v2569_v20  ;;  %v2573_v26 = vsel %vm1166_vm11, %v2532_v39, %v2493_v49  ;;  %v2760_v20 = vpop.f32.mrf.mxu2 }
 0x3b8   : > { %v2041_v34 = vpop.f32.mrf.mxu0 }
 0x3b9   : > { %v2042_v59 = vadd.f32 %v5954_v1, %v2041_v34 }
 0x3ba   : > { %v2449_v5 = vpop.permute.xlu2 %2448 }
 0x3bb   : > { %4809 = vmatmul.msk.bf16.gmra.mxu3 %vm1217_vm12, %v2573_v26  ;;  %v2085_v41 = vmax.f32 %v2042_v59, 0.0  ;;  %v2538_v46 = vsel %vm1117_vm10, %v2360_v56, %v2449_v5 }
 0x3bd   : > { %v2117_v47 = vpack.c.bf16 %v2085_v41, %v2085_v41 }
 0x3bf   : > { %v2200_v12 = vunpack.c.l.b16 %v2117_v47 }
 0x3c0   : > { %v2043_v42 = vpop.f32.mrf.mxu0 }
 0x3c1   : > { %v2044_v38 = vadd.f32 %v5954_v1, %v2043_v42 }
 0x3c2   : > { %v2447_v58 = vpop.permute.xlu0 %2446 }
 0x3c3   : > { %v2086_v54 = vmax.f32 %v2044_v38, 0.0  ;;  %v2535_v53 = vsel %vm1117_vm10, %v2359_v18, %v2447_v58  ;;  %v5005_v58 = vld [vmem:[%s6971_s4 + $0x1] ss:$0 sm:$0xff] }
 0x3c4   : > { %4754 = vmatmul.msk.bf16.gmra.mxu1 %vm1217_vm12, %v2571_v48  ;;  %4782 = vmatmul.msk.bf16.gmra.mxu2 %vm1217_vm12, %v2571_v48 }
 0x3c5   : > { %v2118_v40 = vpack.c.bf16 %v2086_v54, %v2086_v54 }
 0x3c7   : > { %v2201_v50 = vunpack.c.l.b16 %v2118_v40 }
 0x3c9   : > { %v2495_v60 = vpop.permute.xlu1 %2494  ;;  %v2220_v61 = vpack.c.b16 %v2201_v50, %v2200_v12 }
 0x3ca   : > { %v2575_v52 = vsel %vm1166_vm11, %v2535_v53, %v2495_v60 }
 0x3cb   : > { %2456 = vrot.lane.b32.xlu1 %v2220_v61, %s5018_s16  ;;  %4810 = vmatmul.msk.bf16.gmra.mxu3 %vm1217_vm12, %v2575_v52  ;;  %v2309_v23 = vshrl.u32 %v2220_v61, 16  ;;  %v2312_v36 = vshll.u32 %v2220_v61, 16 }
 0x3cd   : > { %v2311_v43 = vrot.slane %v2309_v23, 7  ;;  %v2392_v63 = vrot.slane %v2312_v36, 1 }
 0x3cf   : > { %v2393_v37 = vor.u32 %v2392_v63, %v2309_v23  ;;  %v6219_v25 = vor.u32 %v2312_v36, %v2311_v43 }
 0x3d1   : > { %v2428_v27 = vsel %vm5334_vm6, %v2393_v37, 0  ;;  %v2499_v32 = vpop.permute.xlu2 %2498 }
 0x3d2   : > { %2504 = vrot.lane.b32.xlu2 %v2428_v27, %s5019_s17 }
 0x3d4   : > { %4755 = vmatmul.msk.bf16.gmra.mxu1 %vm1217_vm12, %v2573_v26  ;;  %4783 = vmatmul.msk.bf16.gmra.mxu2 %vm1217_vm12, %v2573_v26  ;;  %v2362_v26 = vsel %vm5512_vm9, 0, %v6165_v62 }
 0x3d8   : > { %v2046_v0 = vpop.f32.mrf.mxu0 }
 0x3d9   : > { %v2497_v6 = vpop.permute.xlu0 %2496  ;;  %v2047_v7 = vadd.f32 %v5954_v1, %v2046_v0 }
 0x3da   : > { %v2577_v21 = vsel %vm1166_vm11, %v2538_v46, %v2497_v6  ;;  %v2363_v46 = vsel %vm5512_vm9, 0, %v6181_v16 }
 0x3db   : > { %4811 = vmatmul.msk.bf16.gmra.mxu3 %vm1217_vm12, %v2577_v21  ;;  %v2087_v9 = vmax.f32 %v2047_v7, 0.0 }
 0x3dd   : > { %v2119_v10 = vpack.c.bf16 %v2087_v9, %v2087_v9 }
 0x3df   : > { %v2202_v4 = vunpack.c.l.b16 %v2119_v10 }
 0x3e0   : > { %v2048_v11 = vpop.f32.mrf.mxu0 }
 0x3e1   : > { %v2049_v22 = vadd.f32 %v5954_v1, %v2048_v11  ;;  %v4969_v1 = vld [vmem:[%s6970_s3 + $0x18] sm:$0xff] }
 0x3e2   : > { %v2451_v29 = vpop.permute.xlu1 %2450  ;;  %3368 = vmatpush.bf16.msra.mxu0 %v4969_v1 }
 0x3e3   : > { %v2088_v45 = vmax.f32 %v2049_v22, 0.0  ;;  %v2541_v51 = vsel %vm1117_vm10, %v2361_v8, %v2451_v29 }
 0x3e4   : > { %4756 = vmatmul.msk.bf16.gmra.mxu1 %vm1217_vm12, %v2575_v52  ;;  %4784 = vmatmul.msk.bf16.gmra.mxu2 %vm1217_vm12, %v2575_v52  ;;  %v2579_v19 = vsel %vm1166_vm11, %v2541_v51, %v2499_v32 }
 0x3e5   : > { %v2120_v2 = vpack.c.bf16 %v2088_v45, %v2088_v45 }
 0x3e7   : > { %v2203_v14 = vunpack.c.l.b16 %v2120_v2 }
 0x3e9   : > { %v2221_v17 = vpack.c.b16 %v2203_v14, %v2202_v4 }
 0x3ea   : > { %v2455_v27 = vpop.permute.xlu2 %2454 }
 0x3eb   : > { %2458 = vrot.lane.b32.xlu2 %v2221_v17, %s5018_s16  ;;  %4812 = vmatmul.msk.bf16.gmra.mxu3 %vm1217_vm12, %v2579_v19  ;;  %v2316_v3 = vshrl.u32 %v2221_v17, 16  ;;  %v2319_v57 = vshll.u32 %v2221_v17, 16  ;;  %v2547_v7 = vsel %vm1117_vm10, %v2363_v46, %v2455_v27 }
 0x3ed   : > { %v2318_v15 = vrot.slane %v2316_v3, 7  ;;  %v2394_v35 = vrot.slane %v2319_v57, 1 }
 0x3ee   : > { %v2865_v55 = vpop.f32.mrf.mxu3 }
 0x3ef   : > { %v6246_v28 = vor.u32 %v2319_v57, %v2318_v15  ;;  %v2395_v38 = vor.u32 %v2394_v35, %v2316_v3 }
 0x3f1   : > { %v2651_v33 = vpop.f32.mrf.mxu1  ;;  %v2429_v62 = vsel %vm5334_vm6, %v2395_v38, 0 }
 0x3f2   : > { %v2759_v48 = vadd.f32 %v2758_v13, %v2651_v33  ;;  %v2453_v39 = vpop.permute.xlu0 %2452 }
 0x3f3   : > { %v2544_v59 = vsel %vm1117_vm10, %v2362_v26, %v2453_v39 }
 0x3f4   : > { %v2945_v30 = vadd.f32 %v2865_v55, %v2759_v48  ;;  %4757 = vmatmul.msk.bf16.gmra.mxu1 %vm1217_vm12, %v2577_v21  ;;  %4785 = vmatmul.msk.bf16.gmra.mxu2 %vm1217_vm12, %v2577_v21 }
 0x3f6   : > { %v2867_v34 = vpop.f32.mrf.mxu3  ;;  %3009 = vrot.lane.b32.xlu0 %v2945_v30, %s5022_s14 }
 0x3f7   : > { %v2763_v49 = vpop.f32.mrf.mxu2 }
 0x3f9   : > { %v2051_v41 = vpop.f32.mrf.mxu0  ;;  %v2501_v42 = vpop.permute.xlu1 %2500 }
 0x3fa   : > { %v2581_v47 = vsel %vm1166_vm11, %v2544_v59, %v2501_v42  ;;  %v2653_v54 = vpop.f32.mrf.mxu1  ;;  %v2052_v12 = vadd.f32 %v5005_v58, %v2051_v41 }
 0x3fb   : > { %v2761_v40 = vadd.f32 %v2760_v20, %v2653_v54  ;;  %4813 = vmatmul.msk.bf16.gmra.mxu3 %vm1217_vm12, %v2581_v47 }
 0x3fc   : > { %v2089_v60 = vmax.f32 %v2052_v12, 0.0 }
 0x3fd   : > { %v2946_v50 = vadd.f32 %v2867_v34, %v2761_v40 }
 0x3fe   : > { %v2870_v18 = vpop.f32.mrf.mxu3  ;;  %2506 = vrot.lane.b32.xlu0 %v2429_v62, %s5019_s17  ;;  %v2121_v43 = vpack.c.bf16 %v2089_v60, %v2089_v60 }
 0x3ff   : > { %3011 = vrot.lane.b32.xlu1 %v2946_v50, %s5022_s14  ;;  %v2765_v53 = vpop.f32.mrf.mxu2 }
 0x400   : > { %v2204_v6 = vunpack.c.l.b16 %v2121_v43 }
 0x401   : > { %v2053_v61 = vpop.f32.mrf.mxu0 }
 0x402   : > { %v2054_v52 = vadd.f32 %v5005_v58, %v2053_v61  ;;  %v2656_v23 = vpop.f32.mrf.mxu1 }
 0x403   : > { %v2764_v36 = vadd.f32 %v2763_v49, %v2656_v23 }
 0x404   : > { %v2090_v63 = vmax.f32 %v2054_v52, 0.0  ;;  %4758 = vmatmul.msk.bf16.gmra.mxu1 %vm1217_vm12, %v2579_v19  ;;  %4786 = vmatmul.msk.bf16.gmra.mxu2 %vm1217_vm12, %v2579_v19 }
 0x405   : > { %v2947_v37 = vadd.f32 %v2870_v18, %v2764_v36 }
 0x406   : > { %v2122_v5 = vpack.c.bf16 %v2090_v63, %v2090_v63  ;;  %v2872_v56 = vpop.f32.mrf.mxu3 }
 0x407   : > { %3013 = vrot.lane.b32.xlu1 %v2947_v37, %s5022_s14  ;;  %v2768_v0 = vpop.f32.mrf.mxu2 }
 0x408   : > { %v2205_v21 = vunpack.c.l.b16 %v2122_v5 }
 0x409   : > { %v2056_v9 = vpop.f32.mrf.mxu0  ;;  %v2503_v11 = vpop.permute.xlu0 %2502 }
 0x40a   : > { %v2658_v22 = vpop.f32.mrf.mxu1  ;;  %v2583_v10 = vsel %vm1166_vm11, %v2547_v7, %v2503_v11  ;;  %v2222_v45 = vpack.c.b16 %v2205_v21, %v2204_v6  ;;  %v2057_v29 = vadd.f32 %v5005_v58, %v2056_v9 }
 0x40b   : > { %v2766_v13 = vadd.f32 %v2765_v53, %v2658_v22  ;;  %4814 = vmatmul.msk.bf16.gmra.mxu3 %vm1217_vm12, %v2583_v10  ;;  %v2364_v22 = vsel %vm5512_vm9, 0, %v6219_v25 }
 0x40c   : > { %2460 = vrot.lane.b32.xlu0 %v2222_v45, %s5018_s16  ;;  %v2323_v2 = vshrl.u32 %v2222_v45, 16  ;;  %v2326_v8 = vshll.u32 %v2222_v45, 16  ;;  %v2091_v32 = vmax.f32 %v2057_v29, 0.0 }
 0x40d   : > { %v2948_v4 = vadd.f32 %v2872_v56, %v2766_v13 }
 0x40e   : > { %v2875_v16 = vpop.f32.mrf.mxu3  ;;  %v2325_v14 = vrot.slane %v2323_v2, 7  ;;  %v2396_v51 = vrot.slane %v2326_v8, 1  ;;  %v2123_v33 = vpack.c.bf16 %v2091_v32, %v2091_v32 }
 0x40f   : > { %3015 = vrot.lane.b32.xlu2 %v2948_v4, %s5022_s14  ;;  %v2770_v1 = vpop.f32.mrf.mxu2 }
 0x410   : > { %v2397_v17 = vor.u32 %v2396_v51, %v2323_v2  ;;  %v6275_v19 = vor.u32 %v2326_v8, %v2325_v14  ;;  %v2206_v49 = vunpack.c.l.b16 %v2123_v33 }
 0x411   : > { %v2058_v3 = vpop.f32.mrf.mxu0 }
 0x412   : > { %v2059_v20 = vadd.f32 %v5005_v58, %v2058_v3  ;;  %v2661_v15 = vpop.f32.mrf.mxu1  ;;  %v2430_v57 = vsel %vm5334_vm6, %v2397_v17, 0 }
 0x413   : > { %v2769_v55 = vadd.f32 %v2768_v0, %v2661_v15  ;;  %2508 = vrot.lane.b32.xlu1 %v2430_v57, %s5019_s17 }
 0x414   : > { %v2092_v48 = vmax.f32 %v2059_v20, 0.0  ;;  %4759 = vmatmul.msk.bf16.gmra.mxu1 %vm1217_vm12, %v2581_v47  ;;  %4787 = vmatmul.msk.bf16.gmra.mxu2 %vm1217_vm12, %v2581_v47 }
 0x415   : > { %v2949_v30 = vadd.f32 %v2875_v16, %v2769_v55 }
 0x416   : > { %v2124_v35 = vpack.c.bf16 %v2092_v48, %v2092_v48  ;;  %v2877_v39 = vpop.f32.mrf.mxu3 }
 0x417   : > { %3017 = vrot.lane.b32.xlu2 %v2949_v30, %s5022_s14  ;;  %v2773_v34 = vpop.f32.mrf.mxu2 }
 0x418   : > { %v2207_v26 = vunpack.c.l.b16 %v2124_v35 }
 0x41a   : > { %v2663_v59 = vpop.f32.mrf.mxu1  ;;  %v2223_v41 = vpack.c.b16 %v2207_v26, %v2206_v49 }
 0x41b   : > { %v2771_v42 = vadd.f32 %v2770_v1, %v2663_v59 }
 0x41c   : > { %2462 = vrot.lane.b32.xlu1 %v2223_v41, %s5018_s16  ;;  %v2330_v38 = vshrl.u32 %v2223_v41, 16  ;;  %v2333_v54 = vshll.u32 %v2223_v41, 16 }
 0x41d   : > { %v2950_v40 = vadd.f32 %v2877_v39, %v2771_v42 }
 0x41e   : > { %v2880_v58 = vpop.f32.mrf.mxu3  ;;  %v2398_v12 = vrot.slane %v2333_v54, 1  ;;  %v2332_v50 = vrot.slane %v2330_v38, 7 }
 0x41f   : > { %3019 = vrot.lane.b32.xlu0 %v2950_v40, %s5022_s14  ;;  %v2775_v47 = vpop.f32.mrf.mxu2 }
 0x420   : > { %v2399_v62 = vor.u32 %v2398_v12, %v2330_v38  ;;  %v6285_v18 = vor.u32 %v2333_v54, %v2332_v50 }
 0x422   : > { %v2666_v53 = vpop.f32.mrf.mxu1  ;;  %v2431_v60 = vsel %vm5334_vm6, %v2399_v62, 0 }
 0x423   : > { %v2774_v61 = vadd.f32 %v2773_v34, %v2666_v53  ;;  %2510 = vrot.lane.b32.xlu2 %v2431_v60, %s5019_s17  ;;  %v2365_v53 = vsel %vm5512_vm9, 0, %v6246_v28  ;;  %v6326_v28 = vld [vmem:[%s6968_s1 + $0x2] ss:$0 sm:$0xff] }
 0x424   : > { %4760 = vmatmul.msk.bf16.gmra.mxu1 %vm1217_vm12, %v2583_v10  ;;  %4788 = vmatmul.msk.bf16.gmra.mxu2 %vm1217_vm12, %v2583_v10 }
 0x425   : > { %v2951_v52 = vadd.f32 %v2880_v58, %v2774_v61 }
 0x426   : > { %v2882_v23 = vpop.f32.mrf.mxu3 }
 0x427   : > { %3021 = vrot.lane.b32.xlu0 %v2951_v52, %s5022_s14  ;;  %v2778_v36 = vpop.f32.mrf.mxu2 }
 0x42a   : > { %v2668_v43 = vpop.f32.mrf.mxu1 }
 0x42b   : > { %v2776_v63 = vadd.f32 %v2775_v47, %v2668_v43 }
 0x42c   : > { %v2505_v45 = vpop.permute.xlu2 %2504 }
 0x42d   : > { %v2952_v37 = vadd.f32 %v2882_v23, %v2776_v63 }
 0x42e   : > { %v2885_v27 = vpop.f32.mrf.mxu3 }
 0x42f   : > { %3023 = vrot.lane.b32.xlu1 %v2952_v37, %s5022_s14  ;;  %v2780_v5 = vpop.f32.mrf.mxu2 }
 0x432   : > { %v2671_v56 = vpop.f32.mrf.mxu1 }
 0x433   : > { %v2779_v0 = vadd.f32 %v2778_v36, %v2671_v56 }
 0x435   : > { %v2953_v46 = vadd.f32 %v2885_v27, %v2779_v0 }
 0x436   : > { %v2887_v6 = vpop.f32.mrf.mxu3 }
 0x437   : > { %3025 = vrot.lane.b32.xlu2 %v2953_v46, %s5022_s14  ;;  %v2783_v21 = vpop.f32.mrf.mxu2  ;;  %v6336_v46 = vld [vmem:[%s6969_s2 + $0x2] ss:$0 sm:$0xff] }
 0x43a   : > { %v2673_v7 = vpop.f32.mrf.mxu1 }
 0x43b   : > { %v2781_v9 = vadd.f32 %v2780_v5, %v2673_v7 }
 0x43d   : > { %v2954_v11 = vadd.f32 %v2887_v6, %v2781_v9  ;;  %v2457_v10 = vpop.permute.xlu1 %2456 }
 0x43e   : > { %v2550_v13 = vsel %vm1117_vm10, %v2364_v22, %v2457_v10  ;;  %v2890_v29 = vpop.f32.mrf.mxu3 }
 0x43f   : > { %3027 = vrot.lane.b32.xlu0 %v2954_v11, %s5022_s14  ;;  %v2585_v2 = vsel %vm1166_vm11, %v2550_v13, %v2505_v45  ;;  %v2785_v8 = vpop.f32.mrf.mxu2 }
 0x440   : > { %4761 = vmatmul.msk.bf16.gmra.mxu1 %vm1217_vm12, %v2585_v2  ;;  %4789 = vmatmul.msk.bf16.gmra.mxu2 %vm1217_vm12, %v2585_v2 }
 0x441   : > { %4815 = vmatmul.msk.bf16.gmra.mxu3 %vm1217_vm12, %v2585_v2 }
 0x442   : > { %v2676_v4 = vpop.f32.mrf.mxu1 }
 0x443   : > { %v2784_v16 = vadd.f32 %v2783_v21, %v2676_v4 }
 0x445   : > { %v2955_v14 = vadd.f32 %v2890_v29, %v2784_v16  ;;  %v2459_v26 = vpop.permute.xlu2 %2458 }
 0x446   : > { %v2892_v25 = vpop.f32.mrf.mxu3  ;;  %v2553_v60 = vsel %vm1117_vm10, %v2365_v53, %v2459_v26 }
 0x447   : > { %3029 = vrot.lane.b32.xlu1 %v2955_v14, %s5022_s14  ;;  %v2788_v51 = vpop.f32.mrf.mxu2 }
 0x44a   : > { %v2678_v1 = vpop.f32.mrf.mxu1 }
 0x44b   : > { %v2786_v32 = vadd.f32 %v2785_v8, %v2678_v1 }
 0x44d   : > { %v2956_v17 = vadd.f32 %v2892_v25, %v2786_v32  ;;  %v2366_v32 = vsel %vm5512_vm9, 0, %v6275_v19 }
 0x44e   : > { %v2895_v3 = vpop.f32.mrf.mxu3 }
 0x44f   : > { %3031 = vrot.lane.b32.xlu2 %v2956_v17, %s5022_s14  ;;  %v2790_v20 = vpop.f32.mrf.mxu2 }
 0x452   : > { %v2681_v15 = vpop.f32.mrf.mxu1 }
 0x453   : > { %v2789_v57 = vadd.f32 %v2788_v51, %v2681_v15 }
 0x455   : > { %v2957_v55 = vadd.f32 %v2895_v3, %v2789_v57 }
 0x456   : > { %v2897_v33 = vpop.f32.mrf.mxu3 }
 0x457   : > { %3033 = vrot.lane.b32.xlu0 %v2957_v55, %s5022_s14  ;;  %v2793_v48 = vpop.f32.mrf.mxu2 }
 0x45a   : > { %v2683_v30 = vpop.f32.mrf.mxu1 }
 0x45b   : > { %v2791_v35 = vadd.f32 %v2790_v20, %v2683_v30 }
 0x45d   : > { %v2958_v39 = vadd.f32 %v2897_v33, %v2791_v35 }
 0x45e   : > { %v2900_v34 = vpop.f32.mrf.mxu3 }
 0x45f   : > { %3035 = vrot.lane.b32.xlu1 %v2958_v39, %s5022_s14  ;;  %v2795_v49 = vpop.f32.mrf.mxu2 }
 0x462   : > { %v2686_v59 = vpop.f32.mrf.mxu1 }
 0x463   : > { %v2794_v41 = vadd.f32 %v2793_v48, %v2686_v59 }
 0x465   : > { %v2959_v42 = vadd.f32 %v2900_v34, %v2794_v41 }
 0x466   : > { %v2902_v38 = vpop.f32.mrf.mxu3 }
 0x467   : > { %3037 = vrot.lane.b32.xlu2 %v2959_v42, %s5022_s14  ;;  %v2798_v54 = vpop.f32.mrf.mxu2 }
 0x468   : > { %v3010_v40 = vpop.permute.xlu0 %3009 }
 0x469   : > { %v3016_v58 = vpop.permute.xlu2 %3015  ;;  %3106 = vst.msk [vmem:[%s5078_s7] sm:$0xff] %vm3105_vm14, %v3010_v40 }
 0x46a   : > { %3109 = vst.msk [vmem:[%s5078_s7 + $0x18] sm:$0xff] %vm3105_vm14, %v3016_v58  ;;  %v2688_v12 = vpop.f32.mrf.mxu1  ;;  %v2367_v58 = vsel %vm5512_vm9, 0, %v6285_v18 }
 0x46b   : > { %v2796_v50 = vadd.f32 %v2795_v49, %v2688_v12 }
 0x46d   : > { %v2960_v47 = vadd.f32 %v2902_v38, %v2796_v50 }
 0x46e   : > { %v2905_v62 = vpop.f32.mrf.mxu3 }
 0x46f   : > { %3039 = vrot.lane.b32.xlu0 %v2960_v47, %s5022_s14  ;;  %v2800_v43 = vpop.f32.mrf.mxu2 }
 0x470   : > { %v2507_v61 = vpop.permute.xlu0 %2506  ;;  %v3138_v27 = vld [vmem:[%s5078_s7] sm:$0xff] }
 0x471   : > { %v3012_v52 = vpop.permute.xlu1 %3011  ;;  %v3018_v23 = vpop.permute.xlu2 %3017  ;;  %v2587_v36 = vsel %vm1166_vm11, %v2553_v60, %v2507_v61  ;;  %v3175_v0 = vmul.f32 %v6326_v28, %v3138_v27  ;;  %v3141_v1 = vld [vmem:[%s5078_s7 + $0x18] sm:$0xff] }
 0x472   : > { %3107 = vst.msk [vmem:[%s5078_s7 + $0x8] sm:$0xff] %vm3105_vm14, %v3012_v52  ;;  %v2691_v63 = vpop.f32.mrf.mxu1  ;;  %4762 = vmatmul.msk.bf16.gmra.mxu1 %vm1217_vm12, %v2587_v36  ;;  %4790 = vmatmul.msk.bf16.gmra.mxu2 %vm1217_vm12, %v2587_v36  ;;  %v3178_v33 = vmul.f32 %v6326_v28, %v3141_v1 }
 0x473   : > { %3110 = vst.msk [vmem:[%s5078_s7 + $0x20] sm:$0xff] %vm3105_vm14, %v3018_v23  ;;  %v2799_v37 = vadd.f32 %v2798_v54, %v2691_v63  ;;  %4816 = vmatmul.msk.bf16.gmra.mxu3 %vm1217_vm12, %v2587_v36  ;;  %v3212_v11 = vadd.f32 %v6336_v46, %v3175_v0 }
 0x474   : > { %v3215_v39 = vadd.f32 %v6336_v46, %v3178_v33 }
 0x475   : > { %v2961_v5 = vadd.f32 %v2905_v62, %v2799_v37  ;;  %v3244_v2 = vmax.f32 %v3212_v11, 0.0 }
 0x476   : > { %v2907_v56 = vpop.f32.mrf.mxu3  ;;  %v3247_v59 = vmax.f32 %v3215_v39, 0.0  ;;  %v4972_v39 = vld [vmem:[%s6972_s5 + $0xa0] sm:$0xff] }
 0x477   : > { %3041 = vrot.lane.b32.xlu1 %v2961_v5, %s5022_s14  ;;  %v2803_v10 = vpop.f32.mrf.mxu2  ;;  %4143 = vmatpush.bf16.msra.mxu2 %v4972_v39  ;;  %v6467_v39 = vld [vmem:[%s6971_s4 + $0x2] ss:$0 sm:$0xff] }
 0x479   : > { %v3014_v6 = vpop.permute.xlu1 %3013  ;;  %v3139_v21 = vld [vmem:[%s5078_s7 + $0x8] sm:$0xff] }
 0x47a   : > { %3108 = vst.msk [vmem:[%s5078_s7 + $0x10] sm:$0xff] %vm3105_vm14, %v3014_v6  ;;  %v2693_v7 = vpop.f32.mrf.mxu1  ;;  %v3176_v9 = vmul.f32 %v6326_v28, %v3139_v21  ;;  %v3142_v53 = vld [vmem:[%s5078_s7 + $0x20] sm:$0xff] }
 0x47b   : > { %v2801_v22 = vadd.f32 %v2800_v43, %v2693_v7  ;;  %v3179_v18 = vmul.f32 %v6326_v28, %v3142_v53 }
 0x47c   : > { %v3213_v45 = vadd.f32 %v6336_v46, %v3176_v9 }
 0x47d   : > { %v2962_v13 = vadd.f32 %v2907_v56, %v2801_v22  ;;  %v2511_v30 = vpop.permute.xlu2 %2510  ;;  %v3216_v27 = vadd.f32 %v6336_v46, %v3179_v18 }
 0x47e   : > { %v2910_v29 = vpop.f32.mrf.mxu3  ;;  %v3245_v8 = vmax.f32 %v3213_v45, 0.0  ;;  %v2461_v14 = vpop.permute.xlu0 %2460 }
 0x47f   : > { %3043 = vrot.lane.b32.xlu2 %v2962_v13, %s5022_s14  ;;  %v2556_v3 = vsel %vm1117_vm10, %v2366_v32, %v2461_v14  ;;  %v2805_v57 = vpop.f32.mrf.mxu2  ;;  %v3248_v6 = vmax.f32 %v3216_v27, 0.0 }
 0x480   : > { %v3276_v4 = vpack.c.bf16 %v3245_v8, %v3244_v2 }
 0x481   : > { %v3140_v16 = vld [vmem:[%s5078_s7 + $0x10] sm:$0xff] }
 0x482   : > { %v2696_v25 = vpop.f32.mrf.mxu1  ;;  %4829 = vmatmul.msk.bf16.vlgmr.msra.gmra.mxu0 %vm519_vm3, %v3276_v4  ;;  %v3177_v17 = vmul.f32 %v6326_v28, %v3140_v16 }
 0x483   : > { %v2804_v51 = vadd.f32 %v2803_v10, %v2696_v25 }
 0x484   : > { %v3214_v19 = vadd.f32 %v6336_v46, %v3177_v17 }
 0x485   : > { %v2963_v20 = vadd.f32 %v2910_v29, %v2804_v51  ;;  %v2509_v15 = vpop.permute.xlu1 %2508 }
 0x486   : > { %v2589_v55 = vsel %vm1166_vm11, %v2556_v3, %v2509_v15  ;;  %v2912_v48 = vpop.f32.mrf.mxu3  ;;  %v3246_v49 = vmax.f32 %v3214_v19, 0.0 }
 0x487   : > { %3045 = vrot.lane.b32.xlu0 %v2963_v20, %s5022_s14  ;;  %4763 = vmatmul.msk.bf16.gmra.mxu1 %vm1217_vm12, %v2589_v55  ;;  %v2808_v41 = vpop.f32.mrf.mxu2 }
 0x488   : > { %4791 = vmatmul.msk.bf16.gmra.mxu2 %vm1217_vm12, %v2589_v55  ;;  %4817 = vmatmul.msk.bf16.gmra.mxu3 %vm1217_vm12, %v2589_v55  ;;  %v3277_v38 = vpack.c.bf16 %v3247_v59, %v3246_v49 }
 0x48a   : > { %v2698_v35 = vpop.f32.mrf.mxu1 }
 0x48b   : > { %v2806_v34 = vadd.f32 %v2805_v57, %v2698_v35 }
 0x48d   : > { %v2964_v26 = vadd.f32 %v2912_v48, %v2806_v34  ;;  %v4978_v34 = vld [vmem:[%s6972_s5 + $0xd0] sm:$0xff] }
 0x48e   : > { %v2463_v42 = vpop.permute.xlu1 %2462  ;;  %v2915_v12 = vpop.f32.mrf.mxu3  ;;  %4250 = vmatpush.bf16.msra.mxu3 %v4978_v34 }
 0x48f   : > { %3047 = vrot.lane.b32.xlu1 %v2964_v26, %s5022_s14  ;;  %v2559_v47 = vsel %vm1117_vm10, %v2367_v58, %v2463_v42  ;;  %v2810_v23 = vpop.f32.mrf.mxu2 }
 0x490   : > { %v2591_v61 = vsel %vm1166_vm11, %v2559_v47, %v2511_v30 }
 0x491   : > { %v3026_v54 = vpop.permute.xlu2 %3025  ;;  %v3020_v40 = vpop.permute.xlu0 %3019 }
 0x492   : > { %3114 = vst.msk [vmem:[%s5078_s7 + $0x40] sm:$0xff] %vm3105_vm14, %v3026_v54  ;;  %v2701_v50 = vpop.f32.mrf.mxu1  ;;  %4830 = vmatmul.msk.bf16.gmra.mxu0 %vm519_vm3, %v3277_v38 }
 0x493   : > { %3111 = vst.msk [vmem:[%s5078_s7 + $0x28] sm:$0xff] %vm3105_vm14, %v3020_v40  ;;  %v2809_v62 = vadd.f32 %v2808_v41, %v2701_v50 }
 0x495   : > { %v2965_v60 = vadd.f32 %v2915_v12, %v2809_v62  ;;  %v4975_v12 = vld [vmem:[%s6972_s5 + $0xb8] sm:$0xff] }
 0x496   : > { %v2917_v5 = vpop.f32.mrf.mxu3  ;;  %4036 = vmatpush.bf16.msra.mxu1 %v4975_v12 }
 0x497   : > { %3049 = vrot.lane.b32.xlu2 %v2965_v60, %s5022_s14  ;;  %4764 = vmatmul.msk.bf16.gmra.mxu1 %vm1217_vm12, %v2591_v61  ;;  %v2813_v33 = vpop.f32.mrf.mxu2 }
 0x498   : > { %4818 = vmatmul.msk.bf16.gmra.mxu3 %vm1217_vm12, %v2591_v61 }
 0x499   : > { %v3022_v52 = vpop.permute.xlu0 %3021  ;;  %v3146_v25 = vld [vmem:[%s5078_s7 + $0x40] sm:$0xff] }
 0x49a   : > { %3112 = vst.msk [vmem:[%s5078_s7 + $0x30] sm:$0xff] %vm3105_vm14, %v3022_v52  ;;  %v2703_v36 = vpop.f32.mrf.mxu1  ;;  %v3143_v43 = vld [vmem:[%s5078_s7 + $0x28] sm:$0xff]  ;;  %v3183_v51 = vmul.f32 %v6326_v28, %v3146_v25 }
 0x49b   : > { %v2811_v63 = vadd.f32 %v2810_v23, %v2703_v36  ;;  %v3180_v37 = vmul.f32 %v6326_v28, %v3143_v43 }
 0x49c   : > { %v3220_v3 = vadd.f32 %v6336_v46, %v3183_v51 }
 0x49d   : > { %v2966_v56 = vadd.f32 %v2917_v5, %v2811_v63  ;;  %v3217_v0 = vadd.f32 %v6336_v46, %v3180_v37 }
 0x49e   : > { %v3252_v57 = vmax.f32 %v3220_v3, 0.0 }
 0x49f   : > { %3051 = vrot.lane.b32.xlu0 %v2966_v56, %s5022_s14  ;;  %v3249_v21 = vmax.f32 %v3217_v0, 0.0  ;;  %v2815_v58 = vpop.f32.mrf.mxu2 }
 0x4a1   : > { %v3024_v7 = vpop.permute.xlu1 %3023  ;;  %v3278_v9 = vpack.c.bf16 %v3249_v21, %v3248_v6  ;;  %v3144_v11 = vld [vmem:[%s5078_s7 + $0x30] sm:$0xff] }
 0x4a2   : > { %3113 = vst.msk [vmem:[%s5078_s7 + $0x38] sm:$0xff] %vm3105_vm14, %v3024_v7  ;;  %v3181_v22 = vmul.f32 %v6326_v28, %v3144_v11  ;;  %v2706_v15 = vpop.f32.mrf.mxu1 }
 0x4a3   : > { %4831 = vmatmul.msk.bf16.gmra.mxu0 %vm519_vm3, %v3278_v9  ;;  %v2814_v35 = vadd.f32 %v2813_v33, %v2706_v15 }
 0x4a4   : > { %v3218_v29 = vadd.f32 %v6336_v46, %v3181_v22 }
 0x4a6   : > { %v3250_v8 = vmax.f32 %v3218_v29, 0.0 }
 0x4a8   : > { %2939 = vmatmul.bf16.gmra.mxu3 %v5020_v31 }
 0x4a9   : > { %v3032_v10 = vpop.permute.xlu2 %3031  ;;  %v3145_v45 = vld [vmem:[%s5078_s7 + $0x38] sm:$0xff] }
 0x4aa   : > { %3117 = vst.msk [vmem:[%s5078_s7 + $0x58] sm:$0xff] %vm3105_vm14, %v3032_v10  ;;  %v3182_v13 = vmul.f32 %v6326_v28, %v3145_v45  ;;  %v2708_v38 = vpop.f32.mrf.mxu1 }
 0x4ab   : > { %v2816_v50 = vadd.f32 %v2815_v58, %v2708_v38 }
 0x4ac   : > { %v3219_v2 = vadd.f32 %v6336_v46, %v3182_v13 }
 0x4ae   : > { %v3251_v4 = vmax.f32 %v3219_v2, 0.0 }
 0x4b0   : > { %v3279_v16 = vpack.c.bf16 %v3251_v4, %v3250_v8 }
 0x4b1   : > { %v3028_v14 = vpop.permute.xlu0 %3027  ;;  %v3149_v26 = vld [vmem:[%s5078_s7 + $0x58] sm:$0xff] }
 0x4b2   : > { %3115 = vst.msk [vmem:[%s5078_s7 + $0x48] sm:$0xff] %vm3105_vm14, %v3028_v14  ;;  %v3186_v42 = vmul.f32 %v6326_v28, %v3149_v26  ;;  %v2818_v14 = vpop.f32.mrf.mxu2 }
 0x4b3   : > { %4832 = vmatmul.msk.bf16.gmra.mxu0 %vm519_vm3, %v3279_v16 }
 0x4b4   : > { %v3223_v47 = vadd.f32 %v6336_v46, %v3186_v42 }
 0x4b6   : > { %v3255_v61 = vmax.f32 %v3223_v47, 0.0 }
 0x4b9   : > { %v3030_v1 = vpop.permute.xlu1 %3029  ;;  %v3147_v32 = vld [vmem:[%s5078_s7 + $0x48] sm:$0xff] }
 0x4ba   : > { %3116 = vst.msk [vmem:[%s5078_s7 + $0x50] sm:$0xff] %vm3105_vm14, %v3030_v1  ;;  %v3184_v17 = vmul.f32 %v6326_v28, %v3147_v32 }
 0x4bc   : > { %v3221_v20 = vadd.f32 %v6336_v46, %v3184_v17 }
 0x4bd   : > { %v2711_v8 = vpop.f32.mrf.mxu1 }
 0x4be   : > { %v3253_v55 = vmax.f32 %v3221_v20, 0.0  ;;  %v2819_v1 = vadd.f32 %v2818_v14, %v2711_v8 }
 0x4c0   : > { %v3280_v48 = vpack.c.bf16 %v3253_v55, %v3252_v57 }
 0x4c1   : > { %v3038_v19 = vpop.permute.xlu2 %3037  ;;  %v3148_v30 = vld [vmem:[%s5078_s7 + $0x50] sm:$0xff] }
 0x4c2   : > { %3120 = vst.msk [vmem:[%s5078_s7 + $0x70] sm:$0xff] %vm3105_vm14, %v3038_v19  ;;  %v3185_v41 = vmul.f32 %v6326_v28, %v3148_v30 }
 0x4c3   : > { %4833 = vmatmul.msk.bf16.gmra.mxu0 %vm519_vm3, %v3280_v48  ;;  %v2820_v48 = vpop.f32.mrf.mxu2 }
 0x4c4   : > { %v2920_v49 = vpop.f32.mrf.mxu3  ;;  %v3222_v40 = vadd.f32 %v6336_v46, %v3185_v41 }
 0x4c5   : > { %v2967_v59 = vadd.f32 %v2920_v49, %v2814_v35  ;;  %v2713_v15 = vpop.f32.mrf.mxu1 }
 0x4c6   : > { %v3254_v60 = vmax.f32 %v3222_v40, 0.0  ;;  %v2821_v19 = vadd.f32 %v2820_v48, %v2713_v15 }
 0x4c7   : > { %3053 = vrot.lane.b32.xlu1 %v2967_v59, %s5022_s14 }
 0x4c8   : > { %v3281_v52 = vpack.c.bf16 %v3255_v61, %v3254_v60 }
 0x4c9   : > { %v3034_v54 = vpop.permute.xlu0 %3033  ;;  %v3152_v7 = vld [vmem:[%s5078_s7 + $0x70] sm:$0xff] }
 0x4ca   : > { %3118 = vst.msk [vmem:[%s5078_s7 + $0x60] sm:$0xff] %vm3105_vm14, %v3034_v54  ;;  %v3189_v9 = vmul.f32 %v6326_v28, %v3152_v7 }
 0x4cb   : > { %v2823_v40 = vpop.f32.mrf.mxu2 }
 0x4cc   : > { %v2922_v62 = vpop.f32.mrf.mxu3  ;;  %v3226_v45 = vadd.f32 %v6336_v46, %v3189_v9 }
 0x4cd   : > { %v2968_v53 = vadd.f32 %v2922_v62, %v2816_v50 }
 0x4ce   : > { %v3258_v29 = vmax.f32 %v3226_v45, 0.0 }
 0x4cf   : > { %3055 = vrot.lane.b32.xlu2 %v2968_v53, %s5022_s14 }
 0x4d1   : > { %v3036_v18 = vpop.permute.xlu1 %3035  ;;  %v3150_v23 = vld [vmem:[%s5078_s7 + $0x60] sm:$0xff] }
 0x4d2   : > { %3119 = vst.msk [vmem:[%s5078_s7 + $0x68] sm:$0xff] %vm3105_vm14, %v3036_v18  ;;  %v3187_v36 = vmul.f32 %v6326_v28, %v3150_v23 }
 0x4d3   : > { %4834 = vmatmul.msk.bf16.gmra.mxu0 %vm519_vm3, %v3281_v52 }
 0x4d4   : > { %v3224_v27 = vadd.f32 %v6336_v46, %v3187_v36 }
 0x4d6   : > { %v3256_v56 = vmax.f32 %v3224_v27, 0.0 }
 0x4d9   : > { %v3044_v43 = vpop.permute.xlu2 %3043  ;;  %v3151_v63 = vld [vmem:[%s5078_s7 + $0x68] sm:$0xff] }
 0x4da   : > { %3123 = vst.msk [vmem:[%s5078_s7 + $0x88] sm:$0xff] %vm3105_vm14, %v3044_v43  ;;  %v3188_v37 = vmul.f32 %v6326_v28, %v3151_v63 }
 0x4dc   : > { %v3225_v5 = vadd.f32 %v6336_v46, %v3188_v37 }
 0x4de   : > { %v3257_v0 = vmax.f32 %v3225_v5, 0.0 }
 0x4e0   : > { %v3282_v6 = vpack.c.bf16 %v3257_v0, %v3256_v56 }
 0x4e1   : > { %v3040_v21 = vpop.permute.xlu0 %3039  ;;  %v3155_v51 = vld [vmem:[%s5078_s7 + $0x88] sm:$0xff] }
 0x4e2   : > { %3121 = vst.msk [vmem:[%s5078_s7 + $0x78] sm:$0xff] %vm3105_vm14, %v3040_v21  ;;  %v3192_v20 = vmul.f32 %v6326_v28, %v3155_v51 }
 0x4e3   : > { %4835 = vmatmul.msk.bf16.gmra.mxu0 %vm519_vm3, %v3282_v6  ;;  %v2825_v6 = vpop.f32.mrf.mxu2 }
 0x4e4   : > { %v3229_v33 = vadd.f32 %v6336_v46, %v3192_v20 }
 0x4e6   : > { %v3261_v26 = vmax.f32 %v3229_v33, 0.0 }
 0x4e9   : > { %v3042_v11 = vpop.permute.xlu1 %3041  ;;  %v3153_v22 = vld [vmem:[%s5078_s7 + $0x78] sm:$0xff] }
 0x4ea   : > { %3122 = vst.msk [vmem:[%s5078_s7 + $0x80] sm:$0xff] %vm3105_vm14, %v3042_v11  ;;  %v3190_v10 = vmul.f32 %v6326_v28, %v3153_v22 }
 0x4ec   : > { %v3227_v13 = vadd.f32 %v6336_v46, %v3190_v10 }
 0x4ee   : > { %v3259_v2 = vmax.f32 %v3227_v13, 0.0 }
 0x4ef   : > { %v2716_v59 = vpop.f32.mrf.mxu1 }
 0x4f0   : > { %v3283_v4 = vpack.c.bf16 %v3259_v2, %v3258_v29  ;;  %v2824_v62 = vadd.f32 %v2823_v40, %v2716_v59 }
 0x4f1   : > { %v3050_v16 = vpop.permute.xlu2 %3049  ;;  %v3154_v25 = vld [vmem:[%s5078_s7 + $0x80] sm:$0xff] }
 0x4f2   : > { %3126 = vst.msk [vmem:[%s5078_s7 + $0xa0] sm:$0xff] %vm3105_vm14, %v3050_v16  ;;  %v3191_v32 = vmul.f32 %v6326_v28, %v3154_v25 }
 0x4f3   : > { %4836 = vmatmul.msk.bf16.gmra.mxu0 %vm519_vm3, %v3283_v4 }
 0x4f4   : > { %v3228_v55 = vadd.f32 %v6336_v46, %v3191_v32 }
 0x4f6   : > { %v2925_v17 = vpop.f32.mrf.mxu3  ;;  %v3260_v30 = vmax.f32 %v3228_v55, 0.0 }
 0x4f7   : > { %v2969_v3 = vadd.f32 %v2925_v17, %v2819_v1  ;;  %v2718_v23 = vpop.f32.mrf.mxu1  ;;  %v2828_v1 = vpop.f32.mrf.mxu2 }
 0x4f8   : > { %v3284_v42 = vpack.c.bf16 %v3261_v26, %v3260_v30  ;;  %v2826_v22 = vadd.f32 %v2825_v6, %v2718_v23 }
 0x4f9   : > { %3057 = vrot.lane.b32.xlu0 %v2969_v3, %s5022_s14  ;;  %v3046_v57 = vpop.permute.xlu0 %3045  ;;  %v3158_v45 = vld [vmem:[%s5078_s7 + $0xa0] sm:$0xff] }
 0x4fa   : > { %3124 = vst.msk [vmem:[%s5078_s7 + $0x90] sm:$0xff] %vm3105_vm14, %v3046_v57  ;;  %v3195_v14 = vmul.f32 %v6326_v28, %v3158_v45 }
 0x4fc   : > { %v3232_v20 = vadd.f32 %v6336_v46, %v3195_v14 }
 0x4fe   : > { %v2927_v35 = vpop.f32.mrf.mxu3 }
 0x4ff   : > { %v2970_v34 = vadd.f32 %v2927_v35, %v2821_v19  ;;  %v3370_v49 = vpop.f32.mrf.mxu0 }
 0x500   : > { %v3371_v38 = vadd.f32 %v6467_v39, %v3370_v49 }
 0x501   : > { %v3048_v41 = vpop.permute.xlu1 %3047  ;;  %3059 = vrot.lane.b32.xlu1 %v2970_v34, %s5022_s14  ;;  %v3156_v54 = vld [vmem:[%s5078_s7 + $0x90] sm:$0xff] }
 0x502   : > { %3125 = vst.msk [vmem:[%s5078_s7 + $0x98] sm:$0xff] %vm3105_vm14, %v3048_v41  ;;  %v3450_v58 = vmax.f32 %v3371_v38, 0.0  ;;  %v3193_v12 = vmul.f32 %v6326_v28, %v3156_v54  ;;  %v3264_v41 = vmax.f32 %v3232_v20, 0.0  ;;  %v4971_v38 = vld [vmem:[%s6972_s5 + $0x98] sm:$0xff]  ;;  %v4977_v54 = vld [vmem:[%s6972_s5 + $0xc8] sm:$0xff] }
 0x503   : > { %4837 = vmatmul.msk.bf16.gmra.mxu0 %vm519_vm3, %v3284_v42  ;;  %4144 = vmatpush.bf16.msra.mxu2 %v4971_v38 }
 0x504   : > { %v3482_v60 = vpack.c.bf16 %v3450_v58, %v3450_v58  ;;  %v3230_v52 = vadd.f32 %v6336_v46, %v3193_v12  ;;  %v2721_v29 = vpop.f32.mrf.mxu1  ;;  %4251 = vmatpush.bf16.msra.mxu3 %v4977_v54 }
 0x505   : > { %v2829_v15 = vadd.f32 %v2828_v1, %v2721_v29 }
 0x506   : > { %v3565_v27 = vunpack.c.l.b16 %v3482_v60  ;;  %v3262_v56 = vmax.f32 %v3230_v52, 0.0 }
 0x507   : > { %v3372_v50 = vpop.f32.mrf.mxu0 }
 0x508   : > { %v3373_v47 = vadd.f32 %v6467_v39, %v3372_v50  ;;  %v2830_v50 = vpop.f32.mrf.mxu2 }
 0x509   : > { %v3157_v53 = vld [vmem:[%s5078_s7 + $0x98] sm:$0xff] }
 0x50a   : > { %v3451_v61 = vmax.f32 %v3373_v47, 0.0  ;;  %v3194_v18 = vmul.f32 %v6326_v28, %v3157_v53 }
 0x50b   : > { %v2930_v36 = vpop.f32.mrf.mxu3 }
 0x50c   : > { %v3483_v43 = vpack.c.bf16 %v3451_v61, %v3451_v61  ;;  %v2971_v63 = vadd.f32 %v2930_v36, %v2824_v62  ;;  %v3231_v37 = vadd.f32 %v6336_v46, %v3194_v18  ;;  %v2723_v34 = vpop.f32.mrf.mxu1 }
 0x50d   : > { %v2831_v36 = vadd.f32 %v2830_v50, %v2723_v34 }
 0x50e   : > { %v3566_v5 = vunpack.c.l.b16 %v3483_v43  ;;  %3061 = vrot.lane.b32.xlu2 %v2971_v63, %s5022_s14  ;;  %v3263_v0 = vmax.f32 %v3231_v37, 0.0 }
 0x50f   : > { %v3375_v21 = vpop.f32.mrf.mxu0 }
 0x510   : > { %v6482_v7 = vpack.c.b16 %v3566_v5, %v3565_v27  ;;  %v3285_v9 = vpack.c.bf16 %v3263_v0, %v3262_v56  ;;  %v3376_v10 = vadd.f32 %v6467_v39, %v3375_v21  ;;  %v4974_v5 = vld [vmem:[%s6972_s5 + $0xb0] sm:$0xff]  ;;  %v2833_v21 = vpop.f32.mrf.mxu2 }
 0x511   : > { %v3052_v11 = vpop.permute.xlu0 %3051  ;;  %4037 = vmatpush.bf16.msra.mxu1 %v4974_v5 }
 0x512   : > { %3127 = vst.msk [vmem:[%s5078_s7 + $0xa8] sm:$0xff] %vm3105_vm14, %v3052_v11  ;;  %v3614_v13 = vshrl.u32 %v6482_v7, 16  ;;  %v3617_v16 = vshll.u32 %v6482_v7, 16  ;;  %v3452_v25 = vmax.f32 %v3376_v10, 0.0 }
 0x513   : > { %v2932_v2 = vpop.f32.mrf.mxu3  ;;  %4838 = vmatmul.msk.bf16.gmra.mxu0 %vm519_vm3, %v3285_v9 }
 0x514   : > { %v2972_v8 = vadd.f32 %v2932_v2, %v2826_v22  ;;  %v3616_v4 = vrot.slane %v3614_v13, 7  ;;  %v3484_v57 = vpack.c.bf16 %v3452_v25, %v3452_v25  ;;  %v3757_v49 = vrot.slane %v3617_v16, 1  ;;  %v2726_v37 = vpop.f32.mrf.mxu1 }
 0x515   : > { %v2834_v22 = vadd.f32 %v2833_v21, %v2726_v37 }
 0x516   : > { %3063 = vrot.lane.b32.xlu0 %v2972_v8, %s5022_s14  ;;  %v6493_v51 = vor.u32 %v3617_v16, %v3616_v4  ;;  %v3567_v26 = vunpack.c.l.b16 %v3484_v57  ;;  %v3758_v47 = vor.u32 %v3757_v49, %v3614_v13 }
 0x517   : > { %v3377_v32 = vpop.f32.mrf.mxu0 }
 0x518   : > { %v3378_v17 = vadd.f32 %v6467_v39, %v3377_v32  ;;  %v3805_v23 = vsel %vm5334_vm6, %v3758_v47, 0 }
 0x519   : > { %v3159_v3 = vld [vmem:[%s5078_s7 + $0xa8] sm:$0xff] }
 0x51a   : > { %v3453_v55 = vmax.f32 %v3378_v17, 0.0  ;;  %v3196_v33 = vmul.f32 %v6326_v28, %v3159_v3 }
 0x51b   : > { %v2935_v48 = vpop.f32.mrf.mxu3 }
 0x51c   : > { %v3485_v19 = vpack.c.bf16 %v3453_v55, %v3453_v55  ;;  %v2973_v30 = vadd.f32 %v2935_v48, %v2829_v15  ;;  %v3233_v35 = vadd.f32 %v6336_v46, %v3196_v33  ;;  %v2728_v17 = vpop.f32.mrf.mxu1  ;;  %v2835_v15 = vpop.f32.mrf.mxu2 }
 0x51d   : > { %v2836_v55 = vadd.f32 %v2835_v15, %v2728_v17 }
 0x51e   : > { %v3568_v59 = vunpack.c.l.b16 %v3485_v19  ;;  %3065 = vrot.lane.b32.xlu0 %v2973_v30, %s5022_s14  ;;  %v3265_v42 = vmax.f32 %v3233_v35, 0.0 }
 0x520   : > { %v3380_v40 = vpop.f32.mrf.mxu0  ;;  %v3598_v58 = vpack.c.b16 %v3568_v59, %v3567_v26  ;;  %v3286_v12 = vpack.c.bf16 %v3265_v42, %v3264_v41 }
 0x521   : > { %v3381_v60 = vadd.f32 %v6467_v39, %v3380_v40 }
 0x522   : > { %3823 = vrot.lane.b32.xlu1 %v3598_v58, %s5018_s16  ;;  %v3621_v62 = vshrl.u32 %v3598_v58, 16  ;;  %v3624_v53 = vshll.u32 %v3598_v58, 16 }
 0x523   : > { %v2937_v61 = vpop.f32.mrf.mxu3  ;;  %4839 = vmatmul.msk.bf16.gmra.mxu0 %vm519_vm3, %v3286_v12  ;;  %v3454_v27 = vmax.f32 %v3381_v60, 0.0 }
 0x524   : > { %v3623_v18 = vrot.slane %v3621_v62, 7  ;;  %v3759_v52 = vrot.slane %v3624_v53, 1  ;;  %v2974_v56 = vadd.f32 %v2937_v61, %v2831_v36 }
 0x525   : > { %v3486_v10 = vpack.c.bf16 %v3454_v27, %v3454_v27 }
 0x526   : > { %3869 = vrot.lane.b32.xlu0 %v3805_v23, %s5019_s17  ;;  %v3760_v43 = vor.u32 %v3759_v52, %v3621_v62  ;;  %v6513_v63 = vor.u32 %v3624_v53, %v3623_v18 }
 0x527   : > { %v3569_v8 = vunpack.c.l.b16 %v3486_v10 }
 0x528   : > { %v3382_v0 = vpop.f32.mrf.mxu0  ;;  %v3806_v6 = vsel %vm5334_vm6, %v3760_v43, 0 }
 0x529   : > { %v3383_v9 = vadd.f32 %v6467_v39, %v3382_v0  ;;  %v3056_v11 = vpop.permute.xlu2 %3055  ;;  %3871 = vrot.lane.b32.xlu2 %v3806_v6, %s5019_s17 }
 0x52a   : > { %3129 = vst.msk [vmem:[%s5078_s7 + $0xb8] sm:$0xff] %vm3105_vm14, %v3056_v11  ;;  %3067 = vrot.lane.b32.xlu1 %v2974_v56, %s5022_s14 }
 0x52b   : > { %v3455_v45 = vmax.f32 %v3383_v9, 0.0  ;;  %v2940_v13 = vpop.f32.mrf.mxu3 }
 0x52c   : > { %v2975_v29 = vadd.f32 %v2940_v13, %v2834_v22 }
 0x52d   : > { %v3487_v2 = vpack.c.bf16 %v3455_v45, %v3455_v45 }
 0x52e   : > { %3069 = vrot.lane.b32.xlu0 %v2975_v29, %s5022_s14 }
 0x52f   : > { %v3570_v4 = vunpack.c.l.b16 %v3487_v2 }
 0x530   : > { %v3385_v16 = vpop.f32.mrf.mxu0 }
 0x531   : > { %3821 = vrot.lane.b32.xlu2 %v6482_v7, %s5018_s16  ;;  %v3599_v14 = vpack.c.b16 %v3570_v4, %v3569_v8  ;;  %v3386_v25 = vadd.f32 %v6467_v39, %v3385_v16  ;;  %v3161_v41 = vld [vmem:[%s5078_s7 + $0xb8] sm:$0xff] }
 0x532   : > { %v3198_v38 = vmul.f32 %v6326_v28, %v3161_v41  ;;  %v4970_v41 = vld [vmem:[%s6972_s5 + $0x90] sm:$0xff] }
 0x533   : > { %3825 = vrot.lane.b32.xlu1 %v3599_v14, %s5018_s16  ;;  %v3628_v1 = vshrl.u32 %v3599_v14, 16  ;;  %v3631_v32 = vshll.u32 %v3599_v14, 16  ;;  %v2942_v57 = vpop.f32.mrf.mxu3  ;;  %v3456_v33 = vmax.f32 %v3386_v25, 0.0  ;;  %4145 = vmatpush.bf16.msra.mxu2 %v4970_v41 }
 0x534   : > { %v2976_v30 = vadd.f32 %v2942_v57, %v2836_v55  ;;  %v3235_v62 = vadd.f32 %v6336_v46, %v3198_v38 }
 0x535   : > { %v3761_v3 = vrot.slane %v3631_v32, 1  ;;  %v3630_v20 = vrot.slane %v3628_v1, 7  ;;  %v3488_v26 = vpack.c.bf16 %v3456_v33, %v3456_v33 }
 0x536   : > { %v3267_v43 = vmax.f32 %v3235_v62, 0.0  ;;  %4146 = vmatmul.bf16.vlgmr.msra.gmra.mxu2 %v5020_v31 }
 0x537   : > { %v3762_v48 = vor.u32 %v3761_v3, %v3628_v1  ;;  %v6530_v19 = vor.u32 %v3631_v32, %v3630_v20  ;;  %v3571_v54 = vunpack.c.l.b16 %v3488_v26 }
 0x538   : > { %v3387_v7 = vpop.f32.mrf.mxu0 }
 0x539   : > { %v3388_v35 = vadd.f32 %v6467_v39, %v3387_v7  ;;  %v3054_v34 = vpop.permute.xlu1 %3053  ;;  %v3807_v49 = vsel %vm5334_vm6, %v3762_v48, 0 }
 0x53a   : > { %3128 = vst.msk [vmem:[%s5078_s7 + $0xb0] sm:$0xff] %vm3105_vm14, %v3054_v34  ;;  %3873 = vrot.lane.b32.xlu2 %v3807_v49, %s5019_s17 }
 0x53b   : > { %v3457_v59 = vmax.f32 %v3388_v35, 0.0  ;;  %3071 = vrot.lane.b32.xlu1 %v2976_v30, %s5022_s14 }
 0x53d   : > { %v3489_v42 = vpack.c.bf16 %v3457_v59, %v3457_v59 }
 0x53f   : > { %v3572_v40 = vunpack.c.l.b16 %v3489_v42 }
 0x540   : > { %v3390_v58 = vpop.f32.mrf.mxu0 }
 0x541   : > { %v3600_v12 = vpack.c.b16 %v3572_v40, %v3571_v54  ;;  %v3160_v50 = vld [vmem:[%s5078_s7 + $0xb0] sm:$0xff]  ;;  %v3391_v53 = vadd.f32 %v6467_v39, %v3390_v58 }
 0x542   : > { %v3197_v47 = vmul.f32 %v6326_v28, %v3160_v50 }
 0x543   : > { %3827 = vrot.lane.b32.xlu2 %v3600_v12, %s5018_s16  ;;  %v3635_v60 = vshrl.u32 %v3600_v12, 16  ;;  %v3638_v61 = vshll.u32 %v3600_v12, 16  ;;  %v3458_v37 = vmax.f32 %v3391_v53, 0.0 }
 0x544   : > { %v3234_v18 = vadd.f32 %v6336_v46, %v3197_v47 }
 0x545   : > { %v3763_v52 = vrot.slane %v3638_v61, 1  ;;  %v3637_v23 = vrot.slane %v3635_v60, 7  ;;  %v3490_v9 = vpack.c.bf16 %v3458_v37, %v3458_v37 }
 0x546   : > { %v3266_v36 = vmax.f32 %v3234_v18, 0.0 }
 0x547   : > { %v3764_v27 = vor.u32 %v3763_v52, %v3635_v60  ;;  %v6547_v5 = vor.u32 %v3638_v61, %v3637_v23  ;;  %v3573_v10 = vunpack.c.l.b16 %v3490_v9  ;;  %v4973_v9 = vld [vmem:[%s6972_s5 + $0xa8] sm:$0xff] }
 0x548   : > { %v3392_v56 = vpop.f32.mrf.mxu0  ;;  %v3287_v0 = vpack.c.bf16 %v3267_v43, %v3266_v36  ;;  %4038 = vmatpush.bf16.msra.mxu1 %v4973_v9  ;;  %v3742_v9 = vsel %vm5512_vm9, 0, %v6513_v63 }
 0x549   : > { %v3393_v6 = vadd.f32 %v6467_v39, %v3392_v56  ;;  %v3808_v21 = vsel %vm5334_vm6, %v3764_v27, 0  ;;  %v4976_v56 = vld [vmem:[%s6972_s5 + $0xc0] sm:$0xff] }
 0x54a   : > { %3875 = vrot.lane.b32.xlu0 %v3808_v21, %s5019_s17  ;;  %4840 = vmatmul.msk.bf16.gmra.mxu0 %vm519_vm3, %v3287_v0 }
 0x54b   : > { %v3459_v11 = vmax.f32 %v3393_v6, 0.0  ;;  %4252 = vmatpush.bf16.msra.mxu3 %v4976_v56 }
 0x54d   : > { %v3491_v22 = vpack.c.bf16 %v3459_v11, %v3459_v11 }
 0x54f   : > { %v3574_v45 = vunpack.c.l.b16 %v3491_v22 }
 0x550   : > { %v3395_v13 = vpop.f32.mrf.mxu0 }
 0x551   : > { %v3601_v29 = vpack.c.b16 %v3574_v45, %v3573_v10  ;;  %v3396_v2 = vadd.f32 %v6467_v39, %v3395_v13 }
 0x553   : > { %3829 = vrot.lane.b32.xlu1 %v3601_v29, %s5018_s16  ;;  %v3642_v8 = vshrl.u32 %v3601_v29, 16  ;;  %v3645_v4 = vshll.u32 %v3601_v29, 16  ;;  %v3460_v25 = vmax.f32 %v3396_v2, 0.0 }
 0x555   : > { %v3765_v16 = vrot.slane %v3645_v4, 1  ;;  %v3644_v14 = vrot.slane %v3642_v8, 7  ;;  %v3492_v15 = vpack.c.bf16 %v3460_v25, %v3460_v25 }
 0x557   : > { %v3766_v1 = vor.u32 %v3765_v16, %v3642_v8  ;;  %v6556_v32 = vor.u32 %v3645_v4, %v3644_v14  ;;  %v3575_v33 = vunpack.c.l.b16 %v3492_v15 }
 0x558   : > { %v3397_v17 = vpop.f32.mrf.mxu0 }
 0x559   : > { %v3398_v3 = vadd.f32 %v6467_v39, %v3397_v17  ;;  %v3809_v20 = vsel %vm5334_vm6, %v3766_v1, 0 }
 0x55a   : > { %3877 = vrot.lane.b32.xlu2 %v3809_v20, %s5019_s17 }
 0x55b   : > { %v3461_v57 = vmax.f32 %v3398_v3, 0.0 }
 0x55d   : > { %v3493_v55 = vpack.c.bf16 %v3461_v57, %v3461_v57 }
 0x55f   : > { %v3576_v48 = vunpack.c.l.b16 %v3493_v55 }
 0x560   : > { %v3400_v7 = vpop.f32.mrf.mxu0 }
 0x561   : > { %v3602_v30 = vpack.c.b16 %v3576_v48, %v3575_v33  ;;  %v3401_v35 = vadd.f32 %v6467_v39, %v3400_v7 }
 0x563   : > { %3831 = vrot.lane.b32.xlu0 %v3602_v30, %s5018_s16  ;;  %v3649_v34 = vshrl.u32 %v3602_v30, 16  ;;  %v3652_v49 = vshll.u32 %v3602_v30, 16  ;;  %v3462_v42 = vmax.f32 %v3401_v35, 0.0 }
 0x565   : > { %v3651_v26 = vrot.slane %v3649_v34, 7  ;;  %v3767_v59 = vrot.slane %v3652_v49, 1  ;;  %v3494_v47 = vpack.c.bf16 %v3462_v42, %v3462_v42 }
 0x567   : > { %v3768_v38 = vor.u32 %v3767_v59, %v3649_v34  ;;  %v6567_v54 = vor.u32 %v3652_v49, %v3651_v26  ;;  %v3577_v61 = vunpack.c.l.b16 %v3494_v47 }
 0x568   : > { %v3062_v40 = vpop.permute.xlu2 %3061  ;;  %v3402_v58 = vpop.f32.mrf.mxu0 }
 0x569   : > { %3132 = vst.msk [vmem:[%s5078_s7 + $0xd0] sm:$0xff] %vm3105_vm14, %v3062_v40  ;;  %v3403_v12 = vadd.f32 %v6467_v39, %v3402_v58  ;;  %v3810_v50 = vsel %vm5334_vm6, %v3768_v38, 0 }
 0x56a   : > { %3879 = vrot.lane.b32.xlu1 %v3810_v50, %s5019_s17 }
 0x56b   : > { %v3463_v62 = vmax.f32 %v3403_v12, 0.0  ;;  %v3058_v53 = vpop.permute.xlu0 %3057 }
 0x56c   : > { %3130 = vst.msk [vmem:[%s5078_s7 + $0xc0] sm:$0xff] %vm3105_vm14, %v3058_v53 }
 0x56d   : > { %v3495_v60 = vpack.c.bf16 %v3463_v62, %v3463_v62 }
 0x56f   : > { %v3578_v18 = vunpack.c.l.b16 %v3495_v60 }
 0x570   : > { %v3405_v52 = vpop.f32.mrf.mxu0  ;;  %v3164_v12 = vld [vmem:[%s5078_s7 + $0xd0] sm:$0xff] }
 0x571   : > { %v3603_v23 = vpack.c.b16 %v3578_v18, %v3577_v61  ;;  %v3406_v36 = vadd.f32 %v6467_v39, %v3405_v52  ;;  %v3201_v60 = vmul.f32 %v6326_v28, %v3164_v12 }
 0x573   : > { %3833 = vrot.lane.b32.xlu2 %v3603_v23, %s5018_s16  ;;  %v3060_v43 = vpop.permute.xlu1 %3059  ;;  %v3656_v37 = vshrl.u32 %v3603_v23, 16  ;;  %v3659_v27 = vshll.u32 %v3603_v23, 16  ;;  %v3162_v21 = vld [vmem:[%s5078_s7 + $0xc0] sm:$0xff]  ;;  %v3464_v11 = vmax.f32 %v3406_v36, 0.0 }
 0x574   : > { %3131 = vst.msk [vmem:[%s5078_s7 + $0xc8] sm:$0xff] %vm3105_vm14, %v3060_v43  ;;  %v3199_v13 = vmul.f32 %v6326_v28, %v3162_v21 }
 0x575   : > { %v3769_v0 = vrot.slane %v3659_v27, 1  ;;  %v3658_v6 = vrot.slane %v3656_v37, 7  ;;  %v3496_v8 = vpack.c.bf16 %v3464_v11, %v3464_v11 }
 0x576   : > { %v3236_v25 = vadd.f32 %v6336_v46, %v3199_v13 }
 0x577   : > { %v3770_v22 = vor.u32 %v3769_v0, %v3656_v37  ;;  %v6589_v10 = vor.u32 %v3659_v27, %v3658_v6  ;;  %v3579_v3 = vunpack.c.l.b16 %v3496_v8  ;;  %v3238_v27 = vadd.f32 %v6336_v46, %v3201_v60 }
 0x578   : > { %v3407_v45 = vpop.f32.mrf.mxu0  ;;  %v3268_v57 = vmax.f32 %v3236_v25, 0.0 }
 0x579   : > { %v3408_v29 = vadd.f32 %v6467_v39, %v3407_v45  ;;  %v3811_v2 = vsel %vm5334_vm6, %v3770_v22, 0  ;;  %v3270_v13 = vmax.f32 %v3238_v27, 0.0 }
 0x57a   : > { %3881 = vrot.lane.b32.xlu0 %v3811_v2, %s5019_s17 }
 0x57b   : > { %v3465_v4 = vmax.f32 %v3408_v29, 0.0  ;;  %v3163_v16 = vld [vmem:[%s5078_s7 + $0xc8] sm:$0xff] }
 0x57c   : > { %v3200_v14 = vmul.f32 %v6326_v28, %v3163_v16 }
 0x57d   : > { %v3497_v1 = vpack.c.bf16 %v3465_v4, %v3465_v4 }
 0x57e   : > { %v3237_v17 = vadd.f32 %v6336_v46, %v3200_v14 }
 0x57f   : > { %v3580_v20 = vunpack.c.l.b16 %v3497_v1 }
 0x580   : > { %v3410_v15 = vpop.f32.mrf.mxu0  ;;  %v3269_v55 = vmax.f32 %v3237_v17, 0.0 }
 0x581   : > { %v3604_v33 = vpack.c.b16 %v3580_v20, %v3579_v3  ;;  %v3411_v7 = vadd.f32 %v6467_v39, %v3410_v15 }
 0x582   : > { %v3288_v48 = vpack.c.bf16 %v3269_v55, %v3268_v57 }
 0x583   : > { %3835 = vrot.lane.b32.xlu1 %v3604_v33, %s5018_s16  ;;  %v3663_v30 = vshrl.u32 %v3604_v33, 16  ;;  %v3666_v35 = vshll.u32 %v3604_v33, 16  ;;  %v3466_v26 = vmax.f32 %v3411_v7, 0.0  ;;  %v3872_v47 = vpop.permute.xlu2 %3871 }
 0x584   : > { %4841 = vmatmul.msk.bf16.gmra.mxu0 %vm519_vm3, %v3288_v48 }
 0x585   : > { %v3771_v34 = vrot.slane %v3666_v35, 1  ;;  %v3665_v49 = vrot.slane %v3663_v30, 7  ;;  %v3498_v50 = vpack.c.bf16 %v3466_v26, %v3466_v26  ;;  %v5006_v26 = vld [vmem:[%s6968_s1 + $0x2] ss:$0 sm:$0xff] }
 0x587   : > { %v3772_v59 = vor.u32 %v3771_v34, %v3663_v30  ;;  %v6603_v41 = vor.u32 %v3666_v35, %v3665_v49  ;;  %v3581_v61 = vunpack.c.l.b16 %v3498_v50 }
 0x588   : > { %v3412_v42 = vpop.f32.mrf.mxu0  ;;  %v3064_v38 = vpop.permute.xlu0 %3063 }
 0x589   : > { %v3413_v40 = vadd.f32 %v6467_v39, %v3412_v42  ;;  %3133 = vst.msk [vmem:[%s5078_s7 + $0xd8] sm:$0xff] %vm3105_vm14, %v3064_v38  ;;  %v3812_v58 = vsel %vm5334_vm6, %v3772_v59, 0 }
 0x58a   : > { %3883 = vrot.lane.b32.xlu2 %v3812_v58, %s5019_s17  ;;  %v3743_v58 = vsel %vm5512_vm9, 0, %v6530_v19 }
 0x58b   : > { %v3467_v62 = vmax.f32 %v3413_v40, 0.0  ;;  %v3822_v22 = vpop.permute.xlu2 %3821 }
 0x58d   : > { %v3499_v53 = vpack.c.bf16 %v3467_v62, %v3467_v62 }
 0x58f   : > { %v3582_v18 = vunpack.c.l.b16 %v3499_v53  ;;  %v5007_v53 = vld [vmem:[%s6969_s2 + $0x2] ss:$0 sm:$0xff] }
 0x590   : > { %v3415_v52 = vpop.f32.mrf.mxu0  ;;  %v3066_v23 = vpop.permute.xlu0 %3065  ;;  %v3165_v36 = vld [vmem:[%s5078_s7 + $0xd8] sm:$0xff] }
 0x591   : > { %3134 = vst.msk [vmem:[%s5078_s7 + $0xe0] sm:$0xff] %vm3105_vm14, %v3066_v23  ;;  %v3605_v43 = vpack.c.b16 %v3582_v18, %v3581_v61  ;;  %v3202_v37 = vmul.f32 %v6326_v28, %v3165_v36  ;;  %v3416_v56 = vadd.f32 %v6467_v39, %v3415_v52 }
 0x593   : > { %3837 = vrot.lane.b32.xlu0 %v3605_v43, %s5018_s16  ;;  %v3239_v0 = vadd.f32 %v6336_v46, %v3202_v37  ;;  %v3670_v6 = vshrl.u32 %v3605_v43, 16  ;;  %v3673_v21 = vshll.u32 %v3605_v43, 16  ;;  %v3741_v46 = vsel %vm5512_vm9, 0, %v6493_v51 }
 0x594   : > { %v3824_v11 = vpop.permute.xlu1 %3823  ;;  %v3468_v4 = vmax.f32 %v3416_v56, 0.0  ;;  %v3903_v63 = vsel %vm1117_vm10, %v3741_v46, %v3822_v22  ;;  %v3874_v18 = vpop.permute.xlu2 %3873 }
 0x595   : > { %v3906_v45 = vsel %vm1117_vm10, %v3742_v9, %v3824_v11  ;;  %v3271_v28 = vmax.f32 %v3239_v0, 0.0  ;;  %v3672_v29 = vrot.slane %v3670_v6, 7  ;;  %v3773_v8 = vrot.slane %v3673_v21, 1 }
 0x596   : > { %v3952_v2 = vsel %vm1166_vm11, %v3906_v45, %v3872_v47  ;;  %v3500_v15 = vpack.c.bf16 %v3468_v4, %v3468_v4 }
 0x597   : > { %4930 = vmatmul.msk.bf16.vlgmr.msra.gmra.mxu3 %vm1217_vm12, %v3952_v2  ;;  %v3289_v16 = vpack.c.bf16 %v3271_v28, %v3270_v13  ;;  %v6630_v14 = vor.u32 %v3673_v21, %v3672_v29  ;;  %v3774_v17 = vor.u32 %v3773_v8, %v3670_v6 }
 0x598   : > { %v3417_v25 = vpop.f32.mrf.mxu0  ;;  %v3870_v1 = vpop.permute.xlu0 %3869  ;;  %v3166_v48 = vld [vmem:[%s5078_s7 + $0xe0] sm:$0xff]  ;;  %v3583_v7 = vunpack.c.l.b16 %v3500_v15 }
 0x599   : > { %v3418_v3 = vadd.f32 %v6467_v39, %v3417_v25  ;;  %v3950_v20 = vsel %vm1166_vm11, %v3903_v63, %v3870_v1  ;;  %4842 = vmatmul.msk.bf16.gmra.mxu0 %vm519_vm3, %v3289_v16  ;;  %v3813_v51 = vsel %vm5334_vm6, %v3774_v17, 0  ;;  %v3203_v59 = vmul.f32 %v5006_v26, %v3166_v48 }
 0x59a   : > { %4875 = vmatmul.msk.bf16.vlgmr.msra.gmra.mxu1 %vm1217_vm12, %v3950_v20  ;;  %4903 = vmatmul.msk.bf16.gmra.mxu2 %vm1217_vm12, %v3950_v20 }
 0x59b   : > { %v3469_v57 = vmax.f32 %v3418_v3, 0.0  ;;  %3885 = vrot.lane.b32.xlu1 %v3813_v51, %s5019_s17  ;;  %v3240_v60 = vadd.f32 %v5007_v53, %v3203_v59 }
 0x59c   : > { %v3068_v55 = vpop.permute.xlu1 %3067 }
 0x59d   : > { %v3501_v33 = vpack.c.bf16 %v3469_v57, %v3469_v57  ;;  %3135 = vst.msk [vmem:[%s5078_s7 + $0xe8] sm:$0xff] %vm3105_vm14, %v3068_v55  ;;  %v3272_v6 = vmax.f32 %v3240_v60, 0.0  ;;  %v3828_v57 = vpop.permute.xlu2 %3827 }
 0x59f   : > { %v3584_v30 = vunpack.c.l.b16 %v3501_v33 }
 0x5a0   : > { %v3420_v35 = vpop.f32.mrf.mxu0  ;;  %v3070_v34 = vpop.permute.xlu0 %3069 }
 0x5a1   : > { %3136 = vst.msk [vmem:[%s5078_s7 + $0xf0] sm:$0xff] %vm3105_vm14, %v3070_v34  ;;  %v3606_v49 = vpack.c.b16 %v3584_v30, %v3583_v7  ;;  %v3421_v42 = vadd.f32 %v6467_v39, %v3420_v35  ;;  %v3744_v7 = vsel %vm5512_vm9, 0, %v6547_v5 }
 0x5a2   : > { %v3912_v30 = vsel %vm1117_vm10, %v3744_v7, %v3828_v57 }
 0x5a3   : > { %3839 = vrot.lane.b32.xlu2 %v3606_v49, %s5018_s16  ;;  %v3680_v38 = vshll.u32 %v3606_v49, 16  ;;  %v3677_v40 = vshrl.u32 %v3606_v49, 16  ;;  %v3470_v23 = vmax.f32 %v3421_v42, 0.0  ;;  %v3745_v42 = vsel %vm5512_vm9, 0, %v6556_v32 }
 0x5a4   : > { %v3167_v12 = vld [vmem:[%s5078_s7 + $0xe8] sm:$0xff] }
 0x5a5   : > { %v3826_v50 = vpop.permute.xlu1 %3825  ;;  %v3775_v47 = vrot.slane %v3680_v38, 1  ;;  %v3204_v62 = vmul.f32 %v5006_v26, %v3167_v12  ;;  %v3679_v61 = vrot.slane %v3677_v40, 7  ;;  %v3502_v9 = vpack.c.bf16 %v3470_v23, %v3470_v23 }
 0x5a6   : > { %v3909_v52 = vsel %vm1117_vm10, %v3743_v58, %v3826_v50 }
 0x5a7   : > { %v3954_v36 = vsel %vm1166_vm11, %v3909_v52, %v3874_v18  ;;  %v3776_v43 = vor.u32 %v3775_v47, %v3677_v40  ;;  %v3241_v37 = vadd.f32 %v5007_v53, %v3204_v62  ;;  %v6661_v19 = vor.u32 %v3680_v38, %v3679_v61 }
 0x5a8   : > { %v3422_v27 = vpop.f32.mrf.mxu0  ;;  %4931 = vmatmul.msk.bf16.gmra.mxu3 %vm1217_vm12, %v3954_v36  ;;  %v3585_v28 = vunpack.c.l.b16 %v3502_v9  ;;  %v3168_v8 = vld [vmem:[%s5078_s7 + $0xf0] sm:$0xff] }
 0x5a9   : > { %v3423_v56 = vadd.f32 %v6467_v39, %v3422_v27  ;;  %v3814_v0 = vsel %vm5334_vm6, %v3776_v43, 0  ;;  %v3273_v21 = vmax.f32 %v3241_v37, 0.0  ;;  %v3205_v4 = vmul.f32 %v5006_v26, %v3168_v8 }
 0x5aa   : > { %3887 = vrot.lane.b32.xlu0 %v3814_v0, %s5019_s17  ;;  %4876 = vmatmul.msk.bf16.gmra.mxu1 %vm1217_vm12, %v3952_v2  ;;  %v3746_v43 = vsel %vm5512_vm9, 0, %v6567_v54  ;;  %v3748_v8 = vsel %vm5512_vm9, 0, %v6603_v41 }
 0x5ab   : > { %v3471_v11 = vmax.f32 %v3423_v56, 0.0  ;;  %4904 = vmatmul.msk.bf16.gmra.mxu2 %vm1217_vm12, %v3952_v2  ;;  %v3290_v22 = vpack.c.bf16 %v3273_v21, %v3272_v6  ;;  %v3242_v3 = vadd.f32 %v5007_v53, %v3205_v4 }
 0x5ad   : > { %v3503_v45 = vpack.c.bf16 %v3471_v11, %v3471_v11  ;;  %v3072_v13 = vpop.permute.xlu1 %3071  ;;  %4843 = vmatmul.msk.bf16.gmra.mxu0 %vm519_vm3, %v3290_v22  ;;  %v3274_v33 = vmax.f32 %v3242_v3, 0.0  ;;  %v3747_v22 = vsel %vm5512_vm9, 0, %v6589_v10 }
 0x5ae   : > { %3137 = vst.msk [vmem:[%s5078_s7 + $0xf8] sm:$0xff] %vm3105_vm14, %v3072_v13 }
 0x5af   : > { %v3586_v29 = vunpack.c.l.b16 %v3503_v45 }
 0x5b1   : > { %v3607_v46 = vpack.c.b16 %v3586_v29, %v3585_v28 }
 0x5b3   : > { %v3687_v16 = vshll.u32 %v3607_v46, 16  ;;  %3841 = vrot.lane.b32.xlu1 %v3607_v46, %s5018_s16  ;;  %v3684_v63 = vshrl.u32 %v3607_v46, 16 }
 0x5b4   : > { %v3878_v40 = vpop.permute.xlu2 %3877 }
 0x5b5   : > { %v3777_v25 = vrot.slane %v3687_v16, 1  ;;  %v3169_v1 = vld [vmem:[%s5078_s7 + $0xf8] sm:$0xff]  ;;  %v3686_v17 = vrot.slane %v3684_v63, 7 }
 0x5b6   : > { %v3206_v2 = vmul.f32 %v5006_v26, %v3169_v1 }
 0x5b7   : > { %v3778_v20 = vor.u32 %v3777_v25, %v3684_v63  ;;  %v6675_v51 = vor.u32 %v3687_v16, %v3686_v17 }
 0x5b8   : > { %v3243_v15 = vadd.f32 %v5007_v53, %v3206_v2 }
 0x5b9   : > { %v3815_v55 = vsel %vm5334_vm6, %v3778_v20, 0  ;;  %v6730_v17 = vpop.f32.mrf.mxu2  ;;  %v3749_v20 = vsel %vm5512_vm9, 0, %v6630_v14 }
 0x5ba   : > { %3889 = vrot.lane.b32.xlu2 %v3815_v55, %s5019_s17  ;;  %4877 = vmatmul.msk.bf16.gmra.mxu1 %vm1217_vm12, %v3954_v36  ;;  %v3275_v48 = vmax.f32 %v3243_v15, 0.0 }
 0x5bb   : > { %4905 = vmatmul.msk.bf16.gmra.mxu2 %vm1217_vm12, %v3954_v36 }
 0x5bc   : > { %v3876_v35 = vpop.permute.xlu0 %3875  ;;  %v3291_v34 = vpack.c.bf16 %v3275_v48, %v3274_v33 }
 0x5bd   : > { %v3956_v49 = vsel %vm1166_vm11, %v3912_v30, %v3876_v35 }
 0x5be   : > { %4844 = vmatmul.msk.bf16.gmra.mxu0 %vm519_vm3, %v3291_v34  ;;  %4932 = vmatmul.msk.bf16.gmra.mxu3 %vm1217_vm12, %v3956_v49 }
 0x5c1   : > { %v6741_v34 = vpop.f32.mrf.mxu2 }
 0x5c5   : > { %v3830_v26 = vpop.permute.xlu1 %3829 }
 0x5c6   : > { %v3915_v5 = vsel %vm1117_vm10, %v3745_v42, %v3830_v26 }
 0x5c7   : > { %v3425_v59 = vpop.f32.mrf.mxu0  ;;  %v3958_v58 = vsel %vm1166_vm11, %v3915_v5, %v3878_v40 }
 0x5c8   : > { %v3426_v38 = vadd.f32 %v6467_v39, %v3425_v59 }
 0x5ca   : > { %4878 = vmatmul.msk.bf16.gmra.mxu1 %vm1217_vm12, %v3956_v49  ;;  %v3472_v12 = vmax.f32 %v3426_v38, 0.0 }
 0x5cb   : > { %4906 = vmatmul.msk.bf16.gmra.mxu2 %vm1217_vm12, %v3956_v49 }
 0x5cc   : > { %v3504_v62 = vpack.c.bf16 %v3472_v12, %v3472_v12 }
 0x5cd   : > { %v3834_v54 = vpop.permute.xlu2 %3833 }
 0x5ce   : > { %4933 = vmatmul.msk.bf16.gmra.mxu3 %vm1217_vm12, %v3958_v58  ;;  %v3587_v60 = vunpack.c.l.b16 %v3504_v62  ;;  %v3921_v45 = vsel %vm1117_vm10, %v3747_v22, %v3834_v54 }
 0x5cf   : > { %v3427_v50 = vpop.f32.mrf.mxu0 }
 0x5d0   : > { %v3428_v47 = vadd.f32 %v6467_v39, %v3427_v50 }
 0x5d2   : > { %v3473_v53 = vmax.f32 %v3428_v47, 0.0  ;;  %v3750_v47 = vsel %vm5512_vm9, 0, %v6661_v19 }
 0x5d4   : > { %v3505_v32 = vpack.c.bf16 %v3473_v53, %v3473_v53 }
 0x5d5   : > { %v3832_v52 = vpop.permute.xlu0 %3831 }
 0x5d6   : > { %v3588_v61 = vunpack.c.l.b16 %v3505_v32  ;;  %v3918_v37 = vsel %vm1117_vm10, %v3746_v43, %v3832_v52 }
 0x5d8   : > { %v3608_v18 = vpack.c.b16 %v3588_v61, %v3587_v60 }
 0x5da   : > { %v3694_v23 = vshll.u32 %v3608_v18, 16  ;;  %3843 = vrot.lane.b32.xlu0 %v3608_v18, %s5018_s16  ;;  %4879 = vmatmul.msk.bf16.gmra.mxu1 %vm1217_vm12, %v3958_v58  ;;  %v3691_v36 = vshrl.u32 %v3608_v18, 16 }
 0x5db   : > { %4907 = vmatmul.msk.bf16.gmra.mxu2 %vm1217_vm12, %v3958_v58 }
 0x5dc   : > { %v3880_v27 = vpop.permute.xlu1 %3879  ;;  %v3779_v56 = vrot.slane %v3694_v23, 1  ;;  %v3693_v0 = vrot.slane %v3691_v36, 7 }
 0x5dd   : > { %v3960_v6 = vsel %vm1166_vm11, %v3918_v37, %v3880_v27 }
 0x5de   : > { %4934 = vmatmul.msk.bf16.gmra.mxu3 %vm1217_vm12, %v3960_v6  ;;  %v3780_v21 = vor.u32 %v3779_v56, %v3691_v36  ;;  %v6708_v9 = vor.u32 %v3694_v23, %v3693_v0 }
 0x5e0   : > { %v3816_v11 = vsel %vm5334_vm6, %v3780_v21, 0 }
 0x5e1   : > { %3891 = vrot.lane.b32.xlu1 %v3816_v11, %s5019_s17 }
 0x5e4   : > { %v3884_v10 = vpop.permute.xlu2 %3883 }
 0x5ea   : > { %4880 = vmatmul.msk.bf16.gmra.mxu1 %vm1217_vm12, %v3960_v6 }
 0x5eb   : > { %4908 = vmatmul.msk.bf16.gmra.mxu2 %vm1217_vm12, %v3960_v6 }
 0x5ec   : > { %v3882_v13 = vpop.permute.xlu0 %3881 }
 0x5ed   : > { %v3962_v28 = vsel %vm1166_vm11, %v3921_v45, %v3882_v13  ;;  %v3751_v45 = vsel %vm5512_vm9, 0, %v6675_v51 }
 0x5ee   : > { %4935 = vmatmul.msk.bf16.gmra.mxu3 %vm1217_vm12, %v3962_v28 }
 0x5f5   : > { %v3836_v29 = vpop.permute.xlu1 %3835 }
 0x5f6   : > { %v3924_v46 = vsel %vm1117_vm10, %v3748_v8, %v3836_v29 }
 0x5f7   : > { %v3964_v4 = vsel %vm1166_vm11, %v3924_v46, %v3884_v10  ;;  %v5008_v10 = vld [vmem:[%s6971_s4 + $0x2] ss:$0 sm:$0xff] }
 0x5fa   : > { %4881 = vmatmul.msk.bf16.gmra.mxu1 %vm1217_vm12, %v3962_v28 }
 0x5fb   : > { %4909 = vmatmul.msk.bf16.gmra.mxu2 %vm1217_vm12, %v3962_v28 }
 0x5fd   : > { %v3840_v58 = vpop.permute.xlu2 %3839 }
 0x5fe   : > { %4936 = vmatmul.msk.bf16.gmra.mxu3 %vm1217_vm12, %v3964_v4  ;;  %v3930_v53 = vsel %vm1117_vm10, %v3750_v47, %v3840_v58 }
 0x601   : > { %v3430_v16 = vpop.f32.mrf.mxu0 }
 0x602   : > { %v3431_v63 = vadd.f32 %v6467_v39, %v3430_v16 }
 0x604   : > { %v3474_v25 = vmax.f32 %v3431_v63, 0.0 }
 0x605   : > { %v3838_v2 = vpop.permute.xlu0 %3837 }
 0x606   : > { %v3506_v3 = vpack.c.bf16 %v3474_v25, %v3474_v25  ;;  %v3927_v57 = vsel %vm1117_vm10, %v3749_v20, %v3838_v2 }
 0x608   : > { %v3589_v7 = vunpack.c.l.b16 %v3506_v3 }
 0x609   : > { %v3432_v1 = vpop.f32.mrf.mxu0 }
 0x60a   : > { %v3433_v41 = vadd.f32 %v6467_v39, %v3432_v1  ;;  %4882 = vmatmul.msk.bf16.gmra.mxu1 %vm1217_vm12, %v3964_v4 }
 0x60b   : > { %4910 = vmatmul.msk.bf16.gmra.mxu2 %vm1217_vm12, %v3964_v4 }
 0x60c   : > { %v3475_v15 = vmax.f32 %v3433_v41, 0.0 }
 0x60d   : > { %v3886_v55 = vpop.permute.xlu1 %3885 }
 0x60e   : > { %v3507_v33 = vpack.c.bf16 %v3475_v15, %v3475_v15  ;;  %v3966_v48 = vsel %vm1166_vm11, %v3927_v57, %v3886_v55 }
 0x60f   : > { %4937 = vmatmul.msk.bf16.gmra.mxu3 %vm1217_vm12, %v3966_v48 }
 0x610   : > { %v3590_v30 = vunpack.c.l.b16 %v3507_v33 }
 0x612   : > { %v3609_v35 = vpack.c.b16 %v3590_v30, %v3589_v7 }
 0x614   : > { %v3701_v49 = vshll.u32 %v3609_v35, 16  ;;  %3845 = vrot.lane.b32.xlu2 %v3609_v35, %s5018_s16  ;;  %v3698_v26 = vshrl.u32 %v3609_v35, 16  ;;  %v3890_v46 = vpop.permute.xlu2 %3889 }
 0x616   : > { %v3435_v59 = vpop.f32.mrf.mxu0  ;;  %v3781_v14 = vrot.slane %v3701_v49, 1  ;;  %v3700_v42 = vrot.slane %v3698_v26, 7 }
 0x617   : > { %v6744_v5 = vpop.f32.mrf.mxu1  ;;  %v3436_v12 = vadd.f32 %v6467_v39, %v3435_v59 }
 0x618   : > { %v3782_v38 = vor.u32 %v3781_v14, %v3698_v26  ;;  %v6746_v40 = vor.u32 %v3701_v49, %v3700_v42 }
 0x619   : > { %v3476_v60 = vmax.f32 %v3436_v12, 0.0 }
 0x61a   : > { %4883 = vmatmul.msk.bf16.gmra.mxu1 %vm1217_vm12, %v3966_v48  ;;  %v3817_v50 = vsel %vm5334_vm6, %v3782_v38, 0  ;;  %v6756_v62 = vpop.f32.mrf.mxu3 }
 0x61b   : > { %4911 = vmatmul.msk.bf16.gmra.mxu2 %vm1217_vm12, %v3966_v48  ;;  %3893 = vrot.lane.b32.xlu0 %v3817_v50, %s5019_s17  ;;  %v3508_v36 = vpack.c.bf16 %v3476_v60, %v3476_v60 }
 0x61c   : > { %v3888_v32 = vpop.permute.xlu0 %3887 }
 0x61d   : > { %v3968_v61 = vsel %vm1166_vm11, %v3930_v53, %v3888_v32  ;;  %v6761_v18 = vpop.f32.mrf.mxu2  ;;  %v3591_v27 = vunpack.c.l.b16 %v3508_v36 }
 0x61e   : > { %v3437_v52 = vpop.f32.mrf.mxu0 }
 0x61f   : > { %v3438_v23 = vadd.f32 %v6467_v39, %v3437_v52  ;;  %4938 = vmatmul.msk.bf16.gmra.mxu3 %vm1217_vm12, %v3968_v61  ;;  %v6765_v19 = vpop.f32.mrf.mxu1 }
 0x621   : > { %v3477_v43 = vmax.f32 %v3438_v23, 0.0 }
 0x622   : > { %v6767_v0 = vpop.f32.mrf.mxu3 }
 0x623   : > { %v3509_v37 = vpack.c.bf16 %v3477_v43, %v3477_v43 }
 0x625   : > { %v3592_v56 = vunpack.c.l.b16 %v3509_v37  ;;  %v6769_v6 = vpop.f32.mrf.mxu2  ;;  %v3842_v54 = vpop.permute.xlu1 %3841 }
 0x626   : > { %v3933_v28 = vsel %vm1117_vm10, %v3751_v45, %v3842_v54 }
 0x627   : > { %v3610_v21 = vpack.c.b16 %v3592_v56, %v3591_v27  ;;  %v6771_v11 = vpop.f32.mrf.mxu1  ;;  %v3970_v51 = vsel %vm1166_vm11, %v3933_v28, %v3890_v46 }
 0x629   : > { %v3708_v22 = vshll.u32 %v3610_v21, 16  ;;  %3847 = vrot.lane.b32.xlu1 %v3610_v21, %s5018_s16  ;;  %v3705_v39 = vshrl.u32 %v3610_v21, 16  ;;  %v4148_v21 = vadd.f32 %v6730_v17, %v6744_v5 }
 0x62a   : > { %4884 = vmatmul.msk.bf16.gmra.mxu1 %vm1217_vm12, %v3968_v61  ;;  %v3440_v13 = vpop.f32.mrf.mxu0 }
 0x62b   : > { %4912 = vmatmul.msk.bf16.gmra.mxu2 %vm1217_vm12, %v3968_v61  ;;  %v3783_v29 = vrot.slane %v3708_v22, 1  ;;  %v3707_v8 = vrot.slane %v3705_v39, 7  ;;  %v3441_v4 = vadd.f32 %v5008_v10, %v3440_v13  ;;  %v6788_v1 = vpop.f32.mrf.mxu3 }
 0x62d   : > { %v3784_v16 = vor.u32 %v3783_v29, %v3705_v39  ;;  %v6783_v63 = vor.u32 %v3708_v22, %v3707_v8  ;;  %v3478_v3 = vmax.f32 %v3441_v4, 0.0  ;;  %v4334_v39 = vadd.f32 %v6756_v62, %v4148_v21 }
 0x62e   : > { %v6785_v25 = vpop.f32.mrf.mxu2  ;;  %v3752_v62 = vsel %vm5512_vm9, 0, %v6708_v9 }
 0x62f   : > { %4939 = vmatmul.msk.bf16.gmra.mxu3 %vm1217_vm12, %v3970_v51  ;;  %v4047_v2 = vpop.f32.mrf.mxu1  ;;  %v3818_v41 = vsel %vm5334_vm6, %v3784_v16, 0  ;;  %v3510_v57 = vpack.c.bf16 %v3478_v3, %v3478_v3 }
 0x630   : > { %3895 = vrot.lane.b32.xlu2 %v3818_v41, %s5019_s17  ;;  %v4155_v4 = vadd.f32 %v6769_v6, %v4047_v2 }
 0x631   : > { %v3593_v30 = vunpack.c.l.b16 %v3510_v57 }
 0x632   : > { %v3442_v20 = vpop.f32.mrf.mxu0 }
 0x633   : > { %v3443_v15 = vadd.f32 %v5008_v10, %v3442_v20  ;;  %v4261_v49 = vpop.f32.mrf.mxu3 }
 0x634   : > { %v4337_v41 = vadd.f32 %v4261_v49, %v4155_v4 }
 0x635   : > { %v3479_v55 = vmax.f32 %v3443_v15, 0.0  ;;  %v4150_v15 = vadd.f32 %v6741_v34, %v6765_v19 }
 0x636   : > { %v6794_v33 = vpop.f32.mrf.mxu2 }
 0x637   : > { %v3511_v48 = vpack.c.bf16 %v3479_v55, %v3479_v55  ;;  %v6796_v7 = vpop.f32.mrf.mxu1 }
 0x638   : > { %v4158_v49 = vadd.f32 %v6785_v25, %v6796_v7 }
 0x639   : > { %v3594_v35 = vunpack.c.l.b16 %v3511_v48  ;;  %v4335_v48 = vadd.f32 %v6767_v0, %v4150_v15 }
 0x63a   : > { %4885 = vmatmul.msk.bf16.gmra.mxu1 %vm1217_vm12, %v3970_v51 }
 0x63b   : > { %v3611_v26 = vpack.c.b16 %v3594_v35, %v3593_v30  ;;  %4913 = vmatmul.msk.bf16.gmra.mxu2 %vm1217_vm12, %v3970_v51  ;;  %v3445_v59 = vpop.f32.mrf.mxu0  ;;  %v4153_v30 = vadd.f32 %v6761_v18, %v6771_v11 }
 0x63c   : > { %v3446_v38 = vadd.f32 %v5008_v10, %v3445_v59 }
 0x63d   : > { %v3715_v14 = vshll.u32 %v3611_v26, 16  ;;  %3849 = vrot.lane.b32.xlu0 %v3611_v26, %s5018_s16  ;;  %v3712_v42 = vshrl.u32 %v3611_v26, 16  ;;  %v4336_v0 = vadd.f32 %v6788_v1, %v4153_v30 }
 0x63e   : > { %v4162_v58 = vpop.f32.mrf.mxu2  ;;  %v3480_v61 = vmax.f32 %v3446_v38, 0.0 }
 0x63f   : > { %v6801_v12 = vpop.f32.mrf.mxu1  ;;  %v3785_v50 = vrot.slane %v3715_v14, 1  ;;  %v3714_v47 = vrot.slane %v3712_v42, 7 }
 0x640   : > { %v3512_v43 = vpack.c.bf16 %v3480_v61, %v3480_v61 }
 0x641   : > { %v4264_v53 = vpop.f32.mrf.mxu3  ;;  %v3786_v32 = vor.u32 %v3785_v50, %v3712_v42  ;;  %v6803_v60 = vor.u32 %v3715_v14, %v3714_v47  ;;  %v4160_v42 = vadd.f32 %v6794_v33, %v6801_v12 }
 0x642   : > { %v3595_v45 = vunpack.c.l.b16 %v3512_v43  ;;  %v4338_v26 = vadd.f32 %v4264_v53, %v4158_v49 }
 0x643   : > { %v3447_v52 = vpop.f32.mrf.mxu0  ;;  %v3819_v23 = vsel %vm5334_vm6, %v3786_v32, 0 }
 0x644   : > { %v3448_v36 = vadd.f32 %v5008_v10, %v3447_v52  ;;  %3897 = vrot.lane.b32.xlu1 %v3819_v23, %s5019_s17 }
 0x646   : > { %v3481_v37 = vmax.f32 %v3448_v36, 0.0  ;;  %v4164_v27 = vpop.f32.mrf.mxu2 }
 0x647   : > { %v4055_v56 = vpop.f32.mrf.mxu1 }
 0x648   : > { %v3513_v54 = vpack.c.bf16 %v3481_v37, %v3481_v37  ;;  %v4163_v19 = vadd.f32 %v4162_v58, %v4055_v56 }
 0x649   : > { %v4266_v22 = vpop.f32.mrf.mxu3 }
 0x64a   : > { %v3596_v13 = vunpack.c.l.b16 %v3513_v54  ;;  %v4339_v11 = vadd.f32 %v4266_v22, %v4160_v42 }
 0x64c   : > { %v3612_v28 = vpack.c.b16 %v3596_v13, %v3595_v45  ;;  %4398 = vrot.lane.b32.xlu1 %v4334_v39, %s5018_s16  ;;  %v3844_v16 = vpop.permute.xlu0 %3843 }
 0x64d   : > { %v3936_v57 = vsel %vm1117_vm10, %v3752_v62, %v3844_v16 }
 0x64e   : > { %v3722_v29 = vshll.u32 %v3612_v28, 16  ;;  %v4167_v8 = vpop.f32.mrf.mxu2  ;;  %3851 = vrot.lane.b32.xlu2 %v3612_v28, %s5018_s16  ;;  %v3719_v46 = vshrl.u32 %v3612_v28, 16 }
 0x64f   : > { %v4057_v10 = vpop.f32.mrf.mxu1 }
 0x650   : > { %v3787_v51 = vrot.slane %v3722_v29, 1  ;;  %v3721_v17 = vrot.slane %v3719_v46, 7  ;;  %v4165_v38 = vadd.f32 %v4164_v27, %v4057_v10  ;;  %v3753_v10 = vsel %vm5512_vm9, 0, %v6746_v40 }
 0x651   : > { %v4269_v5 = vpop.f32.mrf.mxu3 }
 0x652   : > { %v3788_v3 = vor.u32 %v3787_v51, %v3719_v46  ;;  %v6817_v20 = vor.u32 %v3722_v29, %v3721_v17  ;;  %v4340_v35 = vadd.f32 %v4269_v5, %v4163_v19 }
 0x653   : > { %v3892_v55 = vpop.permute.xlu1 %3891 }
 0x654   : > { %v3972_v6 = vsel %vm1166_vm11, %v3936_v57, %v3892_v55  ;;  %4404 = vrot.lane.b32.xlu1 %v4337_v41, %s5018_s16  ;;  %v3820_v2 = vsel %vm5334_vm6, %v3788_v3, 0 }
 0x655   : > { %3899 = vrot.lane.b32.xlu0 %v3820_v2, %s5019_s17  ;;  %4886 = vmatmul.msk.bf16.gmra.mxu1 %vm1217_vm12, %v3972_v6 }
 0x656   : > { %v4169_v9 = vpop.f32.mrf.mxu2  ;;  %4914 = vmatmul.msk.bf16.gmra.mxu2 %vm1217_vm12, %v3972_v6  ;;  %4940 = vmatmul.msk.bf16.gmra.mxu3 %vm1217_vm12, %v3972_v6 }
 0x657   : > { %4400 = vrot.lane.b32.xlu2 %v4335_v48, %s5018_s16  ;;  %v4060_v34 = vpop.f32.mrf.mxu1  ;;  %v3754_v48 = vsel %vm5512_vm9, 0, %v6783_v63 }
 0x658   : > { %v4168_v50 = vadd.f32 %v4167_v8, %v4060_v34 }
 0x659   : > { %v4271_v24 = vpop.f32.mrf.mxu3 }
 0x65a   : > { %v4341_v58 = vadd.f32 %v4271_v24, %v4165_v38 }
 0x65c   : > { %4410 = vrot.lane.b32.xlu1 %v4340_v35, %s5018_s16 }
 0x65d   : > { %4402 = vrot.lane.b32.xlu0 %v4336_v0, %s5018_s16 }
 0x65e   : > { %v4172_v59 = vpop.f32.mrf.mxu2 }
 0x65f   : > { %4406 = vrot.lane.b32.xlu2 %v4338_v26, %s5018_s16  ;;  %v4062_v14 = vpop.f32.mrf.mxu1 }
 0x660   : > { %v4170_v1 = vadd.f32 %v4169_v9, %v4062_v14 }
 0x661   : > { %v4274_v18 = vpop.f32.mrf.mxu3 }
 0x662   : > { %v4342_v32 = vadd.f32 %v4274_v18, %v4168_v50 }
 0x665   : > { %4408 = vrot.lane.b32.xlu0 %v4339_v11, %s5018_s16 }
 0x666   : > { %v4174_v7 = vpop.f32.mrf.mxu2 }
 0x667   : > { %4412 = vrot.lane.b32.xlu2 %v4341_v58, %s5018_s16  ;;  %v4065_v25 = vpop.f32.mrf.mxu1 }
 0x668   : > { %v4173_v12 = vadd.f32 %v4172_v59, %v4065_v25 }
 0x669   : > { %v4276_v47 = vpop.f32.mrf.mxu3 }
 0x66a   : > { %v4343_v53 = vadd.f32 %v4276_v47, %v4170_v1 }
 0x66c   : > { %4416 = vrot.lane.b32.xlu1 %v4343_v53, %s5018_s16 }
 0x66d   : > { %4414 = vrot.lane.b32.xlu0 %v4342_v32, %s5018_s16 }
 0x66e   : > { %v4177_v52 = vpop.f32.mrf.mxu2  ;;  %v3846_v8 = vpop.permute.xlu2 %3845 }
 0x66f   : > { %v4067_v33 = vpop.f32.mrf.mxu1  ;;  %v3939_v4 = vsel %vm1117_vm10, %v3753_v10, %v3846_v8 }
 0x670   : > { %v4175_v43 = vadd.f32 %v4174_v7, %v4067_v33  ;;  %v3755_v7 = vsel %vm5512_vm9, 0, %v6803_v60 }
 0x671   : > { %v4279_v61 = vpop.f32.mrf.mxu3 }
 0x672   : > { %v4344_v23 = vadd.f32 %v4279_v61, %v4173_v12 }
 0x674   : > { %4418 = vrot.lane.b32.xlu2 %v4344_v23, %s5018_s16 }
 0x676   : > { %v4179_v56 = vpop.f32.mrf.mxu2 }
 0x677   : > { %v4070_v36 = vpop.f32.mrf.mxu1 }
 0x678   : > { %v4178_v54 = vadd.f32 %v4177_v52, %v4070_v36 }
 0x679   : > { %v4281_v37 = vpop.f32.mrf.mxu3 }
 0x67a   : > { %v4345_v27 = vadd.f32 %v4281_v37, %v4175_v43  ;;  %v3756_v43 = vsel %vm5512_vm9, 0, %v6817_v20 }
 0x67c   : > { %4420 = vrot.lane.b32.xlu0 %v4345_v27, %s5018_s16 }
 0x67e   : > { %v4182_v45 = vpop.f32.mrf.mxu2 }
 0x67f   : > { %v4072_v21 = vpop.f32.mrf.mxu1 }
 0x680   : > { %v4180_v28 = vadd.f32 %v4179_v56, %v4072_v21 }
 0x681   : > { %v4284_v22 = vpop.f32.mrf.mxu3 }
 0x682   : > { %v4346_v39 = vadd.f32 %v4284_v22, %v4178_v54 }
 0x684   : > { %4422 = vrot.lane.b32.xlu1 %v4346_v39, %s5018_s16 }
 0x686   : > { %v4184_v5 = vpop.f32.mrf.mxu2 }
 0x687   : > { %v4075_v13 = vpop.f32.mrf.mxu1 }
 0x688   : > { %v4183_v41 = vadd.f32 %v4182_v45, %v4075_v13 }
 0x689   : > { %v4286_v29 = vpop.f32.mrf.mxu3 }
 0x68a   : > { %v4347_v46 = vadd.f32 %v4286_v29, %v4180_v28  ;;  %v3896_v34 = vpop.permute.xlu2 %3895 }
 0x68c   : > { %4424 = vrot.lane.b32.xlu2 %v4347_v46, %s5018_s16 }
 0x68d   : > { %v3894_v16 = vpop.permute.xlu0 %3893 }
 0x68e   : > { %v3974_v51 = vsel %vm1166_vm11, %v3939_v4, %v3894_v16  ;;  %v4187_v57 = vpop.f32.mrf.mxu2 }
 0x68f   : > { %v4077_v17 = vpop.f32.mrf.mxu1  ;;  %4887 = vmatmul.msk.bf16.gmra.mxu1 %vm1217_vm12, %v3974_v51  ;;  %4915 = vmatmul.msk.bf16.gmra.mxu2 %vm1217_vm12, %v3974_v51 }
 0x690   : > { %4941 = vmatmul.msk.bf16.gmra.mxu3 %vm1217_vm12, %v3974_v51  ;;  %v4185_v15 = vadd.f32 %v4184_v5, %v4077_v17 }
 0x692   : > { %v4289_v62 = vpop.f32.mrf.mxu3 }
 0x693   : > { %v4348_v3 = vadd.f32 %v4289_v62, %v4183_v41 }
 0x695   : > { %4426 = vrot.lane.b32.xlu0 %v4348_v3, %s5018_s16 }
 0x696   : > { %v4189_v49 = vpop.f32.mrf.mxu2 }
 0x697   : > { %v4080_v40 = vpop.f32.mrf.mxu1 }
 0x698   : > { %v4188_v30 = vadd.f32 %v4187_v57, %v4080_v40 }
 0x69a   : > { %v4291_v55 = vpop.f32.mrf.mxu3 }
 0x69b   : > { %v4349_v6 = vadd.f32 %v4291_v55, %v4185_v15  ;;  %v3848_v2 = vpop.permute.xlu1 %3847 }
 0x69c   : > { %v3942_v9 = vsel %vm1117_vm10, %v3754_v48, %v3848_v2 }
 0x69d   : > { %4428 = vrot.lane.b32.xlu1 %v4349_v6, %s5018_s16  ;;  %v3976_v19 = vsel %vm1166_vm11, %v3942_v9, %v3896_v34 }
 0x69e   : > { %v4192_v18 = vpop.f32.mrf.mxu2 }
 0x69f   : > { %4888 = vmatmul.msk.bf16.gmra.mxu1 %vm1217_vm12, %v3976_v19  ;;  %4916 = vmatmul.msk.bf16.gmra.mxu2 %vm1217_vm12, %v3976_v19  ;;  %v4082_v24 = vpop.f32.mrf.mxu1 }
 0x6a0   : > { %4942 = vmatmul.msk.bf16.gmra.mxu3 %vm1217_vm12, %v3976_v19  ;;  %v4190_v26 = vadd.f32 %v4189_v49, %v4082_v24 }
 0x6a2   : > { %v4294_v35 = vpop.f32.mrf.mxu3 }
 0x6a3   : > { %v4350_v0 = vadd.f32 %v4294_v35, %v4188_v30 }
 0x6a5   : > { %4430 = vrot.lane.b32.xlu2 %v4350_v0, %s5018_s16 }
 0x6a6   : > { %v4194_v33 = vpop.f32.mrf.mxu2 }
 0x6a7   : > { %v4085_v42 = vpop.f32.mrf.mxu1 }
 0x6a8   : > { %v3852_v63 = vpop.permute.xlu2 %3851  ;;  %v4193_v11 = vadd.f32 %v4192_v18, %v4085_v42 }
 0x6a9   : > { %v3948_v27 = vsel %vm1117_vm10, %v3756_v43, %v3852_v63 }
 0x6aa   : > { %v4296_v59 = vpop.f32.mrf.mxu3 }
 0x6ab   : > { %v4351_v14 = vadd.f32 %v4296_v59, %v4190_v26 }
 0x6ad   : > { %4432 = vrot.lane.b32.xlu0 %v4351_v14, %s5018_s16 }
 0x6ae   : > { %v4197_v39 = vpop.f32.mrf.mxu2 }
 0x6af   : > { %v3850_v25 = vpop.permute.xlu0 %3849  ;;  %v4087_v50 = vpop.f32.mrf.mxu1 }
 0x6b0   : > { %v3945_v47 = vsel %vm1117_vm10, %v3755_v7, %v3850_v25  ;;  %v4195_v12 = vadd.f32 %v4194_v33, %v4087_v50 }
 0x6b1   : > { %v4401_v38 = vpop.permute.xlu2 %4400 }
 0x6b2   : > { %4496 = vst.msk [vmem:[%s5078_s7 + $0x8] sm:$0xff] %vm4494_vm15, %v4401_v38  ;;  %v4299_v58 = vpop.f32.mrf.mxu3 }
 0x6b3   : > { %v4352_v1 = vadd.f32 %v4299_v58, %v4193_v11 }
 0x6b5   : > { %4434 = vrot.lane.b32.xlu1 %v4352_v1, %s5018_s16 }
 0x6b6   : > { %v3898_v53 = vpop.permute.xlu1 %3897  ;;  %v4199_v10 = vpop.f32.mrf.mxu2 }
 0x6b7   : > { %v3978_v32 = vsel %vm1166_vm11, %v3945_v47, %v3898_v53  ;;  %v4090_v20 = vpop.f32.mrf.mxu1 }
 0x6b8   : > { %4889 = vmatmul.msk.bf16.gmra.mxu1 %vm1217_vm12, %v3978_v32  ;;  %4917 = vmatmul.msk.bf16.gmra.mxu2 %vm1217_vm12, %v3978_v32  ;;  %v4198_v13 = vadd.f32 %v4197_v39, %v4090_v20 }
 0x6b9   : > { %v4407_v61 = vpop.permute.xlu2 %4406  ;;  %4943 = vmatmul.msk.bf16.gmra.mxu3 %vm1217_vm12, %v3978_v32 }
 0x6ba   : > { %4499 = vst.msk [vmem:[%s5078_s7 + $0x20] sm:$0xff] %vm4494_vm15, %v4407_v61  ;;  %v4301_v60 = vpop.f32.mrf.mxu3 }
 0x6bb   : > { %v4353_v52 = vadd.f32 %v4301_v60, %v4195_v12 }
 0x6bd   : > { %4436 = vrot.lane.b32.xlu2 %v4353_v52, %s5018_s16 }
 0x6be   : > { %v4399_v23 = vpop.permute.xlu1 %4398  ;;  %v4202_v15 = vpop.f32.mrf.mxu2 }
 0x6bf   : > { %4495 = vst.msk [vmem:[%s5078_s7] sm:$0xff] %vm4494_vm15, %v4399_v23  ;;  %v4092_v8 = vpop.f32.mrf.mxu1 }
 0x6c0   : > { %v4200_v16 = vadd.f32 %v4199_v10, %v4092_v8 }
 0x6c1   : > { %v4413_v36 = vpop.permute.xlu2 %4412 }
 0x6c2   : > { %4502 = vst.msk [vmem:[%s5078_s7 + $0x38] sm:$0xff] %vm4494_vm15, %v4413_v36 }
 0x6c6   : > { %v4405_v37 = vpop.permute.xlu1 %4404  ;;  %v4204_v9 = vpop.f32.mrf.mxu2 }
 0x6c7   : > { %4498 = vst.msk [vmem:[%s5078_s7 + $0x18] sm:$0xff] %vm4494_vm15, %v4405_v37  ;;  %v3900_v56 = vpop.permute.xlu0 %3899 }
 0x6c8   : > { %v3980_v21 = vsel %vm1166_vm11, %v3948_v27, %v3900_v56 }
 0x6c9   : > { %4890 = vmatmul.msk.bf16.gmra.mxu1 %vm1217_vm12, %v3980_v21  ;;  %4944 = vmatmul.msk.bf16.gmra.mxu3 %vm1217_vm12, %v3980_v21 }
 0x6ce   : > { %v4419_v54 = vpop.permute.xlu2 %4418  ;;  %v4411_v22 = vpop.permute.xlu1 %4410 }
 0x6cf   : > { %4505 = vst.msk [vmem:[%s5078_s7 + $0x50] sm:$0xff] %vm4494_vm15, %v4419_v54  ;;  %v4403_v44 = vpop.permute.xlu0 %4402 }
 0x6d0   : > { %4501 = vst.msk [vmem:[%s5078_s7 + $0x30] sm:$0xff] %vm4494_vm15, %v4411_v22 }
 0x6d1   : > { %4497 = vst.msk [vmem:[%s5078_s7 + $0x10] sm:$0xff] %vm4494_vm15, %v4403_v44 }
 0x6d2   : > { %v4095_v40 = vpop.f32.mrf.mxu1 }
 0x6d3   : > { %v4203_v55 = vadd.f32 %v4202_v15, %v4095_v40 }
 0x6d7   : > { %v4409_v45 = vpop.permute.xlu0 %4408 }
 0x6d8   : > { %4500 = vst.msk [vmem:[%s5078_s7 + $0x28] sm:$0xff] %vm4494_vm15, %v4409_v45 }
 0x6d9   : > { %v4304_v28 = vpop.f32.mrf.mxu3  ;;  %4328 = vmatmul.bf16.gmra.mxu3 %v5020_v31  ;;  %v4207_v0 = vpop.f32.mrf.mxu2 }
 0x6da   : > { %v4354_v29 = vadd.f32 %v4304_v28, %v4198_v13  ;;  %v4097_v2 = vpop.f32.mrf.mxu1 }
 0x6db   : > { %v4205_v19 = vadd.f32 %v4204_v9, %v4097_v2 }
 0x6dc   : > { %4438 = vrot.lane.b32.xlu0 %v4354_v29, %s5018_s16 }
 0x6de   : > { %v4417_v46 = vpop.permute.xlu1 %4416 }
 0x6df   : > { %4504 = vst.msk [vmem:[%s5078_s7 + $0x48] sm:$0xff] %vm4494_vm15, %v4417_v46  ;;  %v4415_v4 = vpop.permute.xlu0 %4414 }
 0x6e0   : > { %4503 = vst.msk [vmem:[%s5078_s7 + $0x40] sm:$0xff] %vm4494_vm15, %v4415_v4 }
 0x6e1   : > { %v4306_v51 = vpop.f32.mrf.mxu3  ;;  %v4209_v18 = vpop.f32.mrf.mxu2 }
 0x6e2   : > { %v4355_v17 = vadd.f32 %v4306_v51, %v4200_v16 }
 0x6e4   : > { %4440 = vrot.lane.b32.xlu1 %v4355_v17, %s5018_s16 }
 0x6e6   : > { %v4425_v31 = vpop.permute.xlu2 %4424 }
 0x6e7   : > { %4508 = vst.msk [vmem:[%s5078_s7 + $0x68] sm:$0xff] %vm4494_vm15, %v4425_v31 }
 0x6ee   : > { %v4421_v5 = vpop.permute.xlu0 %4420 }
 0x6ef   : > { %4506 = vst.msk [vmem:[%s5078_s7 + $0x58] sm:$0xff] %vm4494_vm15, %v4421_v5 }
 0x6f6   : > { %v4423_v41 = vpop.permute.xlu1 %4422 }
 0x6f7   : > { %4507 = vst.msk [vmem:[%s5078_s7 + $0x60] sm:$0xff] %vm4494_vm15, %v4423_v41 }
 0x6ff   : > { %v4431_v62 = vpop.permute.xlu2 %4430 }
 0x700   : > { %4511 = vst.msk [vmem:[%s5078_s7 + $0x80] sm:$0xff] %vm4494_vm15, %v4431_v62 }
 0x707   : > { %v4427_v3 = vpop.permute.xlu0 %4426 }
 0x708   : > { %4509 = vst.msk [vmem:[%s5078_s7 + $0x70] sm:$0xff] %vm4494_vm15, %v4427_v3 }
 0x70c   : > { %v4100_v24 = vpop.f32.mrf.mxu1 }
 0x70d   : > { %v4208_v63 = vadd.f32 %v4207_v0, %v4100_v24 }
 0x70f   : > { %v4429_v57 = vpop.permute.xlu1 %4428 }
 0x710   : > { %4510 = vst.msk [vmem:[%s5078_s7 + $0x78] sm:$0xff] %vm4494_vm15, %v4429_v57 }
 0x712   : > { %v4212_v1 = vpop.f32.mrf.mxu2 }
 0x713   : > { %v4309_v6 = vpop.f32.mrf.mxu3 }
 0x714   : > { %v4356_v48 = vadd.f32 %v4309_v6, %v4203_v55  ;;  %v4102_v14 = vpop.f32.mrf.mxu1 }
 0x715   : > { %v4210_v11 = vadd.f32 %v4209_v18, %v4102_v14 }
 0x716   : > { %4442 = vrot.lane.b32.xlu2 %v4356_v48, %s5018_s16 }
 0x717   : > { %v4437_v34 = vpop.permute.xlu2 %4436 }
 0x718   : > { %4514 = vst.msk [vmem:[%s5078_s7 + $0x98] sm:$0xff] %vm4494_vm15, %v4437_v34 }
 0x71a   : > { %v4214_v47 = vpop.f32.mrf.mxu2 }
 0x71b   : > { %v4311_v30 = vpop.f32.mrf.mxu3 }
 0x71c   : > { %v4357_v35 = vadd.f32 %v4311_v30, %v4205_v19  ;;  %v4105_v25 = vpop.f32.mrf.mxu1 }
 0x71d   : > { %v4213_v50 = vadd.f32 %v4212_v1, %v4105_v25 }
 0x71e   : > { %4444 = vrot.lane.b32.xlu0 %v4357_v35, %s5018_s16 }
 0x71f   : > { %v4433_v49 = vpop.permute.xlu0 %4432 }
 0x720   : > { %4512 = vst.msk [vmem:[%s5078_s7 + $0x88] sm:$0xff] %vm4494_vm15, %v4433_v49 }
 0x722   : > { %v4217_v52 = vpop.f32.mrf.mxu2 }
 0x723   : > { %v4314_v26 = vpop.f32.mrf.mxu3 }
 0x724   : > { %v4358_v59 = vadd.f32 %v4314_v26, %v4208_v63  ;;  %v4107_v7 = vpop.f32.mrf.mxu1 }
 0x725   : > { %v4215_v12 = vadd.f32 %v4214_v47, %v4107_v7 }
 0x726   : > { %4446 = vrot.lane.b32.xlu1 %v4358_v59, %s5018_s16 }
 0x727   : > { %v4435_v42 = vpop.permute.xlu1 %4434 }
 0x728   : > { %4513 = vst.msk [vmem:[%s5078_s7 + $0x90] sm:$0xff] %vm4494_vm15, %v4435_v42 }
 0x72a   : > { %v4219_v56 = vpop.f32.mrf.mxu2 }
 0x72b   : > { %v4316_v38 = vpop.f32.mrf.mxu3 }
 0x72c   : > { %v4359_v58 = vadd.f32 %v4316_v38, %v4210_v11 }
 0x72e   : > { %4448 = vrot.lane.b32.xlu2 %v4359_v58, %s5018_s16 }
 0x735   : > { %v4110_v33 = vpop.f32.mrf.mxu1 }
 0x736   : > { %v4218_v23 = vadd.f32 %v4217_v52, %v4110_v33 }
 0x73b   : > { %v4222_v39 = vpop.f32.mrf.mxu2 }
 0x73c   : > { %v4319_v53 = vpop.f32.mrf.mxu3 }
 0x73d   : > { %v4360_v32 = vadd.f32 %v4319_v53, %v4213_v50  ;;  %v4112_v36 = vpop.f32.mrf.mxu1 }
 0x73e   : > { %v4220_v21 = vadd.f32 %v4219_v56, %v4112_v36 }
 0x73f   : > { %4450 = vrot.lane.b32.xlu0 %v4360_v32, %s5018_s16 }
 0x743   : > { %v4224_v8 = vpop.f32.mrf.mxu2 }
 0x744   : > { %v4321_v61 = vpop.f32.mrf.mxu3 }
 0x745   : > { %v4361_v60 = vadd.f32 %v4321_v61, %v4215_v12 }
 0x746   : > { %v4115_v44 = vpop.f32.mrf.mxu1 }
 0x747   : > { %4452 = vrot.lane.b32.xlu1 %v4361_v60, %s5018_s16  ;;  %v4223_v45 = vadd.f32 %v4222_v39, %v4115_v44 }
 0x74c   : > { %v4324_v43 = vpop.f32.mrf.mxu3 }
 0x74d   : > { %v4362_v37 = vadd.f32 %v4324_v43, %v4218_v23 }
 0x74e   : > { %v4439_v27 = vpop.permute.xlu0 %4438  ;;  %v4117_v29 = vpop.f32.mrf.mxu1 }
 0x74f   : > { %4515 = vst.msk [vmem:[%s5078_s7 + $0xa0] sm:$0xff] %vm4494_vm15, %v4439_v27  ;;  %4454 = vrot.lane.b32.xlu2 %v4362_v37, %s5018_s16  ;;  %v4225_v46 = vadd.f32 %v4224_v8, %v4117_v29 }
 0x754   : > { %v4326_v54 = vpop.f32.mrf.mxu3 }
 0x755   : > { %v4363_v22 = vadd.f32 %v4326_v54, %v4220_v21 }
 0x756   : > { %v4441_v20 = vpop.permute.xlu1 %4440 }
 0x757   : > { %4516 = vst.msk [vmem:[%s5078_s7 + $0xa8] sm:$0xff] %vm4494_vm15, %v4441_v20  ;;  %4456 = vrot.lane.b32.xlu0 %v4363_v22, %s5018_s16 }
 0x75c   : > { %v4329_v13 = vpop.f32.mrf.mxu3 }
 0x75d   : > { %v4364_v28 = vadd.f32 %v4329_v13, %v4223_v45 }
 0x75f   : > { %4458 = vrot.lane.b32.xlu1 %v4364_v28, %s5018_s16 }
 0x764   : > { %v4331_v10 = vpop.f32.mrf.mxu3 }
 0x765   : > { %v4365_v4 = vadd.f32 %v4331_v10, %v4225_v46 }
 0x767   : > { %4460 = vrot.lane.b32.xlu2 %v4365_v4, %s5018_s16 }
 0x770   : > { %v4443_v16 = vpop.permute.xlu2 %4442 }
 0x771   : > { %4517 = vst.msk [vmem:[%s5078_s7 + $0xb0] sm:$0xff] %vm4494_vm15, %v4443_v16 }
 0x788   : > { %v4449_v51 = vpop.permute.xlu2 %4448 }
 0x789   : > { %4520 = vst.msk [vmem:[%s5078_s7 + $0xc8] sm:$0xff] %vm4494_vm15, %v4449_v51 }
 0x790   : > { %v4445_v17 = vpop.permute.xlu0 %4444 }
 0x791   : > { %4518 = vst.msk [vmem:[%s5078_s7 + $0xb8] sm:$0xff] %vm4494_vm15, %v4445_v17 }
 0x798   : > { %v4447_v31 = vpop.permute.xlu1 %4446 }
 0x799   : > { %4519 = vst.msk [vmem:[%s5078_s7 + $0xc0] sm:$0xff] %vm4494_vm15, %v4447_v31 }
 0x7a9   : > { %v4455_v5 = vpop.permute.xlu2 %4454 }
 0x7aa   : > { %4523 = vst.msk [vmem:[%s5078_s7 + $0xe0] sm:$0xff] %vm4494_vm15, %v4455_v5 }
 0x7b1   : > { %v4451_v41 = vpop.permute.xlu0 %4450 }
 0x7b2   : > { %4521 = vst.msk [vmem:[%s5078_s7 + $0xd0] sm:$0xff] %vm4494_vm15, %v4451_v41 }
 0x7b9   : > { %v4453_v62 = vpop.permute.xlu1 %4452 }
 0x7ba   : > { %4522 = vst.msk [vmem:[%s5078_s7 + $0xd8] sm:$0xff] %vm4494_vm15, %v4453_v62 }
 0x7c1   : > { %v4461_v3 = vpop.permute.xlu2 %4460 }
 0x7c2   : > { %4526 = vst.msk [vmem:[%s5078_s7 + $0xf8] sm:$0xff] %vm4494_vm15, %v4461_v3 }
 0x7c9   : > { %v4457_v40 = vpop.permute.xlu0 %4456 }
 0x7ca   : > { %4524 = vst.msk [vmem:[%s5078_s7 + $0xe8] sm:$0xff] %vm4494_vm15, %v4457_v40 }
 0x7d1   : > { %v4459_v15 = vpop.permute.xlu1 %4458 }
 0x7d2   : > { %4525 = vst.msk [vmem:[%s5078_s7 + $0xf0] sm:$0xff] %vm4494_vm15, %v4459_v15 }
 0x7d3 PF: > { %s16_s21 = sadd.s32 1, %s5015_s21  }
 0x7d4   : > { %p13_p4 = scmp.ge.s32.totalorder %s16_s21, 4  }
 0x7d6   :  { %15 = sbr.rel (!%p13_p4) target bundleno = 1 (0x1), region = 84 }

</bundles_post_ra>
